<compile_context>
chip_gen: v7x
topology: tpu7x:2x2x1
jax: 0.10.0
libtpu: 0.0.40
codegen_flags: <defaults>
</compile_context>

<pallas_src>
import functools

import jax
import jax.numpy as jnp
from jax.experimental import pallas as pl
from jax.experimental.pallas import tpu as pltpu


# ------------------------------ in-kernel math -------------------------------

def _mish(x):
    # mish(x) = x * tanh(softplus(x)) = x * g / (g + 2), g = e*(e+2), e = e^x.
    # Clamp the exponent: for x > 20 the ratio is 1 to within f32 precision.
    e = jnp.exp(jnp.minimum(x, 20.0))
    g = e * (e + 2.0)
    return x * (g / (g + 2.0))


def _build_im2col(src_ref, im_ref, H, W, C):
    """Assemble [H*W, 9*C] im2col tile in VMEM from a zero/-inf padded ref."""
    for dy in range(3):
        for dx in range(3):
            t = dy * 3 + dx
            im_ref[:, t * C:(t + 1) * C] = (
                src_ref[dy:dy + H, dx:dx + W, :].reshape(H * W, C))


# --------------------------------- kernels -----------------------------------

def _conv_mish_pool_kernel(xp_ref, w_ref, b_ref, out_ref, im_ref, cp_ref,
                           *, H, W, Cin, Cout):
    """Per-sample: 3x3 same-conv (one K=9*Cin GEMM) + bias + Mish + 3x3 max.

    xp_ref : (H+2, W+2, Cin)  zero-padded input activation
    out_ref: (H//2, W, Cout)  row-decimated, column-stride-1 pooled map
                              (wrapper takes columns ::2)
    im_ref : (H*W, 9*Cin)     VMEM im2col scratch
    cp_ref : (H+2, W+2, Cout) VMEM -inf-padded conv output (pool staging)
    """
    _build_im2col(xp_ref, im_ref, H, W, Cin)
    acc = jnp.dot(im_ref[...], w_ref[...], preferred_element_type=jnp.float32)
    c = _mish(acc + b_ref[...])                        # (H*W, Cout)

    # 3x3 / stride-1 max pool via a -inf padded VMEM staging buffer.
    cp_ref[...] = jnp.full((H + 2, W + 2, Cout), -jnp.inf, jnp.float32)
    cp_ref[1:H + 1, 1:W + 1, :] = c.reshape(H, W, Cout)
    m = cp_ref[0:H, 0:W, :]
    for dy in range(3):
        for dx in range(3):
            if dy == 0 and dx == 0:
                continue
            m = jnp.maximum(m, cp_ref[dy:dy + H, dx:dx + W, :])

    # Stride-2 row decimation is free (outer-dim reshape + slice).  Column
    # decimation happens in the wrapper on the already-halved output.
    out_ref[...] = m.reshape(H // 2, 2, W, Cout)[:, 0]


def _residual_block_kernel(xp_ref, w1_ref, b1_ref, w2_ref, b2_ref, out_ref,
                           im_ref, hp_ref, *, H, W, C):
    """Per-sample fused ResidualBlock: mish(conv2(mish(conv1(x)))) + x.

    xp_ref / out_ref: (H+2, W+2, C) zero-padded maps (interior = activation).
    im_ref: (H*W, 9*C) im2col scratch (reused by both convs).
    hp_ref: (H+2, W+2, C) padded intermediate activation scratch.
    """
    def conv_mish(src_ref, w_ref, b_ref):
        _build_im2col(src_ref, im_ref, H, W, C)
        y = jnp.dot(im_ref[...], w_ref[...],
                    preferred_element_type=jnp.float32)
        return _mish(y + b_ref[...])                   # (H*W, C)

    h = conv_mish(xp_ref, w1_ref, b1_ref)
    hp_ref[...] = jnp.zeros((H + 2, W + 2, C), jnp.float32)
    hp_ref[1:H + 1, 1:W + 1, :] = h.reshape(H, W, C)

    y = conv_mish(hp_ref, w2_ref, b2_ref)
    y = y + xp_ref[1:H + 1, 1:W + 1, :].reshape(H * W, C)   # residual add

    # Emit zero-padded so the next residual block consumes it directly.
    out_ref[...] = jnp.zeros((H + 2, W + 2, C), jnp.float32)
    out_ref[1:H + 1, 1:W + 1, :] = y.reshape(H, W, C)


# --------------------------------- wrappers ----------------------------------

_VMEM_LIMIT = 32 * 1024 * 1024


def conv_mish_pool(xp_nhwc, w9, b):
    """Fused conv3x3+bias+Mish+maxpool(3,s2,p1). Input is zero-padded NHWC."""
    n, hp2, wp2, cin = xp_nhwc.shape
    h, w = hp2 - 2, wp2 - 2
    cout = w9.shape[-1]
    assert h % 2 == 0 and w % 2 == 0 and w % 8 == 0, (h, w)
    ho = h // 2
    w2d = w9.reshape(9 * cin, cout)
    b2d = b.reshape(1, cout)

    kern = functools.partial(_conv_mish_pool_kernel, H=h, W=w, Cin=cin,
                             Cout=cout)
    out = pl.pallas_call(
        kern,
        grid=(n,),
        in_specs=[
            pl.BlockSpec((None, hp2, wp2, cin), lambda i: (i, 0, 0, 0)),
            pl.BlockSpec((9 * cin, cout), lambda i: (0, 0)),
            pl.BlockSpec((1, cout), lambda i: (0, 0)),
        ],
        out_specs=pl.BlockSpec((None, ho, w, cout), lambda i: (i, 0, 0, 0)),
        out_shape=jax.ShapeDtypeStruct((n, ho, w, cout), jnp.float32),
        scratch_shapes=[
            pltpu.VMEM((h * w, 9 * cin), jnp.float32),
            pltpu.VMEM((h + 2, w + 2, cout), jnp.float32),
        ],
        compiler_params=pltpu.CompilerParams(
            dimension_semantics=("parallel",),
            vmem_limit_bytes=_VMEM_LIMIT),
        cost_estimate=pl.CostEstimate(
            flops=2 * n * h * w * 9 * cin * cout,
            transcendentals=n * h * w * cout,
            bytes_accessed=4 * (n * hp2 * wp2 * cin + 9 * cin * cout
                                + n * ho * w * cout)),
    )(xp_nhwc, w2d, b2d)
    return out


def residual_block(xp_nhwc, w1, b1, w2, b2):
    """Fused ResidualBlock on a zero-padded NHWC map; output is zero-padded."""
    n, hp2, wp2, c = xp_nhwc.shape
    h, w = hp2 - 2, wp2 - 2
    assert w % 8 == 0, w
    w1m = w1.reshape(9 * c, c)
    w2m = w2.reshape(9 * c, c)
    b1m = b1.reshape(1, c)
    b2m = b2.reshape(1, c)

    kern = functools.partial(_residual_block_kernel, H=h, W=w, C=c)
    out = pl.pallas_call(
        kern,
        grid=(n,),
        in_specs=[
            pl.BlockSpec((None, hp2, wp2, c), lambda i: (i, 0, 0, 0)),
            pl.BlockSpec((9 * c, c), lambda i: (0, 0)),
            pl.BlockSpec((1, c), lambda i: (0, 0)),
            pl.BlockSpec((9 * c, c), lambda i: (0, 0)),
            pl.BlockSpec((1, c), lambda i: (0, 0)),
        ],
        out_specs=pl.BlockSpec((None, hp2, wp2, c), lambda i: (i, 0, 0, 0)),
        out_shape=jax.ShapeDtypeStruct((n, hp2, wp2, c), jnp.float32),
        scratch_shapes=[
            pltpu.VMEM((h * w, 9 * c), jnp.float32),
            pltpu.VMEM((h + 2, w + 2, c), jnp.float32),
        ],
        compiler_params=pltpu.CompilerParams(
            dimension_semantics=("parallel",),
            vmem_limit_bytes=_VMEM_LIMIT),
        cost_estimate=pl.CostEstimate(
            flops=2 * 2 * n * h * w * 9 * c * c,
            transcendentals=2 * n * h * w * c,
            bytes_accessed=4 * (2 * n * hp2 * wp2 * c + 2 * 9 * c * c)),
    )(xp_nhwc, w1m, b1m, w2m, b2m)
    return out


def impala_block(x_nchw, p):
    """ImpalaBlock forward. Input NCHW (PyTorch convention), output NCHW."""
    x = jnp.transpose(x_nchw, (0, 2, 3, 1))                    # NCHW -> NHWC
    xp = jnp.pad(x, ((0, 0), (1, 1), (1, 1), (0, 0)))          # conv zero pad
    g = conv_mish_pool(xp, p['conv_w'], p['conv_b'])           # (N, H/2, W, Co)
    # Column decimation (stride 2) + zero pad for the residual blocks (glue).
    y = jnp.pad(g[:, :, ::2, :], ((0, 0), (1, 1), (1, 1), (0, 0)))
    y = residual_block(y, p['res1_w1'], p['res1_b1'],
                       p['res1_w2'], p['res1_b2'])
    y = residual_block(y, p['res2_w1'], p['res2_b1'],
                       p['res2_w2'], p['res2_b2'])
    out = y[:, 1:-1, 1:-1, :]                                  # strip pad
    return jnp.transpose(out, (0, 3, 1, 2))                    # NHWC -> NCHW


# ----------------------- params & pure-JAX reference -------------------------

def init_params(key, cin, cout):
    ks = jax.random.split(key, 10)

    def w(k, ci, co):  # [9, Cin, Cout], tap index = dy*3+dx
        return jax.random.normal(k, (9, ci, co), jnp.float32) * 0.1

    def b(k, co):
        return jax.random.normal(k, (co,), jnp.float32) * 0.01

    return {
        'conv_w': w(ks[0], cin, cout), 'conv_b': b(ks[1], cout),
        'res1_w1': w(ks[2], cout, cout), 'res1_b1': b(ks[3], cout),
        'res1_w2': w(ks[4], cout, cout), 'res1_b2': b(ks[5], cout),
        'res2_w1': w(ks[6], cout, cout), 'res2_b1': b(ks[7], cout),
        'res2_w2': w(ks[8], cout, cout), 'res2_b2': b(ks[9], cout),
    }


def _ref_mish(x):
    sp = jnp.maximum(x, 0.0) + jnp.log(1.0 + jnp.exp(-jnp.abs(x)))
    return x * jnp.tanh(sp)


def _ref_conv(x_nhwc, w9, b, apply_mish=True, residual=None):
    cin, cout = w9.shape[1], w9.shape[2]
    w_hwio = w9.reshape(3, 3, cin, cout)
    y = jax.lax.conv_general_dilated(
        x_nhwc, w_hwio, window_strides=(1, 1), padding=((1, 1), (1, 1)),
        dimension_numbers=('NHWC', 'HWIO', 'NHWC'))
    y = y + b.reshape(1, 1, 1, cout)
    if apply_mish:
        y = _ref_mish(y)
    if residual is not None:
        y = y + residual
    return y


def _ref_pool(x):
    return jax.lax.reduce_window(
        x, -jnp.inf, jax.lax.max,
        window_dimensions=(1, 3, 3, 1), window_strides=(1, 2, 2, 1),
        padding=((0, 0), (1, 1), (1, 1), (0, 0)))


def impala_ref(x_nchw, p):
    x = jnp.transpose(x_nchw, (0, 2, 3, 1))
    x = _ref_conv(x, p['conv_w'], p['conv_b'])
    x = _ref_pool(x)
    for blk in ('res1', 'res2'):
        r = x
        h = _ref_conv(x, p[f'{blk}_w1'], p[f'{blk}_b1'])
        x = _ref_conv(h, p[f'{blk}_w2'], p[f'{blk}_b2'], residual=r)
    return jnp.transpose(x, (0, 3, 1, 2))


# ------------------------------------ main ------------------------------------

if __name__ == "__main__":
    key = jax.random.PRNGKey(0)
    kx, kp = jax.random.split(key)

    N, Cin, H, W = 2, 4, 16, 16
    Cout = 8
    x = jax.random.normal(kx, (N, Cin, H, W), jnp.float32)
    params = init_params(kp, Cin, Cout)

    out = jax.jit(impala_block)(x, params)
    out = jax.block_until_ready(out)

    assert out.shape == (N, Cout, H // 2, W // 2), out.shape
    ref = impala_ref(x, params)
    err = float(jnp.max(jnp.abs(out - ref)))
    assert jnp.allclose(out, ref, atol=1e-3, rtol=1e-3), f"max abs err {err}"

    print("KERNEL_OK")
</pallas_src>

<mosaic_0001>
module attributes {stable_mosaic.version = 11 : i64} {
  func.func @_conv_mish_pool_kernel(%arg0: i32, %arg1: memref<1x18x18x4xf32, #tpu.memory_space<vmem>>, %arg2: memref<36x8xf32, #tpu.memory_space<vmem>>, %arg3: memref<1x8xf32, #tpu.memory_space<vmem>>, %arg4: memref<1x8x16x8xf32, #tpu.memory_space<vmem>>, %arg5: memref<256x36xf32, #tpu.memory_space<vmem>>, %arg6: memref<18x18x8xf32, #tpu.memory_space<vmem>>) attributes {dimension_semantics = [#tpu.dimension_semantics<parallel>], iteration_bounds = array<i64: 2>, scalar_prefetch = 0 : i64, scratch_operands = 2 : i64, tpu.core_type = #tpu.core_type<tc>, window_params = [{transform_indices = @transform_0, window_bounds = array<i64: 1, 18, 18, 4>}, {pipeline_mode = #tpu.pipeline_mode<synchronous>, transform_indices = @transform_1, window_bounds = array<i64: 36, 8>}, {pipeline_mode = #tpu.pipeline_mode<synchronous>, transform_indices = @transform_2, window_bounds = array<i64: 1, 8>}, {transform_indices = @transform_3, window_bounds = array<i64: 1, 8, 16, 8>}]} {
    %c0 = arith.constant 0 : index
    %c0_0 = arith.constant 0 : index
    %c0_1 = arith.constant 0 : index
    %c0_2 = arith.constant 0 : index
    %0 = vector.load %arg1[%c0, %c0_0, %c0_1, %c0_2] : memref<1x18x18x4xf32, #tpu.memory_space<vmem>>, vector<1x16x16x4xf32>
    %1 = vector.shape_cast %0 : vector<1x16x16x4xf32> to vector<16x16x4xf32>
    %2 = vector.shape_cast %1 : vector<16x16x4xf32> to vector<256x4xf32>
    %c0_3 = arith.constant 0 : index
    %c0_4 = arith.constant 0 : index
    %3 = vector.load %arg5[%c0_3, %c0_4] : memref<256x36xf32, #tpu.memory_space<vmem>>, vector<256x4xf32>
    tpu.vector_store %arg5[%c0_3, %c0_4], %2 {strides = array<i32>} : memref<256x36xf32, #tpu.memory_space<vmem>>, vector<256x4xf32>,
    %c0_5 = arith.constant 0 : index
    %c0_6 = arith.constant 0 : index
    %c1 = arith.constant 1 : index
    %c0_7 = arith.constant 0 : index
    %4 = vector.load %arg1[%c0_5, %c0_6, %c1, %c0_7] : memref<1x18x18x4xf32, #tpu.memory_space<vmem>>, vector<1x16x16x4xf32>
    %5 = vector.shape_cast %4 : vector<1x16x16x4xf32> to vector<16x16x4xf32>
    %6 = vector.shape_cast %5 : vector<16x16x4xf32> to vector<256x4xf32>
    %c0_8 = arith.constant 0 : index
    %c4 = arith.constant 4 : index
    %7 = vector.load %arg5[%c0_8, %c4] : memref<256x36xf32, #tpu.memory_space<vmem>>, vector<256x4xf32>
    tpu.vector_store %arg5[%c0_8, %c4], %6 {strides = array<i32>} : memref<256x36xf32, #tpu.memory_space<vmem>>, vector<256x4xf32>,
    %c0_9 = arith.constant 0 : index
    %c0_10 = arith.constant 0 : index
    %c2 = arith.constant 2 : index
    %c0_11 = arith.constant 0 : index
    %8 = vector.load %arg1[%c0_9, %c0_10, %c2, %c0_11] : memref<1x18x18x4xf32, #tpu.memory_space<vmem>>, vector<1x16x16x4xf32>
    %9 = vector.shape_cast %8 : vector<1x16x16x4xf32> to vector<16x16x4xf32>
    %10 = vector.shape_cast %9 : vector<16x16x4xf32> to vector<256x4xf32>
    %c0_12 = arith.constant 0 : index
    %c8 = arith.constant 8 : index
    %11 = vector.load %arg5[%c0_12, %c8] : memref<256x36xf32, #tpu.memory_space<vmem>>, vector<256x4xf32>
    tpu.vector_store %arg5[%c0_12, %c8], %10 {strides = array<i32>} : memref<256x36xf32, #tpu.memory_space<vmem>>, vector<256x4xf32>,
    %c0_13 = arith.constant 0 : index
    %c1_14 = arith.constant 1 : index
    %c0_15 = arith.constant 0 : index
    %c0_16 = arith.constant 0 : index
    %12 = vector.load %arg1[%c0_13, %c1_14, %c0_15, %c0_16] : memref<1x18x18x4xf32, #tpu.memory_space<vmem>>, vector<1x16x16x4xf32>
    %13 = vector.shape_cast %12 : vector<1x16x16x4xf32> to vector<16x16x4xf32>
    %14 = vector.shape_cast %13 : vector<16x16x4xf32> to vector<256x4xf32>
    %c0_17 = arith.constant 0 : index
    %c12 = arith.constant 12 : index
    %15 = vector.load %arg5[%c0_17, %c12] : memref<256x36xf32, #tpu.memory_space<vmem>>, vector<256x4xf32>
    tpu.vector_store %arg5[%c0_17, %c12], %14 {strides = array<i32>} : memref<256x36xf32, #tpu.memory_space<vmem>>, vector<256x4xf32>,
    %c0_18 = arith.constant 0 : index
    %c1_19 = arith.constant 1 : index
    %c1_20 = arith.constant 1 : index
    %c0_21 = arith.constant 0 : index
    %16 = vector.load %arg1[%c0_18, %c1_19, %c1_20, %c0_21] : memref<1x18x18x4xf32, #tpu.memory_space<vmem>>, vector<1x16x16x4xf32>
    %17 = vector.shape_cast %16 : vector<1x16x16x4xf32> to vector<16x16x4xf32>
    %18 = vector.shape_cast %17 : vector<16x16x4xf32> to vector<256x4xf32>
    %c0_22 = arith.constant 0 : index
    %c16 = arith.constant 16 : index
    %19 = vector.load %arg5[%c0_22, %c16] : memref<256x36xf32, #tpu.memory_space<vmem>>, vector<256x4xf32>
    tpu.vector_store %arg5[%c0_22, %c16], %18 {strides = array<i32>} : memref<256x36xf32, #tpu.memory_space<vmem>>, vector<256x4xf32>,
    %c0_23 = arith.constant 0 : index
    %c1_24 = arith.constant 1 : index
    %c2_25 = arith.constant 2 : index
    %c0_26 = arith.constant 0 : index
    %20 = vector.load %arg1[%c0_23, %c1_24, %c2_25, %c0_26] : memref<1x18x18x4xf32, #tpu.memory_space<vmem>>, vector<1x16x16x4xf32>
    %21 = vector.shape_cast %20 : vector<1x16x16x4xf32> to vector<16x16x4xf32>
    %22 = vector.shape_cast %21 : vector<16x16x4xf32> to vector<256x4xf32>
    %c0_27 = arith.constant 0 : index
    %c20 = arith.constant 20 : index
    %23 = vector.load %arg5[%c0_27, %c20] : memref<256x36xf32, #tpu.memory_space<vmem>>, vector<256x4xf32>
    tpu.vector_store %arg5[%c0_27, %c20], %22 {strides = array<i32>} : memref<256x36xf32, #tpu.memory_space<vmem>>, vector<256x4xf32>,
    %c0_28 = arith.constant 0 : index
    %c2_29 = arith.constant 2 : index
    %c0_30 = arith.constant 0 : index
    %c0_31 = arith.constant 0 : index
    %24 = vector.load %arg1[%c0_28, %c2_29, %c0_30, %c0_31] : memref<1x18x18x4xf32, #tpu.memory_space<vmem>>, vector<1x16x16x4xf32>
    %25 = vector.shape_cast %24 : vector<1x16x16x4xf32> to vector<16x16x4xf32>
    %26 = vector.shape_cast %25 : vector<16x16x4xf32> to vector<256x4xf32>
    %c0_32 = arith.constant 0 : index
    %c24 = arith.constant 24 : index
    %27 = vector.load %arg5[%c0_32, %c24] : memref<256x36xf32, #tpu.memory_space<vmem>>, vector<256x4xf32>
    tpu.vector_store %arg5[%c0_32, %c24], %26 {strides = array<i32>} : memref<256x36xf32, #tpu.memory_space<vmem>>, vector<256x4xf32>,
    %c0_33 = arith.constant 0 : index
    %c2_34 = arith.constant 2 : index
    %c1_35 = arith.constant 1 : index
    %c0_36 = arith.constant 0 : index
    %28 = vector.load %arg1[%c0_33, %c2_34, %c1_35, %c0_36] : memref<1x18x18x4xf32, #tpu.memory_space<vmem>>, vector<1x16x16x4xf32>
    %29 = vector.shape_cast %28 : vector<1x16x16x4xf32> to vector<16x16x4xf32>
    %30 = vector.shape_cast %29 : vector<16x16x4xf32> to vector<256x4xf32>
    %c0_37 = arith.constant 0 : index
    %c28 = arith.constant 28 : index
    %31 = vector.load %arg5[%c0_37, %c28] : memref<256x36xf32, #tpu.memory_space<vmem>>, vector<256x4xf32>
    tpu.vector_store %arg5[%c0_37, %c28], %30 {strides = array<i32>} : memref<256x36xf32, #tpu.memory_space<vmem>>, vector<256x4xf32>,
    %c0_38 = arith.constant 0 : index
    %c2_39 = arith.constant 2 : index
    %c2_40 = arith.constant 2 : index
    %c0_41 = arith.constant 0 : index
    %32 = vector.load %arg1[%c0_38, %c2_39, %c2_40, %c0_41] : memref<1x18x18x4xf32, #tpu.memory_space<vmem>>, vector<1x16x16x4xf32>
    %33 = vector.shape_cast %32 : vector<1x16x16x4xf32> to vector<16x16x4xf32>
    %34 = vector.shape_cast %33 : vector<16x16x4xf32> to vector<256x4xf32>
    %c0_42 = arith.constant 0 : index
    %c32 = arith.constant 32 : index
    %35 = vector.load %arg5[%c0_42, %c32] : memref<256x36xf32, #tpu.memory_space<vmem>>, vector<256x4xf32>
    tpu.vector_store %arg5[%c0_42, %c32], %34 {strides = array<i32>} : memref<256x36xf32, #tpu.memory_space<vmem>>, vector<256x4xf32>,
    %c0_43 = arith.constant 0 : index
    %c0_44 = arith.constant 0 : index
    %36 = vector.load %arg5[%c0_43, %c0_44] : memref<256x36xf32, #tpu.memory_space<vmem>>, vector<256x36xf32>
    %c0_45 = arith.constant 0 : index
    %c0_46 = arith.constant 0 : index
    %37 = vector.load %arg2[%c0_45, %c0_46] : memref<36x8xf32, #tpu.memory_space<vmem>>, vector<36x8xf32>
    %cst = arith.constant dense<0.000000e+00> : vector<256x8xf32>
    %38 = tpu.matmul %36, %37, %cst {dimension_numbers = #tpu.dot_dimension_numbers<[1], [0], [0], [1], [0, 0, 1, 1], [], []>} : vector<256x36xf32>, vector<36x8xf32>, vector<256x8xf32> -> vector<256x8xf32>
    %c0_47 = arith.constant 0 : index
    %c0_48 = arith.constant 0 : index
    %39 = vector.load %arg3[%c0_47, %c0_48] : memref<1x8xf32, #tpu.memory_space<vmem>>, vector<1x8xf32>
    %40 = vector.broadcast %39 : vector<1x8xf32> to vector<256x8xf32>
    %41 = arith.addf %38, %40 : vector<256x8xf32>
    %cst_49 = arith.constant 2.000000e+01 : f32
    %42 = vector.broadcast %cst_49 : f32 to vector<256x8xf32>
    %43 = arith.minimumf %41, %42 : vector<256x8xf32>
    %44 = math.exp %43 : vector<256x8xf32>
    %cst_50 = arith.constant 2.000000e+00 : f32
    %45 = vector.broadcast %cst_50 : f32 to vector<256x8xf32>
    %46 = arith.addf %44, %45 : vector<256x8xf32>
    %47 = arith.mulf %44, %46 : vector<256x8xf32>
    %cst_51 = arith.constant 2.000000e+00 : f32
    %48 = vector.broadcast %cst_51 : f32 to vector<256x8xf32>
    %49 = arith.addf %47, %48 : vector<256x8xf32>
    %50 = arith.divf %47, %49 : vector<256x8xf32>
    %51 = arith.mulf %41, %50 : vector<256x8xf32>
    %cst_52 = arith.constant 0xFF800000 : f32
    %52 = vector.broadcast %cst_52 : f32 to vector<18x18x8xf32>
    %c0_53 = arith.constant 0 : index
    %c0_54 = arith.constant 0 : index
    %c0_55 = arith.constant 0 : index
    %53 = vector.load %arg6[%c0_53, %c0_54, %c0_55] : memref<18x18x8xf32, #tpu.memory_space<vmem>>, vector<18x18x8xf32>
    tpu.vector_store %arg6[%c0_53, %c0_54, %c0_55], %52 {strides = array<i32>} : memref<18x18x8xf32, #tpu.memory_space<vmem>>, vector<18x18x8xf32>,
    %54 = vector.shape_cast %51 : vector<256x8xf32> to vector<16x16x8xf32>
    %c1_56 = arith.constant 1 : index
    %c1_57 = arith.constant 1 : index
    %c0_58 = arith.constant 0 : index
    %55 = vector.load %arg6[%c1_56, %c1_57, %c0_58] : memref<18x18x8xf32, #tpu.memory_space<vmem>>, vector<16x16x8xf32>
    tpu.vector_store %arg6[%c1_56, %c1_57, %c0_58], %54 {strides = array<i32>} : memref<18x18x8xf32, #tpu.memory_space<vmem>>, vector<16x16x8xf32>,
    %c0_59 = arith.constant 0 : index
    %c0_60 = arith.constant 0 : index
    %c0_61 = arith.constant 0 : index
    %56 = vector.load %arg6[%c0_59, %c0_60, %c0_61] : memref<18x18x8xf32, #tpu.memory_space<vmem>>, vector<16x16x8xf32>
    %c0_62 = arith.constant 0 : index
    %c1_63 = arith.constant 1 : index
    %c0_64 = arith.constant 0 : index
    %57 = vector.load %arg6[%c0_62, %c1_63, %c0_64] : memref<18x18x8xf32, #tpu.memory_space<vmem>>, vector<16x16x8xf32>
    %58 = arith.maximumf %56, %57 : vector<16x16x8xf32>
    %c0_65 = arith.constant 0 : index
    %c2_66 = arith.constant 2 : index
    %c0_67 = arith.constant 0 : index
    %59 = vector.load %arg6[%c0_65, %c2_66, %c0_67] : memref<18x18x8xf32, #tpu.memory_space<vmem>>, vector<16x16x8xf32>
    %60 = arith.maximumf %58, %59 : vector<16x16x8xf32>
    %c1_68 = arith.constant 1 : index
    %c0_69 = arith.constant 0 : index
    %c0_70 = arith.constant 0 : index
    %61 = vector.load %arg6[%c1_68, %c0_69, %c0_70] : memref<18x18x8xf32, #tpu.memory_space<vmem>>, vector<16x16x8xf32>
    %62 = arith.maximumf %60, %61 : vector<16x16x8xf32>
    %c1_71 = arith.constant 1 : index
    %c1_72 = arith.constant 1 : index
    %c0_73 = arith.constant 0 : index
    %63 = vector.load %arg6[%c1_71, %c1_72, %c0_73] : memref<18x18x8xf32, #tpu.memory_space<vmem>>, vector<16x16x8xf32>
    %64 = arith.maximumf %62, %63 : vector<16x16x8xf32>
    %c1_74 = arith.constant 1 : index
    %c2_75 = arith.constant 2 : index
    %c0_76 = arith.constant 0 : index
    %65 = vector.load %arg6[%c1_74, %c2_75, %c0_76] : memref<18x18x8xf32, #tpu.memory_space<vmem>>, vector<16x16x8xf32>
    %66 = arith.maximumf %64, %65 : vector<16x16x8xf32>
    %c2_77 = arith.constant 2 : index
    %c0_78 = arith.constant 0 : index
    %c0_79 = arith.constant 0 : index
    %67 = vector.load %arg6[%c2_77, %c0_78, %c0_79] : memref<18x18x8xf32, #tpu.memory_space<vmem>>, vector<16x16x8xf32>
    %68 = arith.maximumf %66, %67 : vector<16x16x8xf32>
    %c2_80 = arith.constant 2 : index
    %c1_81 = arith.constant 1 : index
    %c0_82 = arith.constant 0 : index
    %69 = vector.load %arg6[%c2_80, %c1_81, %c0_82] : memref<18x18x8xf32, #tpu.memory_space<vmem>>, vector<16x16x8xf32>
    %70 = arith.maximumf %68, %69 : vector<16x16x8xf32>
    %c2_83 = arith.constant 2 : index
    %c2_84 = arith.constant 2 : index
    %c0_85 = arith.constant 0 : index
    %71 = vector.load %arg6[%c2_83, %c2_84, %c0_85] : memref<18x18x8xf32, #tpu.memory_space<vmem>>, vector<16x16x8xf32>
    %72 = arith.maximumf %70, %71 : vector<16x16x8xf32>
    %73 = vector.shape_cast %72 : vector<16x16x8xf32> to vector<8x2x16x8xf32>
    %74 = vector.extract_strided_slice %73 {offsets = [0, 0, 0, 0], sizes = [8, 1, 16, 8], strides = [1, 1, 1, 1]} : vector<8x2x16x8xf32> to vector<8x1x16x8xf32>
    %75 = vector.shape_cast %74 : vector<8x1x16x8xf32> to vector<8x16x8xf32>
    %c0_86 = arith.constant 0 : index
    %c0_87 = arith.constant 0 : index
    %c0_88 = arith.constant 0 : index
    %c0_89 = arith.constant 0 : index
    %76 = vector.load %arg4[%c0_86, %c0_87, %c0_88, %c0_89] : memref<1x8x16x8xf32, #tpu.memory_space<vmem>>, vector<1x8x16x8xf32>
    %77 = vector.shape_cast %76 : vector<1x8x16x8xf32> to vector<8x16x8xf32>
    %78 = vector.shape_cast %75 : vector<8x16x8xf32> to vector<1x8x16x8xf32>
    tpu.vector_store %arg4[%c0_86, %c0_87, %c0_88, %c0_89], %78 {strides = array<i32>} : memref<1x8x16x8xf32, #tpu.memory_space<vmem>>, vector<1x8x16x8xf32>,
    return
  }
  func.func @transform_0(%arg0: i32) -> (i32, i32, i32, i32) {
    %c0_i32 = arith.constant 0 : i32
    %c0_i32_0 = arith.constant 0 : i32
    %c0_i32_1 = arith.constant 0 : i32
    %c0_i32_2 = arith.constant 0 : i32
    return %arg0, %c0_i32, %c0_i32_0, %c0_i32_1 : i32, i32, i32, i32
  }
  func.func @transform_1(%arg0: i32) -> (i32, i32) {
    %c0_i32 = arith.constant 0 : i32
    %c0_i32_0 = arith.constant 0 : i32
    %c0_i32_1 = arith.constant 0 : i32
    return %c0_i32, %c0_i32_0 : i32, i32
  }
  func.func @transform_2(%arg0: i32) -> (i32, i32) {
    %c0_i32 = arith.constant 0 : i32
    %c0_i32_0 = arith.constant 0 : i32
    %c0_i32_1 = arith.constant 0 : i32
    return %c0_i32, %c0_i32_0 : i32, i32
  }
  func.func @transform_3(%arg0: i32) -> (i32, i32, i32, i32) {
    %c0_i32 = arith.constant 0 : i32
    %c0_i32_0 = arith.constant 0 : i32
    %c0_i32_1 = arith.constant 0 : i32
    %c0_i32_2 = arith.constant 0 : i32
    return %arg0, %c0_i32, %c0_i32_0, %c0_i32_1 : i32, i32, i32, i32
  }
}

module attributes {stable_mosaic.version = 11 : i64} {
  func.func @_residual_block_kernel(%arg0: i32, %arg1: memref<1x10x10x8xf32, #tpu.memory_space<vmem>>, %arg2: memref<72x8xf32, #tpu.memory_space<vmem>>, %arg3: memref<1x8xf32, #tpu.memory_space<vmem>>, %arg4: memref<72x8xf32, #tpu.memory_space<vmem>>, %arg5: memref<1x8xf32, #tpu.memory_space<vmem>>, %arg6: memref<1x10x10x8xf32, #tpu.memory_space<vmem>>, %arg7: memref<64x72xf32, #tpu.memory_space<vmem>>, %arg8: memref<10x10x8xf32, #tpu.memory_space<vmem>>) attributes {dimension_semantics = [#tpu.dimension_semantics<parallel>], iteration_bounds = array<i64: 2>, scalar_prefetch = 0 : i64, scratch_operands = 2 : i64, tpu.core_type = #tpu.core_type<tc>, window_params = [{transform_indices = @transform_0, window_bounds = array<i64: 1, 10, 10, 8>}, {pipeline_mode = #tpu.pipeline_mode<synchronous>, transform_indices = @transform_1, window_bounds = array<i64: 72, 8>}, {pipeline_mode = #tpu.pipeline_mode<synchronous>, transform_indices = @transform_2, window_bounds = array<i64: 1, 8>}, {pipeline_mode = #tpu.pipeline_mode<synchronous>, transform_indices = @transform_3, window_bounds = array<i64: 72, 8>}, {pipeline_mode = #tpu.pipeline_mode<synchronous>, transform_indices = @transform_4, window_bounds = array<i64: 1, 8>}, {transform_indices = @transform_5, window_bounds = array<i64: 1, 10, 10, 8>}]} {
    %c0 = arith.constant 0 : index
    %c0_0 = arith.constant 0 : index
    %c0_1 = arith.constant 0 : index
    %c0_2 = arith.constant 0 : index
    %0 = vector.load %arg1[%c0, %c0_0, %c0_1, %c0_2] : memref<1x10x10x8xf32, #tpu.memory_space<vmem>>, vector<1x8x8x8xf32>
    %1 = vector.shape_cast %0 : vector<1x8x8x8xf32> to vector<8x8x8xf32>
    %2 = vector.shape_cast %1 : vector<8x8x8xf32> to vector<64x8xf32>
    %c0_3 = arith.constant 0 : index
    %c0_4 = arith.constant 0 : index
    %3 = vector.load %arg7[%c0_3, %c0_4] : memref<64x72xf32, #tpu.memory_space<vmem>>, vector<64x8xf32>
    tpu.vector_store %arg7[%c0_3, %c0_4], %2 {strides = array<i32>} : memref<64x72xf32, #tpu.memory_space<vmem>>, vector<64x8xf32>,
    %c0_5 = arith.constant 0 : index
    %c0_6 = arith.constant 0 : index
    %c1 = arith.constant 1 : index
    %c0_7 = arith.constant 0 : index
    %4 = vector.load %arg1[%c0_5, %c0_6, %c1, %c0_7] : memref<1x10x10x8xf32, #tpu.memory_space<vmem>>, vector<1x8x8x8xf32>
    %5 = vector.shape_cast %4 : vector<1x8x8x8xf32> to vector<8x8x8xf32>
    %6 = vector.shape_cast %5 : vector<8x8x8xf32> to vector<64x8xf32>
    %c0_8 = arith.constant 0 : index
    %c8 = arith.constant 8 : index
    %7 = vector.load %arg7[%c0_8, %c8] : memref<64x72xf32, #tpu.memory_space<vmem>>, vector<64x8xf32>
    tpu.vector_store %arg7[%c0_8, %c8], %6 {strides = array<i32>} : memref<64x72xf32, #tpu.memory_space<vmem>>, vector<64x8xf32>,
    %c0_9 = arith.constant 0 : index
    %c0_10 = arith.constant 0 : index
    %c2 = arith.constant 2 : index
    %c0_11 = arith.constant 0 : index
    %8 = vector.load %arg1[%c0_9, %c0_10, %c2, %c0_11] : memref<1x10x10x8xf32, #tpu.memory_space<vmem>>, vector<1x8x8x8xf32>
    %9 = vector.shape_cast %8 : vector<1x8x8x8xf32> to vector<8x8x8xf32>
    %10 = vector.shape_cast %9 : vector<8x8x8xf32> to vector<64x8xf32>
    %c0_12 = arith.constant 0 : index
    %c16 = arith.constant 16 : index
    %11 = vector.load %arg7[%c0_12, %c16] : memref<64x72xf32, #tpu.memory_space<vmem>>, vector<64x8xf32>
    tpu.vector_store %arg7[%c0_12, %c16], %10 {strides = array<i32>} : memref<64x72xf32, #tpu.memory_space<vmem>>, vector<64x8xf32>,
    %c0_13 = arith.constant 0 : index
    %c1_14 = arith.constant 1 : index
    %c0_15 = arith.constant 0 : index
    %c0_16 = arith.constant 0 : index
    %12 = vector.load %arg1[%c0_13, %c1_14, %c0_15, %c0_16] : memref<1x10x10x8xf32, #tpu.memory_space<vmem>>, vector<1x8x8x8xf32>
    %13 = vector.shape_cast %12 : vector<1x8x8x8xf32> to vector<8x8x8xf32>
    %14 = vector.shape_cast %13 : vector<8x8x8xf32> to vector<64x8xf32>
    %c0_17 = arith.constant 0 : index
    %c24 = arith.constant 24 : index
    %15 = vector.load %arg7[%c0_17, %c24] : memref<64x72xf32, #tpu.memory_space<vmem>>, vector<64x8xf32>
    tpu.vector_store %arg7[%c0_17, %c24], %14 {strides = array<i32>} : memref<64x72xf32, #tpu.memory_space<vmem>>, vector<64x8xf32>,
    %c0_18 = arith.constant 0 : index
    %c1_19 = arith.constant 1 : index
    %c1_20 = arith.constant 1 : index
    %c0_21 = arith.constant 0 : index
    %16 = vector.load %arg1[%c0_18, %c1_19, %c1_20, %c0_21] : memref<1x10x10x8xf32, #tpu.memory_space<vmem>>, vector<1x8x8x8xf32>
    %17 = vector.shape_cast %16 : vector<1x8x8x8xf32> to vector<8x8x8xf32>
    %18 = vector.shape_cast %17 : vector<8x8x8xf32> to vector<64x8xf32>
    %c0_22 = arith.constant 0 : index
    %c32 = arith.constant 32 : index
    %19 = vector.load %arg7[%c0_22, %c32] : memref<64x72xf32, #tpu.memory_space<vmem>>, vector<64x8xf32>
    tpu.vector_store %arg7[%c0_22, %c32], %18 {strides = array<i32>} : memref<64x72xf32, #tpu.memory_space<vmem>>, vector<64x8xf32>,
    %c0_23 = arith.constant 0 : index
    %c1_24 = arith.constant 1 : index
    %c2_25 = arith.constant 2 : index
    %c0_26 = arith.constant 0 : index
    %20 = vector.load %arg1[%c0_23, %c1_24, %c2_25, %c0_26] : memref<1x10x10x8xf32, #tpu.memory_space<vmem>>, vector<1x8x8x8xf32>
    %21 = vector.shape_cast %20 : vector<1x8x8x8xf32> to vector<8x8x8xf32>
    %22 = vector.shape_cast %21 : vector<8x8x8xf32> to vector<64x8xf32>
    %c0_27 = arith.constant 0 : index
    %c40 = arith.constant 40 : index
    %23 = vector.load %arg7[%c0_27, %c40] : memref<64x72xf32, #tpu.memory_space<vmem>>, vector<64x8xf32>
    tpu.vector_store %arg7[%c0_27, %c40], %22 {strides = array<i32>} : memref<64x72xf32, #tpu.memory_space<vmem>>, vector<64x8xf32>,
    %c0_28 = arith.constant 0 : index
    %c2_29 = arith.constant 2 : index
    %c0_30 = arith.constant 0 : index
    %c0_31 = arith.constant 0 : index
    %24 = vector.load %arg1[%c0_28, %c2_29, %c0_30, %c0_31] : memref<1x10x10x8xf32, #tpu.memory_space<vmem>>, vector<1x8x8x8xf32>
    %25 = vector.shape_cast %24 : vector<1x8x8x8xf32> to vector<8x8x8xf32>
    %26 = vector.shape_cast %25 : vector<8x8x8xf32> to vector<64x8xf32>
    %c0_32 = arith.constant 0 : index
    %c48 = arith.constant 48 : index
    %27 = vector.load %arg7[%c0_32, %c48] : memref<64x72xf32, #tpu.memory_space<vmem>>, vector<64x8xf32>
    tpu.vector_store %arg7[%c0_32, %c48], %26 {strides = array<i32>} : memref<64x72xf32, #tpu.memory_space<vmem>>, vector<64x8xf32>,
    %c0_33 = arith.constant 0 : index
    %c2_34 = arith.constant 2 : index
    %c1_35 = arith.constant 1 : index
    %c0_36 = arith.constant 0 : index
    %28 = vector.load %arg1[%c0_33, %c2_34, %c1_35, %c0_36] : memref<1x10x10x8xf32, #tpu.memory_space<vmem>>, vector<1x8x8x8xf32>
    %29 = vector.shape_cast %28 : vector<1x8x8x8xf32> to vector<8x8x8xf32>
    %30 = vector.shape_cast %29 : vector<8x8x8xf32> to vector<64x8xf32>
    %c0_37 = arith.constant 0 : index
    %c56 = arith.constant 56 : index
    %31 = vector.load %arg7[%c0_37, %c56] : memref<64x72xf32, #tpu.memory_space<vmem>>, vector<64x8xf32>
    tpu.vector_store %arg7[%c0_37, %c56], %30 {strides = array<i32>} : memref<64x72xf32, #tpu.memory_space<vmem>>, vector<64x8xf32>,
    %c0_38 = arith.constant 0 : index
    %c2_39 = arith.constant 2 : index
    %c2_40 = arith.constant 2 : index
    %c0_41 = arith.constant 0 : index
    %32 = vector.load %arg1[%c0_38, %c2_39, %c2_40, %c0_41] : memref<1x10x10x8xf32, #tpu.memory_space<vmem>>, vector<1x8x8x8xf32>
    %33 = vector.shape_cast %32 : vector<1x8x8x8xf32> to vector<8x8x8xf32>
    %34 = vector.shape_cast %33 : vector<8x8x8xf32> to vector<64x8xf32>
    %c0_42 = arith.constant 0 : index
    %c64 = arith.constant 64 : index
    %35 = vector.load %arg7[%c0_42, %c64] : memref<64x72xf32, #tpu.memory_space<vmem>>, vector<64x8xf32>
    tpu.vector_store %arg7[%c0_42, %c64], %34 {strides = array<i32>} : memref<64x72xf32, #tpu.memory_space<vmem>>, vector<64x8xf32>,
    %c0_43 = arith.constant 0 : index
    %c0_44 = arith.constant 0 : index
    %36 = vector.load %arg7[%c0_43, %c0_44] : memref<64x72xf32, #tpu.memory_space<vmem>>, vector<64x72xf32>
    %c0_45 = arith.constant 0 : index
    %c0_46 = arith.constant 0 : index
    %37 = vector.load %arg2[%c0_45, %c0_46] : memref<72x8xf32, #tpu.memory_space<vmem>>, vector<72x8xf32>
    %cst = arith.constant dense<0.000000e+00> : vector<64x8xf32>
    %38 = tpu.matmul %36, %37, %cst {dimension_numbers = #tpu.dot_dimension_numbers<[1], [0], [0], [1], [0, 0, 1, 1], [], []>} : vector<64x72xf32>, vector<72x8xf32>, vector<64x8xf32> -> vector<64x8xf32>
    %c0_47 = arith.constant 0 : index
    %c0_48 = arith.constant 0 : index
    %39 = vector.load %arg3[%c0_47, %c0_48] : memref<1x8xf32, #tpu.memory_space<vmem>>, vector<1x8xf32>
    %40 = vector.broadcast %39 : vector<1x8xf32> to vector<64x8xf32>
    %41 = arith.addf %38, %40 : vector<64x8xf32>
    %cst_49 = arith.constant 2.000000e+01 : f32
    %42 = vector.broadcast %cst_49 : f32 to vector<64x8xf32>
    %43 = arith.minimumf %41, %42 : vector<64x8xf32>
    %44 = math.exp %43 : vector<64x8xf32>
    %cst_50 = arith.constant 2.000000e+00 : f32
    %45 = vector.broadcast %cst_50 : f32 to vector<64x8xf32>
    %46 = arith.addf %44, %45 : vector<64x8xf32>
    %47 = arith.mulf %44, %46 : vector<64x8xf32>
    %cst_51 = arith.constant 2.000000e+00 : f32
    %48 = vector.broadcast %cst_51 : f32 to vector<64x8xf32>
    %49 = arith.addf %47, %48 : vector<64x8xf32>
    %50 = arith.divf %47, %49 : vector<64x8xf32>
    %51 = arith.mulf %41, %50 : vector<64x8xf32>
    %cst_52 = arith.constant 0.000000e+00 : f32
    %52 = vector.broadcast %cst_52 : f32 to vector<10x10x8xf32>
    %c0_53 = arith.constant 0 : index
    %c0_54 = arith.constant 0 : index
    %c0_55 = arith.constant 0 : index
    %53 = vector.load %arg8[%c0_53, %c0_54, %c0_55] : memref<10x10x8xf32, #tpu.memory_space<vmem>>, vector<10x10x8xf32>
    tpu.vector_store %arg8[%c0_53, %c0_54, %c0_55], %52 {strides = array<i32>} : memref<10x10x8xf32, #tpu.memory_space<vmem>>, vector<10x10x8xf32>,
    %54 = vector.shape_cast %51 : vector<64x8xf32> to vector<8x8x8xf32>
    %c1_56 = arith.constant 1 : index
    %c1_57 = arith.constant 1 : index
    %c0_58 = arith.constant 0 : index
    %55 = vector.load %arg8[%c1_56, %c1_57, %c0_58] : memref<10x10x8xf32, #tpu.memory_space<vmem>>, vector<8x8x8xf32>
    tpu.vector_store %arg8[%c1_56, %c1_57, %c0_58], %54 {strides = array<i32>} : memref<10x10x8xf32, #tpu.memory_space<vmem>>, vector<8x8x8xf32>,
    %c0_59 = arith.constant 0 : index
    %c0_60 = arith.constant 0 : index
    %c0_61 = arith.constant 0 : index
    %56 = vector.load %arg8[%c0_59, %c0_60, %c0_61] : memref<10x10x8xf32, #tpu.memory_space<vmem>>, vector<8x8x8xf32>
    %57 = vector.shape_cast %56 : vector<8x8x8xf32> to vector<64x8xf32>
    %c0_62 = arith.constant 0 : index
    %c0_63 = arith.constant 0 : index
    %58 = vector.load %arg7[%c0_62, %c0_63] : memref<64x72xf32, #tpu.memory_space<vmem>>, vector<64x8xf32>
    tpu.vector_store %arg7[%c0_62, %c0_63], %57 {strides = array<i32>} : memref<64x72xf32, #tpu.memory_space<vmem>>, vector<64x8xf32>,
    %c0_64 = arith.constant 0 : index
    %c1_65 = arith.constant 1 : index
    %c0_66 = arith.constant 0 : index
    %59 = vector.load %arg8[%c0_64, %c1_65, %c0_66] : memref<10x10x8xf32, #tpu.memory_space<vmem>>, vector<8x8x8xf32>
    %60 = vector.shape_cast %59 : vector<8x8x8xf32> to vector<64x8xf32>
    %c0_67 = arith.constant 0 : index
    %c8_68 = arith.constant 8 : index
    %61 = vector.load %arg7[%c0_67, %c8_68] : memref<64x72xf32, #tpu.memory_space<vmem>>, vector<64x8xf32>
    tpu.vector_store %arg7[%c0_67, %c8_68], %60 {strides = array<i32>} : memref<64x72xf32, #tpu.memory_space<vmem>>, vector<64x8xf32>,
    %c0_69 = arith.constant 0 : index
    %c2_70 = arith.constant 2 : index
    %c0_71 = arith.constant 0 : index
    %62 = vector.load %arg8[%c0_69, %c2_70, %c0_71] : memref<10x10x8xf32, #tpu.memory_space<vmem>>, vector<8x8x8xf32>
    %63 = vector.shape_cast %62 : vector<8x8x8xf32> to vector<64x8xf32>
    %c0_72 = arith.constant 0 : index
    %c16_73 = arith.constant 16 : index
    %64 = vector.load %arg7[%c0_72, %c16_73] : memref<64x72xf32, #tpu.memory_space<vmem>>, vector<64x8xf32>
    tpu.vector_store %arg7[%c0_72, %c16_73], %63 {strides = array<i32>} : memref<64x72xf32, #tpu.memory_space<vmem>>, vector<64x8xf32>,
    %c1_74 = arith.constant 1 : index
    %c0_75 = arith.constant 0 : index
    %c0_76 = arith.constant 0 : index
    %65 = vector.load %arg8[%c1_74, %c0_75, %c0_76] : memref<10x10x8xf32, #tpu.memory_space<vmem>>, vector<8x8x8xf32>
    %66 = vector.shape_cast %65 : vector<8x8x8xf32> to vector<64x8xf32>
    %c0_77 = arith.constant 0 : index
    %c24_78 = arith.constant 24 : index
    %67 = vector.load %arg7[%c0_77, %c24_78] : memref<64x72xf32, #tpu.memory_space<vmem>>, vector<64x8xf32>
    tpu.vector_store %arg7[%c0_77, %c24_78], %66 {strides = array<i32>} : memref<64x72xf32, #tpu.memory_space<vmem>>, vector<64x8xf32>,
    %c1_79 = arith.constant 1 : index
    %c1_80 = arith.constant 1 : index
    %c0_81 = arith.constant 0 : index
    %68 = vector.load %arg8[%c1_79, %c1_80, %c0_81] : memref<10x10x8xf32, #tpu.memory_space<vmem>>, vector<8x8x8xf32>
    %69 = vector.shape_cast %68 : vector<8x8x8xf32> to vector<64x8xf32>
    %c0_82 = arith.constant 0 : index
    %c32_83 = arith.constant 32 : index
    %70 = vector.load %arg7[%c0_82, %c32_83] : memref<64x72xf32, #tpu.memory_space<vmem>>, vector<64x8xf32>
    tpu.vector_store %arg7[%c0_82, %c32_83], %69 {strides = array<i32>} : memref<64x72xf32, #tpu.memory_space<vmem>>, vector<64x8xf32>,
    %c1_84 = arith.constant 1 : index
    %c2_85 = arith.constant 2 : index
    %c0_86 = arith.constant 0 : index
    %71 = vector.load %arg8[%c1_84, %c2_85, %c0_86] : memref<10x10x8xf32, #tpu.memory_space<vmem>>, vector<8x8x8xf32>
    %72 = vector.shape_cast %71 : vector<8x8x8xf32> to vector<64x8xf32>
    %c0_87 = arith.constant 0 : index
    %c40_88 = arith.constant 40 : index
    %73 = vector.load %arg7[%c0_87, %c40_88] : memref<64x72xf32, #tpu.memory_space<vmem>>, vector<64x8xf32>
    tpu.vector_store %arg7[%c0_87, %c40_88], %72 {strides = array<i32>} : memref<64x72xf32, #tpu.memory_space<vmem>>, vector<64x8xf32>,
    %c2_89 = arith.constant 2 : index
    %c0_90 = arith.constant 0 : index
    %c0_91 = arith.constant 0 : index
    %74 = vector.load %arg8[%c2_89, %c0_90, %c0_91] : memref<10x10x8xf32, #tpu.memory_space<vmem>>, vector<8x8x8xf32>
    %75 = vector.shape_cast %74 : vector<8x8x8xf32> to vector<64x8xf32>
    %c0_92 = arith.constant 0 : index
    %c48_93 = arith.constant 48 : index
    %76 = vector.load %arg7[%c0_92, %c48_93] : memref<64x72xf32, #tpu.memory_space<vmem>>, vector<64x8xf32>
    tpu.vector_store %arg7[%c0_92, %c48_93], %75 {strides = array<i32>} : memref<64x72xf32, #tpu.memory_space<vmem>>, vector<64x8xf32>,
    %c2_94 = arith.constant 2 : index
    %c1_95 = arith.constant 1 : index
    %c0_96 = arith.constant 0 : index
    %77 = vector.load %arg8[%c2_94, %c1_95, %c0_96] : memref<10x10x8xf32, #tpu.memory_space<vmem>>, vector<8x8x8xf32>
    %78 = vector.shape_cast %77 : vector<8x8x8xf32> to vector<64x8xf32>
    %c0_97 = arith.constant 0 : index
    %c56_98 = arith.constant 56 : index
    %79 = vector.load %arg7[%c0_97, %c56_98] : memref<64x72xf32, #tpu.memory_space<vmem>>, vector<64x8xf32>
    tpu.vector_store %arg7[%c0_97, %c56_98], %78 {strides = array<i32>} : memref<64x72xf32, #tpu.memory_space<vmem>>, vector<64x8xf32>,
    %c2_99 = arith.constant 2 : index
    %c2_100 = arith.constant 2 : index
    %c0_101 = arith.constant 0 : index
    %80 = vector.load %arg8[%c2_99, %c2_100, %c0_101] : memref<10x10x8xf32, #tpu.memory_space<vmem>>, vector<8x8x8xf32>
    %81 = vector.shape_cast %80 : vector<8x8x8xf32> to vector<64x8xf32>
    %c0_102 = arith.constant 0 : index
    %c64_103 = arith.constant 64 : index
    %82 = vector.load %arg7[%c0_102, %c64_103] : memref<64x72xf32, #tpu.memory_space<vmem>>, vector<64x8xf32>
    tpu.vector_store %arg7[%c0_102, %c64_103], %81 {strides = array<i32>} : memref<64x72xf32, #tpu.memory_space<vmem>>, vector<64x8xf32>,
    %c0_104 = arith.constant 0 : index
    %c0_105 = arith.constant 0 : index
    %83 = vector.load %arg7[%c0_104, %c0_105] : memref<64x72xf32, #tpu.memory_space<vmem>>, vector<64x72xf32>
    %c0_106 = arith.constant 0 : index
    %c0_107 = arith.constant 0 : index
    %84 = vector.load %arg4[%c0_106, %c0_107] : memref<72x8xf32, #tpu.memory_space<vmem>>, vector<72x8xf32>
    %cst_108 = arith.constant dense<0.000000e+00> : vector<64x8xf32>
    %85 = tpu.matmul %83, %84, %cst_108 {dimension_numbers = #tpu.dot_dimension_numbers<[1], [0], [0], [1], [0, 0, 1, 1], [], []>} : vector<64x72xf32>, vector<72x8xf32>, vector<64x8xf32> -> vector<64x8xf32>
    %c0_109 = arith.constant 0 : index
    %c0_110 = arith.constant 0 : index
    %86 = vector.load %arg5[%c0_109, %c0_110] : memref<1x8xf32, #tpu.memory_space<vmem>>, vector<1x8xf32>
    %87 = vector.broadcast %86 : vector<1x8xf32> to vector<64x8xf32>
    %88 = arith.addf %85, %87 : vector<64x8xf32>
    %cst_111 = arith.constant 2.000000e+01 : f32
    %89 = vector.broadcast %cst_111 : f32 to vector<64x8xf32>
    %90 = arith.minimumf %88, %89 : vector<64x8xf32>
    %91 = math.exp %90 : vector<64x8xf32>
    %cst_112 = arith.constant 2.000000e+00 : f32
    %92 = vector.broadcast %cst_112 : f32 to vector<64x8xf32>
    %93 = arith.addf %91, %92 : vector<64x8xf32>
    %94 = arith.mulf %91, %93 : vector<64x8xf32>
    %cst_113 = arith.constant 2.000000e+00 : f32
    %95 = vector.broadcast %cst_113 : f32 to vector<64x8xf32>
    %96 = arith.addf %94, %95 : vector<64x8xf32>
    %97 = arith.divf %94, %96 : vector<64x8xf32>
    %98 = arith.mulf %88, %97 : vector<64x8xf32>
    %c0_114 = arith.constant 0 : index
    %c1_115 = arith.constant 1 : index
    %c1_116 = arith.constant 1 : index
    %c0_117 = arith.constant 0 : index
    %99 = vector.load %arg1[%c0_114, %c1_115, %c1_116, %c0_117] : memref<1x10x10x8xf32, #tpu.memory_space<vmem>>, vector<1x8x8x8xf32>
    %100 = vector.shape_cast %99 : vector<1x8x8x8xf32> to vector<8x8x8xf32>
    %101 = vector.shape_cast %100 : vector<8x8x8xf32> to vector<64x8xf32>
    %102 = arith.addf %98, %101 : vector<64x8xf32>
    %cst_118 = arith.constant 0.000000e+00 : f32
    %103 = vector.broadcast %cst_118 : f32 to vector<10x10x8xf32>
    %c0_119 = arith.constant 0 : index
    %c0_120 = arith.constant 0 : index
    %c0_121 = arith.constant 0 : index
    %c0_122 = arith.constant 0 : index
    %104 = vector.load %arg6[%c0_119, %c0_120, %c0_121, %c0_122] : memref<1x10x10x8xf32, #tpu.memory_space<vmem>>, vector<1x10x10x8xf32>
    %105 = vector.shape_cast %104 : vector<1x10x10x8xf32> to vector<10x10x8xf32>
    %106 = vector.shape_cast %103 : vector<10x10x8xf32> to vector<1x10x10x8xf32>
    tpu.vector_store %arg6[%c0_119, %c0_120, %c0_121, %c0_122], %106 {strides = array<i32>} : memref<1x10x10x8xf32, #tpu.memory_space<vmem>>, vector<1x10x10x8xf32>,
    %107 = vector.shape_cast %102 : vector<64x8xf32> to vector<8x8x8xf32>
    %c0_123 = arith.constant 0 : index
    %c1_124 = arith.constant 1 : index
    %c1_125 = arith.constant 1 : index
    %c0_126 = arith.constant 0 : index
    %108 = vector.load %arg6[%c0_123, %c1_124, %c1_125, %c0_126] : memref<1x10x10x8xf32, #tpu.memory_space<vmem>>, vector<1x8x8x8xf32>
    %109 = vector.shape_cast %108 : vector<1x8x8x8xf32> to vector<8x8x8xf32>
    %110 = vector.shape_cast %107 : vector<8x8x8xf32> to vector<1x8x8x8xf32>
    tpu.vector_store %arg6[%c0_123, %c1_124, %c1_125, %c0_126], %110 {strides = array<i32>} : memref<1x10x10x8xf32, #tpu.memory_space<vmem>>, vector<1x8x8x8xf32>,
    return
  }
  func.func @transform_0(%arg0: i32) -> (i32, i32, i32, i32) {
    %c0_i32 = arith.constant 0 : i32
    %c0_i32_0 = arith.constant 0 : i32
    %c0_i32_1 = arith.constant 0 : i32
    %c0_i32_2 = arith.constant 0 : i32
    return %arg0, %c0_i32, %c0_i32_0, %c0_i32_1 : i32, i32, i32, i32
  }
  func.func @transform_1(%arg0: i32) -> (i32, i32) {
    %c0_i32 = arith.constant 0 : i32
    %c0_i32_0 = arith.constant 0 : i32
    %c0_i32_1 = arith.constant 0 : i32
    return %c0_i32, %c0_i32_0 : i32, i32
  }
  func.func @transform_2(%arg0: i32) -> (i32, i32) {
    %c0_i32 = arith.constant 0 : i32
    %c0_i32_0 = arith.constant 0 : i32
    %c0_i32_1 = arith.constant 0 : i32
    return %c0_i32, %c0_i32_0 : i32, i32
  }
  func.func @transform_3(%arg0: i32) -> (i32, i32) {
    %c0_i32 = arith.constant 0 : i32
    %c0_i32_0 = arith.constant 0 : i32
    %c0_i32_1 = arith.constant 0 : i32
    return %c0_i32, %c0_i32_0 : i32, i32
  }
  func.func @transform_4(%arg0: i32) -> (i32, i32) {
    %c0_i32 = arith.constant 0 : i32
    %c0_i32_0 = arith.constant 0 : i32
    %c0_i32_1 = arith.constant 0 : i32
    return %c0_i32, %c0_i32_0 : i32, i32
  }
  func.func @transform_5(%arg0: i32) -> (i32, i32, i32, i32) {
    %c0_i32 = arith.constant 0 : i32
    %c0_i32_0 = arith.constant 0 : i32
    %c0_i32_1 = arith.constant 0 : i32
    %c0_i32_2 = arith.constant 0 : i32
    return %arg0, %c0_i32, %c0_i32_0, %c0_i32_1 : i32, i32, i32, i32
  }
}

</mosaic_0001>

<bundles_post_ra>
// kernel: impala_block.4
= control target key start
LH: loop header
LB: loop body
LE: loop exit
PB: predicated region body
PF: predicated region fallthrough
CT: control target
= control target key end

     0   :  { %s1964_s18 = smov 0   ;;  %s2569_s0 = inlined_call_operand.vmem [shape: f32[2,10,10,8], index: 0, kind: input, shape index: {}]   ;;  %s2570_s1 = inlined_call_operand.vmem [shape: f32[72,8], index: 1, kind: input, shape index: {}]   ;;  %s2571_s2 = inlined_call_operand.vmem [shape: f32[1,8], index: 2, kind: input, shape index: {}]   ;;  %s2572_s3 = inlined_call_operand.vmem [shape: f32[72,8], index: 3, kind: input, shape index: {}]   ;;  %s2573_s4 = inlined_call_operand.vmem [shape: f32[1,8], index: 4, kind: input, shape index: {}]   ;;  %s2574_s5 = inlined_call_operand.vmem [shape: f32[2,10,10,8], index: 5, kind: output, shape index: {}]  }
   0x1 LB: > { %s1618_s19 = sadd.s32 4294967295, %s1923_s18   ;;  %p1622_p0 = scmp.ge.s32.totalorder %s1923_s18, 1  ;;  %s1923_s18 = sphi %s1964_s18, %s15_s18  }
   0x2   : > { %p187_p1 = scmp.lt.s32.totalorder %s1923_s18, 3 }
   0x4   : > { %p188_p2 = pnand %p1622_p0, %p187_p1 }
   0x5   : > { %p215_p3 = scmp.lt.s32.totalorder (!%p188_p2), %s1618_s19, 1  ;;  %s1925_s24 = smov (!%p188_p2), 16   ;;  %vm233_vm0 = vcmask (!%p188_p2), 64512   ;;  %v644_v15 = vld [vmem:[%s2570_s1] sm:$0xff] (!%p188_p2)  ;;  %v645_v16 = vld [vmem:[%s2570_s1 + $0x8] sm:$0xff] (!%p188_p2)  ;;  %v646_v19 = vld [vmem:[%s2570_s1 + $0x10] sm:$0xff] (!%p188_p2) }
   0x6   : > { %191 = sbr.rel (%p188_p2) target bundleno = 958 (0x3be), region = 40  ;;  %s1926_s25 = smov (!%p188_p2), 8   ;;  %v1803_v17 = vpack.c.bf16 (!%p188_p2), %v645_v16, %v644_v15  ;;  %v647_v20 = vld [vmem:[%s2570_s1 + $0x18] sm:$0xff] (!%p188_p2)  ;;  %v648_v22 = vld [vmem:[%s2570_s1 + $0x20] sm:$0xff] (!%p188_p2)  ;;  %v649_v23 = vld [vmem:[%s2570_s1 + $0x28] sm:$0xff] (!%p188_p2)  ;;  %vm282_vm1 = vcmask (!%p188_p2), 130112  }
   0x7   : > { %s1927_s26 = smov (!%p188_p2), 24   ;;  %s1928_s27 = smov (!%p188_p2), 32   ;;  %v1807_v21 = vpack.c.bf16 (!%p188_p2), %v647_v20, %v646_v19  ;;  %v1811_v24 = vpack.c.bf16 (!%p188_p2), %v649_v23, %v648_v22  ;;  %v650_v25 = vld [vmem:[%s2570_s1 + $0x30] sm:$0xff] (!%p188_p2)  ;;  %v651_v26 = vld [vmem:[%s2570_s1 + $0x38] sm:$0xff] (!%p188_p2)  ;;  %v652_v28 = vld [vmem:[%s2570_s1 + $0x40] sm:$0xff] (!%p188_p2)  ;;  %vm331_vm2 = vcmask (!%p188_p2), 195712  }
   0x8   : > { %s1929_s28 = smov (!%p188_p2), 40   ;;  %s1930_s8 = smov (!%p188_p2), 48   ;;  %1804 = vmatprep.subr.bf16.mxu0 (!%p188_p2), %v1803_v17  ;;  %v1815_v27 = vpack.c.bf16 (!%p188_p2), %v651_v26, %v650_v25  ;;  %vm381_vm3 = vcmask (!%p188_p2), 261312   ;;  %vm430_vm4 = vcmask (!%p188_p2), 326912   ;;  %vm479_vm5 = vcmask (!%p188_p2), 392512  }
   0x9   : > { %1806 = vmatpush3.bf16.msra.mxu0 (!%p188_p2), %v1803_v17  ;;  %s1931_s17 = smov (!%p188_p2), 56   ;;  %s1932_s9 = smov (!%p188_p2), 64   ;;  %vm529_vm6 = vcmask (!%p188_p2), 458112   ;;  %vm578_vm7 = vcmask (!%p188_p2), 523712   ;;  %vm627_vm8 = vcmask (!%p188_p2), 589312   ;;  %vm660_vm9 = vcmask (!%p188_p2), 588800  }
   0xa   : > { %1808 = vmatprep.subr.bf16.mxu0 (!%p188_p2), %v1807_v21  ;;  %vm863_vm10 = vcmask (!%p188_p2), 58368  }
   0xd   : > { %s2576_s19 = smov (!%p215_p3, %s1618_s19), 1  ;;  %1810 = vmatpush3.bf16.msra.mxu0 %v1807_v21 }
   0xe   : > { %s1835_s20 = smul.u32 160, %s2576_s19  ;;  %1812 = vmatprep.subr.bf16.mxu0 %v1811_v24 }
  0x10   : > { %s1980_s23 = scalar_lea.vmem %s2569_s0, %s1835_s20 }
  0x11   : > { %v291_v0 = vld [vmem:[%s1980_s23 + $0x2] sm:$0xff]  ;;  %v292_v3 = vld [vmem:[%s1980_s23 + $0x12] sm:$0xff]  ;;  %1814 = vmatpush3.bf16.msra.mxu0 %v1811_v24 }
  0x12   : > { %v242_v1 = vld [vmem:[%s1980_s23 + $0x1] sm:$0xff]  ;;  %307 = vrot.lane.b32.xlu1 %v291_v0, %s1925_s24  ;;  %v243_v4 = vld [vmem:[%s1980_s23 + $0x11] sm:$0xff]  ;;  %1816 = vmatprep.subr.bf16.mxu0 %v1815_v27 }
  0x13   : > { %258 = vrot.lane.b32.xlu0 %v242_v1, %s1926_s25  ;;  %v1626_v2 = vld [vmem:[%s1980_s23 + $0x20] sm:$0xff]  ;;  %v1625_v5 = vld [vmem:[%s1980_s23 + $0x10] sm:$0xff] }
  0x14   : > { %236 = vst.msk [vmem:[#allocation2 + $0x10] sm:$0xff] %vm233_vm0, %v1626_v2  ;;  %v1627_v6 = vld [vmem:[%s1980_s23 + $0x30] sm:$0xff]  ;;  %235 = vst.msk [vmem:[#allocation2 + $0x8] sm:$0xff] %vm233_vm0, %v1625_v5  ;;  %v1994_v7 = vld [vmem:[%s1980_s23 + $0x40] sm:$0xff] }
  0x15   : > { %237 = vst.msk [vmem:[#allocation2 + $0x18] sm:$0xff] %vm233_vm0, %v1627_v6  ;;  %v2000_v8 = vld [vmem:[%s1980_s23 + $0x50] sm:$0xff]  ;;  %238 = vst.msk [vmem:[#allocation2 + $0x20] sm:$0xff] %vm233_vm0, %v1994_v7  ;;  %v2005_v9 = vld [vmem:[%s1980_s23 + $0x60] sm:$0xff]  ;;  %1818 = vmatpush3.bf16.msra.mxu0 %v1815_v27 }
  0x16   : > { %309 = vrot.lane.b32.xlu1 %v292_v3, %s1925_s24  ;;  %239 = vst.msk [vmem:[#allocation2 + $0x28] sm:$0xff] %vm233_vm0, %v2000_v8  ;;  %240 = vst.msk [vmem:[#allocation2 + $0x30] sm:$0xff] %vm233_vm0, %v2005_v9  ;;  %v2012_v10 = vld [vmem:[%s1980_s23 + $0x70] sm:$0xff]  ;;  %v225_v11 = vld [vmem:[%s1980_s23] sm:$0xff]  ;;  %1759 = vmatprep.subr.mxu0 %v652_v28 }
  0x17   : > { %260 = vrot.lane.b32.xlu0 %v243_v4, %s1926_s25  ;;  %241 = vst.msk [vmem:[#allocation2 + $0x38] sm:$0xff] %vm233_vm0, %v2012_v10  ;;  %v244_v12 = vld [vmem:[%s1980_s23 + $0x21] sm:$0xff]  ;;  %234 = vst.msk [vmem:[#allocation2] sm:$0xff] %vm233_vm0, %v225_v11  ;;  %v245_v14 = vld [vmem:[%s1980_s23 + $0x31] sm:$0xff] }
  0x18   : > { %v293_v13 = vld [vmem:[%s1980_s23 + $0x22] sm:$0xff]  ;;  %v294_v18 = vld [vmem:[%s1980_s23 + $0x32] sm:$0xff] }
  0x19   : > { %v1636_v29 = vld [vmem:[%s1980_s23 + $0x41] sm:$0xff]  ;;  %1760 = vmatpush3.msra.mxu0 %v652_v28  ;;  %v247_v31 = vld [vmem:[%s1980_s23 + $0x51] sm:$0xff] }
  0x1a   : > { %359 = vrot.lane.b32.xlu1 %v1626_v2, %s1927_s26  ;;  %v295_v30 = vld [vmem:[%s1980_s23 + $0x42] sm:$0xff]  ;;  %v296_v32 = vld [vmem:[%s1980_s23 + $0x52] sm:$0xff] }
  0x1b   : > { %357 = vrot.lane.b32.xlu0 %v1625_v5, %s1927_s26  ;;  %v1638_v33 = vld [vmem:[%s1980_s23 + $0x61] sm:$0xff]  ;;  %v249_v34 = vld [vmem:[%s1980_s23 + $0x71] sm:$0xff] }
  0x1c   : > { %v297_v35 = vld [vmem:[%s1980_s23 + $0x62] sm:$0xff]  ;;  %v298_v36 = vld [vmem:[%s1980_s23 + $0x72] sm:$0xff] }
  0x1d   : > { %v1632_v37 = vld [vmem:[%s1980_s23 + $0x80] sm:$0xff]  ;;  %v1656_v40 = vld [vmem:[%s1980_s23 + $0x90] sm:$0xff] }
  0x1e   : > { %262 = vrot.lane.b32.xlu1 %v244_v12, %s1926_s25  ;;  %v1640_v38 = vld [vmem:[%s1980_s23 + $0x81] sm:$0xff]  ;;  %v1664_v43 = vld [vmem:[%s1980_s23 + $0x91] sm:$0xff] }
  0x1f   : > { %406 = vrot.lane.b32.xlu0 %v243_v4, %s1928_s27  ;;  %v1648_v39 = vld [vmem:[%s1980_s23 + $0x82] sm:$0xff]  ;;  %v1672_v46 = vld [vmem:[%s1980_s23 + $0x92] sm:$0xff] }
  0x22   : > { %455 = vrot.lane.b32.xlu1 %v292_v3, %s1929_s28 }
  0x23   : > { %408 = vrot.lane.b32.xlu0 %v244_v12, %s1928_s27 }
  0x26   : > { %311 = vrot.lane.b32.xlu1 %v293_v13, %s1925_s24 }
  0x27   : > { %264 = vrot.lane.b32.xlu0 %v245_v14, %s1926_s25 }
  0x2a   : > { %505 = vrot.lane.b32.xlu1 %v1626_v2, %s1930_s8 }
  0x2b   : > { %457 = vrot.lane.b32.xlu0 %v293_v13, %s1929_s28 }
  0x2e   : > { %361 = vrot.lane.b32.xlu1 %v1627_v6, %s1927_s26 }
  0x2f   : > { %313 = vrot.lane.b32.xlu0 %v294_v18, %s1925_s24 }
  0x32   : > { %554 = vrot.lane.b32.xlu1 %v244_v12, %s1931_s17 }
  0x33   : > { %507 = vrot.lane.b32.xlu0 %v1627_v6, %s1930_s8 }
  0x36   : > { %410 = vrot.lane.b32.xlu1 %v245_v14, %s1928_s27 }
  0x37   : > { %363 = vrot.lane.b32.xlu0 %v1994_v7, %s1927_s26 }
  0x3a   : > { %603 = vrot.lane.b32.xlu1 %v293_v13, %s1932_s9 }
  0x3b   : > { %556 = vrot.lane.b32.xlu0 %v245_v14, %s1931_s17 }
  0x3e   : > { %412 = vrot.lane.b32.xlu1 %v1636_v29, %s1928_s27 }
  0x3f   : > { %266 = vrot.lane.b32.xlu0 %v1636_v29, %s1926_s25 }
  0x42   : > { %605 = vrot.lane.b32.xlu1 %v294_v18, %s1932_s9 }
  0x43   : > { %459 = vrot.lane.b32.xlu0 %v294_v18, %s1929_s28 }
  0x46   : > { %315 = vrot.lane.b32.xlu1 %v295_v30, %s1925_s24 }
  0x47   : > { %268 = vrot.lane.b32.xlu0 %v247_v31, %s1926_s25 }
  0x4a   : > { %509 = vrot.lane.b32.xlu1 %v1994_v7, %s1930_s8 }
  0x4b   : > { %461 = vrot.lane.b32.xlu0 %v295_v30, %s1929_s28 }
  0x4e   : > { %365 = vrot.lane.b32.xlu1 %v2000_v8, %s1927_s26 }
  0x4f   : > { %317 = vrot.lane.b32.xlu0 %v296_v32, %s1925_s24 }
  0x52   : > { %558 = vrot.lane.b32.xlu1 %v1636_v29, %s1931_s17 }
  0x53   : > { %511 = vrot.lane.b32.xlu0 %v2000_v8, %s1930_s8 }
  0x56   : > { %414 = vrot.lane.b32.xlu1 %v247_v31, %s1928_s27 }
  0x57   : > { %367 = vrot.lane.b32.xlu0 %v2005_v9, %s1927_s26 }
  0x5a   : > { %607 = vrot.lane.b32.xlu1 %v295_v30, %s1932_s9 }
  0x5b   : > { %560 = vrot.lane.b32.xlu0 %v247_v31, %s1931_s17 }
  0x5e   : > { %416 = vrot.lane.b32.xlu1 %v1638_v33, %s1928_s27 }
  0x5f   : > { %270 = vrot.lane.b32.xlu0 %v1638_v33, %s1926_s25 }
  0x62   : > { %609 = vrot.lane.b32.xlu1 %v296_v32, %s1932_s9 }
  0x63   : > { %463 = vrot.lane.b32.xlu0 %v296_v32, %s1929_s28 }
  0x66   : > { %319 = vrot.lane.b32.xlu1 %v297_v35, %s1925_s24 }
  0x67   : > { %272 = vrot.lane.b32.xlu0 %v249_v34, %s1926_s25 }
  0x6a   : > { %513 = vrot.lane.b32.xlu1 %v2005_v9, %s1930_s8 }
  0x6b   : > { %465 = vrot.lane.b32.xlu0 %v297_v35, %s1929_s28 }
  0x6e   : > { %369 = vrot.lane.b32.xlu1 %v2012_v10, %s1927_s26 }
  0x6f   : > { %321 = vrot.lane.b32.xlu0 %v298_v36, %s1925_s24 }
  0x72   : > { %562 = vrot.lane.b32.xlu1 %v1638_v33, %s1931_s17 }
  0x73   : > { %515 = vrot.lane.b32.xlu0 %v2012_v10, %s1930_s8 }
  0x76   : > { %418 = vrot.lane.b32.xlu1 %v249_v34, %s1928_s27 }
  0x77   : > { %371 = vrot.lane.b32.xlu0 %v1632_v37, %s1927_s26 }
  0x7a   : > { %611 = vrot.lane.b32.xlu1 %v297_v35, %s1932_s9 }
  0x7b   : > { %564 = vrot.lane.b32.xlu0 %v249_v34, %s1931_s17 }
  0x7e   : > { %467 = vrot.lane.b32.xlu1 %v298_v36, %s1929_s28 }
  0x7f   : > { %420 = vrot.lane.b32.xlu0 %v1640_v38, %s1928_s27 }
  0x82   : > { %469 = vrot.lane.b32.xlu1 %v1648_v39, %s1929_s28 }
  0x83   : > { %613 = vrot.lane.b32.xlu0 %v298_v36, %s1932_s9 }
  0x84   : > { %v308_v41 = vpop.permute.xlu1 %307 }
  0x85   : > { %v259_v42 = vpop.permute.xlu0 %258 }
  0x86   : > { %283 = vst.msk [vmem:[#allocation2] sm:$0xff] %vm282_vm1, %v259_v42  ;;  %519 = vrot.lane.b32.xlu1 %v1656_v40, %s1930_s8 }
  0x87   : > { %517 = vrot.lane.b32.xlu0 %v1632_v37, %s1930_s8  ;;  %332 = vst.msk [vmem:[#allocation2] sm:$0xff] %vm331_vm2, %v308_v41 }
  0x88   : > { %v310_v44 = vpop.permute.xlu1 %309 }
  0x89   : > { %v261_v45 = vpop.permute.xlu0 %260 }
  0x8a   : > { %284 = vst.msk [vmem:[#allocation2 + $0x8] sm:$0xff] %vm282_vm1, %v261_v45  ;;  %568 = vrot.lane.b32.xlu1 %v1664_v43, %s1931_s17 }
  0x8b   : > { %566 = vrot.lane.b32.xlu0 %v1640_v38, %s1931_s17  ;;  %333 = vst.msk [vmem:[#allocation2 + $0x8] sm:$0xff] %vm331_vm2, %v310_v44 }
  0x8c   : > { %v360_v47 = vpop.permute.xlu1 %359 }
  0x8d   : > { %v358_v48 = vpop.permute.xlu0 %357  ;;  %383 = vst.msk [vmem:[#allocation2 + $0x8] sm:$0xff] %vm381_vm3, %v360_v47 }
  0x8e   : > { %382 = vst.msk [vmem:[#allocation2] sm:$0xff] %vm381_vm3, %v358_v48  ;;  %617 = vrot.lane.b32.xlu1 %v1672_v46, %s1932_s9 }
  0x8f   : > { %615 = vrot.lane.b32.xlu0 %v1648_v39, %s1932_s9 }
  0x90   : > { %v263_v49 = vpop.permute.xlu1 %262 }
  0x91   : > { %v407_v50 = vpop.permute.xlu0 %406  ;;  %285 = vst.msk [vmem:[#allocation2 + $0x10] sm:$0xff] %vm282_vm1, %v263_v49 }
  0x92   : > { %431 = vst.msk [vmem:[#allocation2] sm:$0xff] %vm430_vm4, %v407_v50 }
  0x94   : > { %v456_v51 = vpop.permute.xlu1 %455 }
  0x95   : > { %v409_v52 = vpop.permute.xlu0 %408  ;;  %480 = vst.msk [vmem:[#allocation2] sm:$0xff] %vm479_vm5, %v456_v51  ;;  %v1933_v51 = vmov 0.0  }
  0x96   : > { %432 = vst.msk [vmem:[#allocation2 + $0x8] sm:$0xff] %vm430_vm4, %v409_v52 }
  0x97   : > { %867 = vst.msk [vmem:[#allocation3 + $0x20] sm:$0xff] %vm233_vm0, %v1933_v51  ;;  %862 = vst.msk [vmem:[#allocation3] sm:$0xff] %vm233_vm0, %v1933_v51 }
  0x98   : > { %v312_v53 = vpop.permute.xlu1 %311  ;;  %868 = vst.msk [vmem:[#allocation3 + $0x28] sm:$0x3] %vm863_vm10, %v1933_v51  ;;  %864 = vst.msk [vmem:[#allocation3 + $0x8] sm:$0x3] %vm863_vm10, %v1933_v51 }
  0x99   : > { %v265_v54 = vpop.permute.xlu0 %264  ;;  %334 = vst.msk [vmem:[#allocation2 + $0x10] sm:$0xff] %vm331_vm2, %v312_v53 }
  0x9a   : > { %286 = vst.msk [vmem:[#allocation2 + $0x18] sm:$0xff] %vm282_vm1, %v265_v54 }
  0x9b   : > { %865 = vst.msk [vmem:[#allocation3 + $0x10] sm:$0xff] %vm233_vm0, %v1933_v51  ;;  %869 = vst.msk [vmem:[#allocation3 + $0x30] sm:$0xff] %vm233_vm0, %v1933_v51 }
  0x9c   : > { %v506_v55 = vpop.permute.xlu1 %505  ;;  %866 = vst.msk [vmem:[#allocation3 + $0x18] sm:$0x3] %vm863_vm10, %v1933_v51  ;;  %870 = vst.msk [vmem:[#allocation3 + $0x38] sm:$0x3] %vm863_vm10, %v1933_v51 }
  0x9d   : > { %v458_v56 = vpop.permute.xlu0 %457  ;;  %530 = vst.msk [vmem:[#allocation2] sm:$0xff] %vm529_vm6, %v506_v55 }
  0x9e   : > { %481 = vst.msk [vmem:[#allocation2 + $0x8] sm:$0xff] %vm479_vm5, %v458_v56  ;;  %v2250_v56 = vld [vmem:[%s2571_s2] ss:$0 sm:$0xff] }
  0x9f   : > { %871 = vst.msk [vmem:[#allocation3 + $0x40] sm:$0xff] %vm233_vm0, %v1933_v51  ;;  %873 = vst.msk [vmem:[#allocation3 + $0x50] sm:$0xff] %vm233_vm0, %v1933_v51  ;;  %v908_v53 = vld [vmem:[#allocation3 + $0x1] sm:$0xff] }
  0xa0   : > { %v362_v57 = vpop.permute.xlu1 %361  ;;  %872 = vst.msk [vmem:[#allocation3 + $0x48] sm:$0x3] %vm863_vm10, %v1933_v51  ;;  %874 = vst.msk [vmem:[#allocation3 + $0x58] sm:$0x3] %vm863_vm10, %v1933_v51  ;;  %924 = vrot.lane.b32.xlu0 %v908_v53, %s1926_s25  ;;  %v956_v55 = vld [vmem:[#allocation3 + $0x2] sm:$0xff] }
  0xa1   : > { %v314_v58 = vpop.permute.xlu0 %313  ;;  %384 = vst.msk [vmem:[#allocation2 + $0x10] sm:$0xff] %vm381_vm3, %v362_v57 }
  0xa2   : > { %335 = vst.msk [vmem:[#allocation2 + $0x18] sm:$0xff] %vm331_vm2, %v314_v58 }
  0xa3   : > { %875 = vst.msk [vmem:[#allocation3 + $0x60] sm:$0xff] %vm233_vm0, %v1933_v51  ;;  %877 = vst.msk [vmem:[#allocation3 + $0x70] sm:$0xff] %vm233_vm0, %v1933_v51 }
  0xa4   : > { %v555_v59 = vpop.permute.xlu1 %554  ;;  %876 = vst.msk [vmem:[#allocation3 + $0x68] sm:$0x3] %vm863_vm10, %v1933_v51  ;;  %878 = vst.msk [vmem:[#allocation3 + $0x78] sm:$0x3] %vm863_vm10, %v1933_v51  ;;  %972 = vrot.lane.b32.xlu0 %v956_v55, %s1925_s24 }
  0xa5   : > { %v508_v60 = vpop.permute.xlu0 %507  ;;  %579 = vst.msk [vmem:[#allocation2] sm:$0xff] %vm578_vm7, %v555_v59 }
  0xa6   : > { %531 = vst.msk [vmem:[#allocation2 + $0x8] sm:$0xff] %vm529_vm6, %v508_v60 }
  0xa7   : > { %879 = vst.msk [vmem:[#allocation3 + $0x80] sm:$0xff] %vm233_vm0, %v1933_v51  ;;  %881 = vst.msk [vmem:[#allocation3 + $0x90] sm:$0xff] %vm233_vm0, %v1933_v51 }
  0xa8   : > { %v411_v61 = vpop.permute.xlu1 %410  ;;  %880 = vst.msk [vmem:[#allocation3 + $0x88] sm:$0x3] %vm863_vm10, %v1933_v51  ;;  %882 = vst.msk [vmem:[#allocation3 + $0x98] sm:$0x3] %vm863_vm10, %v1933_v51 }
  0xa9   : > { %v364_v62 = vpop.permute.xlu0 %363  ;;  %433 = vst.msk [vmem:[#allocation2 + $0x10] sm:$0xff] %vm430_vm4, %v411_v61 }
  0xaa   : > { %385 = vst.msk [vmem:[#allocation2 + $0x18] sm:$0xff] %vm381_vm3, %v364_v62 }
  0xac   : > { %v604_v63 = vpop.permute.xlu1 %603 }
  0xad   : > { %v557_v0 = vpop.permute.xlu0 %556  ;;  %628 = vst.msk [vmem:[#allocation2] sm:$0xff] %vm627_vm8, %v604_v63 }
  0xae   : > { %580 = vst.msk [vmem:[#allocation2 + $0x8] sm:$0xff] %vm578_vm7, %v557_v0  ;;  %v1156_v52 = vld [vmem:[#allocation3 + $0x90] sm:$0xff] }
  0xaf   : > { %1179 = vrot.lane.b32.xlu1 %v1156_v52, %s1930_s8  ;;  %v1204_v54 = vld [vmem:[#allocation3 + $0x91] sm:$0xff] }
  0xb0   : > { %v413_v1 = vpop.permute.xlu1 %412 }
  0xb1   : > { %v267_v2 = vpop.permute.xlu0 %266  ;;  %434 = vst.msk [vmem:[#allocation2 + $0x18] sm:$0xff] %vm430_vm4, %v413_v1 }
  0xb2   : > { %287 = vst.msk [vmem:[#allocation2 + $0x20] sm:$0xff] %vm282_vm1, %v267_v2 }
  0xb3   : > { %1227 = vrot.lane.b32.xlu1 %v1204_v54, %s1931_s17 }
  0xb4   : > { %v606_v3 = vpop.permute.xlu1 %605  ;;  %v636_v5 = vld [vmem:[#allocation2] sm:$0xff] }
  0xb5   : > { %v460_v4 = vpop.permute.xlu0 %459  ;;  %629 = vst.msk [vmem:[#allocation2 + $0x8] sm:$0xff] %vm627_vm8, %v606_v3  ;;  %1761 = vmatprep.mubr.msk.f32.mxu0 %vm660_vm9, %v636_v5 }
  0xb6   : > { %482 = vst.msk [vmem:[#allocation2 + $0x10] sm:$0xff] %vm479_vm5, %v460_v4 }
  0xb8   : > { %v316_v6 = vpop.permute.xlu1 %315 }
  0xb9   : > { %v269_v7 = vpop.permute.xlu0 %268  ;;  %336 = vst.msk [vmem:[#allocation2 + $0x20] sm:$0xff] %vm331_vm2, %v316_v6 }
  0xba   : > { %288 = vst.msk [vmem:[#allocation2 + $0x28] sm:$0xff] %vm282_vm1, %v269_v7 }
  0xbc   : > { %v510_v8 = vpop.permute.xlu1 %509  ;;  %v637_v10 = vld [vmem:[#allocation2 + $0x8] sm:$0xff] }
  0xbd   : > { %v462_v9 = vpop.permute.xlu0 %461  ;;  %532 = vst.msk [vmem:[#allocation2 + $0x10] sm:$0xff] %vm529_vm6, %v510_v8  ;;  %1762 = vmatmul.mubr.msk.f32.vlgmr.msra.gmra.mrb[0].mxu0 %vm660_vm9, %v637_v10 }
  0xbe   : > { %483 = vst.msk [vmem:[#allocation2 + $0x18] sm:$0xff] %vm479_vm5, %v462_v9  ;;  %v892_v9 = vld [vmem:[#allocation3] sm:$0xff] }
  0xbf   : > { %900 = vst.msk [vmem:[#allocation2] sm:$0xff] %vm233_vm0, %v892_v9  ;;  %v1302_v9 = vld [vmem:[%s2572_s3 + $0x8] sm:$0xff] }
  0xc0   : > { %v366_v11 = vpop.permute.xlu1 %365 }
  0xc1   : > { %v318_v12 = vpop.permute.xlu0 %317  ;;  %386 = vst.msk [vmem:[#allocation2 + $0x20] sm:$0xff] %vm381_vm3, %v366_v11 }
  0xc2   : > { %337 = vst.msk [vmem:[#allocation2 + $0x28] sm:$0xff] %vm331_vm2, %v318_v12 }
  0xc4   : > { %v559_v13 = vpop.permute.xlu1 %558 }
  0xc5   : > { %v512_v14 = vpop.permute.xlu0 %511  ;;  %581 = vst.msk [vmem:[#allocation2 + $0x10] sm:$0xff] %vm578_vm7, %v559_v13 }
  0xc6   : > { %533 = vst.msk [vmem:[#allocation2 + $0x18] sm:$0xff] %vm529_vm6, %v512_v14 }
  0xc8   : > { %v415_v15 = vpop.permute.xlu1 %414 }
  0xc9   : > { %v368_v16 = vpop.permute.xlu0 %367  ;;  %435 = vst.msk [vmem:[#allocation2 + $0x20] sm:$0xff] %vm430_vm4, %v415_v15 }
  0xca   : > { %387 = vst.msk [vmem:[#allocation2 + $0x28] sm:$0xff] %vm381_vm3, %v368_v16 }
  0xcc   : > { %v608_v17 = vpop.permute.xlu1 %607 }
  0xcd   : > { %v561_v18 = vpop.permute.xlu0 %560  ;;  %630 = vst.msk [vmem:[#allocation2 + $0x10] sm:$0xff] %vm627_vm8, %v608_v17 }
  0xce   : > { %582 = vst.msk [vmem:[#allocation2 + $0x18] sm:$0xff] %vm578_vm7, %v561_v18 }
  0xd0   : > { %v417_v19 = vpop.permute.xlu1 %416 }
  0xd1   : > { %v271_v20 = vpop.permute.xlu0 %270  ;;  %436 = vst.msk [vmem:[#allocation2 + $0x28] sm:$0xff] %vm430_vm4, %v417_v19 }
  0xd2   : > { %289 = vst.msk [vmem:[#allocation2 + $0x30] sm:$0xff] %vm282_vm1, %v271_v20 }
  0xd4   : > { %v610_v21 = vpop.permute.xlu1 %609  ;;  %v638_v23 = vld [vmem:[#allocation2 + $0x10] sm:$0xff] }
  0xd5   : > { %v464_v22 = vpop.permute.xlu0 %463  ;;  %631 = vst.msk [vmem:[#allocation2 + $0x18] sm:$0xff] %vm627_vm8, %v610_v21  ;;  %1764 = vmatprep.mubr.msk.f32.mxu0 %vm660_vm9, %v638_v23 }
  0xd6   : > { %484 = vst.msk [vmem:[#allocation2 + $0x20] sm:$0xff] %vm479_vm5, %v464_v22 }
  0xd8   : > { %v320_v25 = vpop.permute.xlu1 %319 }
  0xd9   : > { %v273_v24 = vpop.permute.xlu0 %272  ;;  %338 = vst.msk [vmem:[#allocation2 + $0x30] sm:$0xff] %vm331_vm2, %v320_v25 }
  0xda   : > { %290 = vst.msk [vmem:[#allocation2 + $0x38] sm:$0xff] %vm282_vm1, %v273_v24 }
  0xdc   : > { %v514_v27 = vpop.permute.xlu1 %513  ;;  %v639_v28 = vld [vmem:[#allocation2 + $0x18] sm:$0xff] }
  0xdd   : > { %v466_v26 = vpop.permute.xlu0 %465  ;;  %534 = vst.msk [vmem:[#allocation2 + $0x20] sm:$0xff] %vm529_vm6, %v514_v27  ;;  %1765 = vmatmul.mubr.msk.f32.gmra.mrb[2].mxu0 %vm660_vm9, %v639_v28 }
  0xde   : > { %485 = vst.msk [vmem:[#allocation2 + $0x28] sm:$0xff] %vm479_vm5, %v466_v26 }
  0xe0   : > { %v370_v30 = vpop.permute.xlu1 %369 }
  0xe1   : > { %v322_v29 = vpop.permute.xlu0 %321  ;;  %388 = vst.msk [vmem:[#allocation2 + $0x30] sm:$0xff] %vm381_vm3, %v370_v30 }
  0xe2   : > { %339 = vst.msk [vmem:[#allocation2 + $0x38] sm:$0xff] %vm331_vm2, %v322_v29 }
  0xe4   : > { %v563_v32 = vpop.permute.xlu1 %562 }
  0xe5   : > { %v516_v31 = vpop.permute.xlu0 %515  ;;  %583 = vst.msk [vmem:[#allocation2 + $0x20] sm:$0xff] %vm578_vm7, %v563_v32 }
  0xe6   : > { %535 = vst.msk [vmem:[#allocation2 + $0x28] sm:$0xff] %vm529_vm6, %v516_v31 }
  0xe8   : > { %v419_v34 = vpop.permute.xlu1 %418 }
  0xe9   : > { %v372_v33 = vpop.permute.xlu0 %371  ;;  %437 = vst.msk [vmem:[#allocation2 + $0x30] sm:$0xff] %vm430_vm4, %v419_v34 }
  0xea   : > { %389 = vst.msk [vmem:[#allocation2 + $0x38] sm:$0xff] %vm381_vm3, %v372_v33 }
  0xec   : > { %v612_v36 = vpop.permute.xlu1 %611 }
  0xed   : > { %v565_v35 = vpop.permute.xlu0 %564  ;;  %632 = vst.msk [vmem:[#allocation2 + $0x20] sm:$0xff] %vm627_vm8, %v612_v36 }
  0xee   : > { %584 = vst.msk [vmem:[#allocation2 + $0x28] sm:$0xff] %vm578_vm7, %v565_v35 }
  0xf0   : > { %v468_v38 = vpop.permute.xlu1 %467 }
  0xf1   : > { %v421_v37 = vpop.permute.xlu0 %420  ;;  %486 = vst.msk [vmem:[#allocation2 + $0x30] sm:$0xff] %vm479_vm5, %v468_v38 }
  0xf2   : > { %438 = vst.msk [vmem:[#allocation2 + $0x38] sm:$0xff] %vm430_vm4, %v421_v37 }
  0xf4   : > { %v470_v40 = vpop.permute.xlu1 %469  ;;  %v640_v41 = vld [vmem:[#allocation2 + $0x20] sm:$0xff] }
  0xf5   : > { %v614_v39 = vpop.permute.xlu0 %613  ;;  %487 = vst.msk [vmem:[#allocation2 + $0x38] sm:$0xff] %vm479_vm5, %v470_v40  ;;  %1767 = vmatprep.mubr.msk.f32.mxu0 %vm660_vm9, %v640_v41 }
  0xf6   : > { %633 = vst.msk [vmem:[#allocation2 + $0x28] sm:$0xff] %vm627_vm8, %v614_v39 }
  0xf8   : > { %v520_v43 = vpop.permute.xlu1 %519 }
  0xf9   : > { %v518_v42 = vpop.permute.xlu0 %517  ;;  %537 = vst.msk [vmem:[#allocation2 + $0x38] sm:$0xff] %vm529_vm6, %v520_v43 }
  0xfa   : > { %536 = vst.msk [vmem:[#allocation2 + $0x30] sm:$0xff] %vm529_vm6, %v518_v42 }
  0xfc   : > { %v569_v45 = vpop.permute.xlu1 %568 }
  0xfd   : > { %v567_v44 = vpop.permute.xlu0 %566  ;;  %v641_v46 = vld [vmem:[#allocation2 + $0x28] sm:$0xff]  ;;  %586 = vst.msk [vmem:[#allocation2 + $0x38] sm:$0xff] %vm578_vm7, %v569_v45 }
  0xfe   : > { %585 = vst.msk [vmem:[#allocation2 + $0x30] sm:$0xff] %vm578_vm7, %v567_v44  ;;  %1768 = vmatmul.mubr.msk.f32.gmra.mrb[4].mxu0 %vm660_vm9, %v641_v46 }
 0x100   : > { %v618_v48 = vpop.permute.xlu1 %617 }
 0x101   : > { %v616_v47 = vpop.permute.xlu0 %615  ;;  %635 = vst.msk [vmem:[#allocation2 + $0x38] sm:$0xff] %vm627_vm8, %v618_v48 }
 0x102   : > { %634 = vst.msk [vmem:[#allocation2 + $0x30] sm:$0xff] %vm627_vm8, %v616_v47 }
 0x108   : > { %v643_v50 = vld [vmem:[#allocation2 + $0x38] sm:$0xff] }
 0x109   : > { %v642_v49 = vld [vmem:[#allocation2 + $0x30] sm:$0xff] }
 0x10a   : > { %1770 = vmatprep.mubr.msk.f32.mxu0 %vm660_vm9, %v642_v49 }
 0x10b   : > { %1771 = vmatmul.mubr.msk.f32.gmra.mrb[6].mxu0 %vm660_vm9, %v643_v50 }
 0x112   : > { %v925_v10 = vpop.permute.xlu0 %924 }
 0x113   : > { %948 = vst.msk [vmem:[#allocation2] sm:$0xff] %vm282_vm1, %v925_v10 }
 0x116   : > { %v973_v11 = vpop.permute.xlu0 %972 }
 0x117   : > { %996 = vst.msk [vmem:[#allocation2] sm:$0xff] %vm331_vm2, %v973_v11 }
 0x190   : > { %v1763_v57 = vpop.f32.mrb[0].mxu0 }
 0x191   : > { %v757_v58 = vadd.f32 %v1763_v57, %v2250_v56  ;;  %v751_v59 = vpop.f32.mrb[1].mxu0 }
 0x192   : > { %v752_v60 = vadd.f32 %v2250_v56, %v751_v59 }
 0x193   : > { %v791_v61 = vmin.f32 %v757_v58, 20.0 }
 0x194   : > { %v790_v62 = vmin.f32 %v752_v60, 20.0 }
 0x195   : > { %v800_v63 = vmul.f32 1.442695, %v791_v61 }
 0x196   : > { %v798_v0 = vmul.f32 1.442695, %v790_v62 }
 0x197   : > { %1853 = vpow2.f32 %v800_v63 }
 0x198   : > { %1855 = vpow2.f32 %v798_v0 }
 0x1a1   : > { %v1854_v1 = vpop.eup %1853 }
 0x1a2   : > { %v1856_v2 = vpop.eup %1855  ;;  %v815_v3 = vadd.f32 2.0, %v1854_v1 }
 0x1a3   : > { %v814_v4 = vadd.f32 2.0, %v1856_v2 }
 0x1a4   : > { %v823_v5 = vmul.f32 %v1854_v1, %v815_v3 }
 0x1a5   : > { %v822_v6 = vmul.f32 %v1856_v2, %v814_v4 }
 0x1a6   : > { %v831_v7 = vadd.f32 2.0, %v823_v5 }
 0x1a7   : > { %v830_v8 = vadd.f32 2.0, %v822_v6 }
 0x1a8   : > { %1857 = vrcp.f32 %v831_v7 }
 0x1a9   : > { %1859 = vrcp.f32 %v830_v8  ;;  %v1301_v8 = vld [vmem:[%s2572_s3] sm:$0xff] }
 0x1b0   : > { %v1766_v12 = vpop.f32.mrb[2].mxu0 }
 0x1b1   : > { %v767_v13 = vadd.f32 %v1766_v12, %v2250_v56  ;;  %v761_v14 = vpop.f32.mrb[3].mxu0  ;;  %v1819_v12 = vpack.c.bf16 %v1302_v9, %v1301_v8 }
 0x1b2   : > { %v1858_v15 = vpop.eup %1857  ;;  %v762_v16 = vadd.f32 %v2250_v56, %v761_v14  ;;  %v1303_v14 = vld [vmem:[%s2572_s3 + $0x10] sm:$0xff] }
 0x1b3   : > { %v1860_v17 = vpop.eup %1859  ;;  %v841_v18 = vmul.f32 %v1858_v15, %v823_v5  ;;  %v793_v19 = vmin.f32 %v767_v13, 20.0  ;;  %1820 = vmatprep.subr.bf16.mxu1 %v1819_v12  ;;  %v1304_v15 = vld [vmem:[%s2572_s3 + $0x18] sm:$0xff] }
 0x1b4   : > { %v839_v20 = vmul.f32 %v1860_v17, %v822_v6  ;;  %v792_v21 = vmin.f32 %v762_v16, 20.0  ;;  %1822 = vmatpush3.bf16.msra.mxu1 %v1819_v12  ;;  %v1823_v17 = vpack.c.bf16 %v1304_v15, %v1303_v14 }
 0x1b5   : > { %v855_v22 = vmul.f32 %v841_v18, %v757_v58  ;;  %v804_v23 = vmul.f32 1.442695, %v793_v19  ;;  %v1305_v18 = vld [vmem:[%s2572_s3 + $0x20] sm:$0xff]  ;;  %v1306_v19 = vld [vmem:[%s2572_s3 + $0x28] sm:$0xff] }
 0x1b6   : > { %v854_v24 = vmul.f32 %v839_v20, %v752_v60  ;;  %v802_v25 = vmul.f32 1.442695, %v792_v21  ;;  %1824 = vmatprep.subr.bf16.mxu1 %v1823_v17 }
 0x1b7   : > { %885 = vst.msk [vmem:[#allocation3 + $0x21] sm:$0xff] %vm233_vm0, %v855_v22  ;;  %1861 = vpow2.f32 %v804_v23  ;;  %v1827_v22 = vpack.c.bf16 %v1306_v19, %v1305_v18 }
 0x1b8   : > { %884 = vst.msk [vmem:[#allocation3 + $0x11] sm:$0xff] %vm233_vm0, %v854_v24  ;;  %1863 = vpow2.f32 %v802_v25  ;;  %1826 = vmatpush3.bf16.msra.mxu1 %v1823_v17 }
 0x1b9   : > { %1828 = vmatprep.subr.bf16.mxu1 %v1827_v22 }
 0x1bc   : > { %1830 = vmatpush3.bf16.msra.mxu1 %v1827_v22 }
 0x1be   : > { %v1053_v26 = vld [vmem:[#allocation3 + $0x21] sm:$0xff] }
 0x1bf   : > { %v1005_v27 = vld [vmem:[#allocation3 + $0x20] sm:$0xff]  ;;  %1070 = vrot.lane.b32.xlu0 %v1053_v26, %s1928_s27  ;;  %v1004_v28 = vld [vmem:[#allocation3 + $0x10] sm:$0xff] }
 0x1c0   : > { %1022 = vrot.lane.b32.xlu1 %v1005_v27, %s1927_s26  ;;  %902 = vst.msk [vmem:[#allocation2 + $0x10] sm:$0xff] %vm233_vm0, %v1005_v27  ;;  %901 = vst.msk [vmem:[#allocation2 + $0x8] sm:$0xff] %vm233_vm0, %v1004_v28  ;;  %v1101_v32 = vld [vmem:[#allocation3 + $0x22] sm:$0xff]  ;;  %v1052_v38 = vld [vmem:[#allocation3 + $0x11] sm:$0xff] }
 0x1c1   : > { %v1862_v29 = vpop.eup %1861  ;;  %v957_v54 = vld [vmem:[#allocation3 + $0x12] sm:$0xff] }
 0x1c2   : > { %v1864_v30 = vpop.eup %1863  ;;  %v817_v31 = vadd.f32 2.0, %v1862_v29 }
 0x1c3   : > { %v816_v33 = vadd.f32 2.0, %v1864_v30  ;;  %1118 = vrot.lane.b32.xlu0 %v1101_v32, %s1929_s28 }
 0x1c4   : > { %928 = vrot.lane.b32.xlu1 %v1053_v26, %s1926_s25  ;;  %v825_v34 = vmul.f32 %v1862_v29, %v817_v31 }
 0x1c5   : > { %v824_v35 = vmul.f32 %v1864_v30, %v816_v33 }
 0x1c6   : > { %v833_v36 = vadd.f32 2.0, %v825_v34 }
 0x1c7   : > { %v832_v37 = vadd.f32 2.0, %v824_v35  ;;  %1020 = vrot.lane.b32.xlu0 %v1004_v28, %s1927_s26  ;;  %v1308_v28 = vld [vmem:[%s2572_s3 + $0x38] sm:$0xff] }
 0x1c8   : > { %976 = vrot.lane.b32.xlu1 %v1101_v32, %s1925_s24  ;;  %1865 = vrcp.f32 %v833_v36 }
 0x1c9   : > { %1867 = vrcp.f32 %v832_v37 }
 0x1cb   : > { %1068 = vrot.lane.b32.xlu0 %v1052_v38, %s1928_s27 }
 0x1cc   : > { %1165 = vrot.lane.b32.xlu1 %v1005_v27, %s1930_s8  ;;  %v1307_v27 = vld [vmem:[%s2572_s3 + $0x30] sm:$0xff] }
 0x1cd   : > { %v1831_v31 = vpack.c.bf16 %v1308_v28, %v1307_v27 }
 0x1cf   : > { %1832 = vmatprep.subr.bf16.mxu1 %v1831_v31 }
 0x1d0   : > { %1213 = vrot.lane.b32.xlu1 %v1053_v26, %s1931_s17  ;;  %1834 = vmatpush3.bf16.msra.mxu1 %v1831_v31 }
 0x1d1   : > { %v1769_v39 = vpop.f32.mrb[4].mxu0 }
 0x1d2   : > { %v2273_v40 = vadd.f32 %v1769_v39, %v2250_v56  ;;  %v771_v41 = vpop.f32.mrb[5].mxu0  ;;  %v1866_v42 = vpop.eup %1865  ;;  %v1309_v39 = vld [vmem:[%s2572_s3 + $0x40] sm:$0xff] }
 0x1d3   : > { %v2276_v43 = vadd.f32 %v2250_v56, %v771_v41  ;;  %v1868_v44 = vpop.eup %1867  ;;  %v845_v45 = vmul.f32 %v1866_v42, %v825_v34  ;;  %1789 = vmatprep.subr.mxu1 %v1309_v39 }
 0x1d4   : > { %v795_v46 = vmin.f32 %v2273_v40, 20.0  ;;  %1261 = vrot.lane.b32.xlu1 %v1101_v32, %s1932_s9  ;;  %v843_v47 = vmul.f32 %v1868_v44, %v824_v35  ;;  %1790 = vmatpush3.msra.mxu1 %v1309_v39 }
 0x1d5   : > { %v794_v48 = vmin.f32 %v2276_v43, 20.0  ;;  %v857_v49 = vmul.f32 %v845_v45, %v767_v13 }
 0x1d6   : > { %v808_v50 = vmul.f32 1.442695, %v795_v46  ;;  %v856_v52 = vmul.f32 %v843_v47, %v762_v16 }
 0x1d7   : > { %v806_v53 = vmul.f32 1.442695, %v794_v48  ;;  %887 = vst.msk [vmem:[#allocation3 + $0x41] sm:$0xff] %vm233_vm0, %v857_v49 }
 0x1d8   : > { %1869 = vpow2.f32 %v808_v50  ;;  %926 = vrot.lane.b32.xlu1 %v1052_v38, %s1926_s25  ;;  %886 = vst.msk [vmem:[#allocation3 + $0x31] sm:$0xff] %vm233_vm0, %v856_v52 }
 0x1d9   : > { %1871 = vpow2.f32 %v806_v53 }
 0x1dc   : > { %974 = vrot.lane.b32.xlu1 %v957_v54, %s1925_s24 }
 0x1de   : > { %v1772_v55 = vpop.f32.mrb[6].mxu0  ;;  %v1007_v59 = vld [vmem:[#allocation3 + $0x40] sm:$0xff] }
 0x1df   : > { %v2286_v57 = vadd.f32 %v1772_v55, %v2250_v56  ;;  %v781_v58 = vpop.f32.mrb[7].mxu0  ;;  %1026 = vrot.lane.b32.xlu0 %v1007_v59, %s1927_s26  ;;  %v2293_v61 = vld [vmem:[#allocation3 + $0x30] sm:$0xff]  ;;  %904 = vst.msk [vmem:[#allocation2 + $0x20] sm:$0xff] %vm233_vm0, %v1007_v59  ;;  %v912_v3 = vld [vmem:[#allocation3 + $0x41] sm:$0xff] }
 0x1e0   : > { %v2289_v60 = vadd.f32 %v2250_v56, %v781_v58  ;;  %1116 = vrot.lane.b32.xlu1 %v957_v54, %s1929_s28  ;;  %903 = vst.msk [vmem:[#allocation2 + $0x18] sm:$0xff] %vm233_vm0, %v2293_v61  ;;  %v1103_v11 = vld [vmem:[#allocation3 + $0x42] sm:$0xff]  ;;  %v911_v16 = vld [vmem:[#allocation3 + $0x31] sm:$0xff]  ;;  %v2374_v58 = vpop.permute.xlu1 %1179 }
 0x1e1   : > { %v797_v62 = vmin.f32 %v2286_v57, 20.0  ;;  %v959_v21 = vld [vmem:[#allocation3 + $0x32] sm:$0xff] }
 0x1e2   : > { %v1870_v63 = vpop.eup %1869  ;;  %v796_v0 = vmin.f32 %v2289_v60, 20.0 }
 0x1e3   : > { %v1872_v1 = vpop.eup %1871  ;;  %v819_v2 = vadd.f32 2.0, %v1870_v63  ;;  %v812_v56 = vmul.f32 1.442695, %v797_v62  ;;  %932 = vrot.lane.b32.xlu0 %v912_v3, %s1926_s25  ;;  %v1252_v62 = vld [vmem:[#allocation3 + $0x92] sm:$0xff] }
 0x1e4   : > { %v818_v4 = vadd.f32 2.0, %v1872_v1  ;;  %v810_v5 = vmul.f32 1.442695, %v796_v0  ;;  %1074 = vrot.lane.b32.xlu1 %v912_v3, %s1928_s27 }
 0x1e5   : > { %v827_v6 = vmul.f32 %v1870_v63, %v819_v2  ;;  %1873 = vpow2.f32 %v812_v56 }
 0x1e6   : > { %v826_v7 = vmul.f32 %v1872_v1, %v818_v4  ;;  %1875 = vpow2.f32 %v810_v5 }
 0x1e7   : > { %v835_v10 = vadd.f32 2.0, %v827_v6  ;;  %1122 = vrot.lane.b32.xlu0 %v1103_v11, %s1929_s28 }
 0x1e8   : > { %v834_v13 = vadd.f32 2.0, %v826_v7  ;;  %980 = vrot.lane.b32.xlu1 %v1103_v11, %s1925_s24 }
 0x1e9   : > { %1877 = vrcp.f32 %v835_v10 }
 0x1ea   : > { %1879 = vrcp.f32 %v834_v13 }
 0x1eb   : > { %930 = vrot.lane.b32.xlu0 %v911_v16, %s1926_s25 }
 0x1ec   : > { %1169 = vrot.lane.b32.xlu1 %v1007_v59, %s1930_s8 }
 0x1ef   : > { %v1874_v20 = vpop.eup %1873  ;;  %978 = vrot.lane.b32.xlu0 %v959_v21, %s1925_s24 }
 0x1f0   : > { %v1876_v23 = vpop.eup %1875  ;;  %v821_v24 = vadd.f32 2.0, %v1874_v20  ;;  %1217 = vrot.lane.b32.xlu1 %v912_v3, %s1931_s17 }
 0x1f1   : > { %v820_v25 = vadd.f32 2.0, %v1876_v23 }
 0x1f2   : > { %v829_v26 = vmul.f32 %v1874_v20, %v821_v24 }
 0x1f3   : > { %v1878_v29 = vpop.eup %1877  ;;  %v828_v30 = vmul.f32 %v1876_v23, %v820_v25  ;;  %1167 = vrot.lane.b32.xlu0 %v2293_v61, %s1930_s8 }
 0x1f4   : > { %v1880_v32 = vpop.eup %1879  ;;  %v849_v33 = vmul.f32 %v1878_v29, %v827_v6  ;;  %v837_v34 = vadd.f32 2.0, %v829_v26  ;;  %1265 = vrot.lane.b32.xlu1 %v1103_v11, %s1932_s9 }
 0x1f5   : > { %v847_v35 = vmul.f32 %v1880_v32, %v826_v7  ;;  %v836_v36 = vadd.f32 2.0, %v828_v30 }
 0x1f6   : > { %v859_v37 = vmul.f32 %v849_v33, %v2273_v40  ;;  %1881 = vrcp.f32 %v837_v34 }
 0x1f7   : > { %v858_v38 = vmul.f32 %v847_v35, %v2276_v43  ;;  %1883 = vrcp.f32 %v836_v36  ;;  %1215 = vrot.lane.b32.xlu0 %v911_v16, %s1931_s17 }
 0x1f8   : > { %889 = vst.msk [vmem:[#allocation3 + $0x61] sm:$0xff] %vm233_vm0, %v859_v37  ;;  %1024 = vrot.lane.b32.xlu1 %v2293_v61, %s1927_s26 }
 0x1f9   : > { %888 = vst.msk [vmem:[#allocation3 + $0x51] sm:$0xff] %vm233_vm0, %v858_v38 }
 0x1fb   : > { %1120 = vrot.lane.b32.xlu0 %v959_v21, %s1929_s28 }
 0x1fc   : > { %1072 = vrot.lane.b32.xlu1 %v911_v16, %s1928_s27 }
 0x1ff   : > { %v1009_v40 = vld [vmem:[#allocation3 + $0x60] sm:$0xff] }
 0x200   : > { %v1882_v41 = vpop.eup %1881  ;;  %1030 = vrot.lane.b32.xlu0 %v1009_v40, %s1927_s26  ;;  %1263 = vrot.lane.b32.xlu1 %v959_v21, %s1932_s9  ;;  %v1152_v42 = vld [vmem:[#allocation3 + $0x50] sm:$0xff]  ;;  %906 = vst.msk [vmem:[#allocation2 + $0x30] sm:$0xff] %vm233_vm0, %v1009_v40  ;;  %v914_v47 = vld [vmem:[#allocation3 + $0x61] sm:$0xff] }
 0x201   : > { %v1884_v43 = vpop.eup %1883  ;;  %v853_v44 = vmul.f32 %v1882_v41, %v829_v26  ;;  %905 = vst.msk [vmem:[#allocation2 + $0x28] sm:$0xff] %vm233_vm0, %v1152_v42  ;;  %v1105_v49 = vld [vmem:[#allocation3 + $0x62] sm:$0xff]  ;;  %v913_v50 = vld [vmem:[#allocation3 + $0x51] sm:$0xff] }
 0x202   : > { %v851_v45 = vmul.f32 %v1884_v43, %v828_v30  ;;  %v961_v53 = vld [vmem:[#allocation3 + $0x52] sm:$0xff] }
 0x203   : > { %v861_v46 = vmul.f32 %v853_v44, %v2286_v57 }
 0x204   : > { %v860_v48 = vmul.f32 %v851_v45, %v2289_v60  ;;  %936 = vrot.lane.b32.xlu0 %v914_v47, %s1926_s25  ;;  %1078 = vrot.lane.b32.xlu1 %v914_v47, %s1928_s27  ;;  %v2380_v60 = vpop.permute.xlu1 %1227 }
 0x205   : > { %891 = vst.msk [vmem:[#allocation3 + $0x81] sm:$0xff] %vm233_vm0, %v861_v46 }
 0x206   : > { %890 = vst.msk [vmem:[#allocation3 + $0x71] sm:$0xff] %vm233_vm0, %v860_v48 }
 0x208   : > { %1126 = vrot.lane.b32.xlu0 %v1105_v49, %s1929_s28  ;;  %984 = vrot.lane.b32.xlu1 %v1105_v49, %s1925_s24 }
 0x20c   : > { %934 = vrot.lane.b32.xlu0 %v913_v50, %s1926_s25  ;;  %1173 = vrot.lane.b32.xlu1 %v1009_v40, %s1930_s8  ;;  %v1011_v54 = vld [vmem:[#allocation3 + $0x80] sm:$0xff] }
 0x20d   : > { %v1010_v52 = vld [vmem:[#allocation3 + $0x70] sm:$0xff]  ;;  %v1059_v55 = vld [vmem:[#allocation3 + $0x81] sm:$0xff] }
 0x20e   : > { %907 = vst.msk [vmem:[#allocation2 + $0x38] sm:$0xff] %vm233_vm0, %v1010_v52  ;;  %v1107_v57 = vld [vmem:[#allocation3 + $0x82] sm:$0xff]  ;;  %v1058_v59 = vld [vmem:[#allocation3 + $0x71] sm:$0xff] }
 0x20f   : > { %v1106_v61 = vld [vmem:[#allocation3 + $0x72] sm:$0xff] }
 0x210   : > { %982 = vrot.lane.b32.xlu0 %v961_v53, %s1925_s24  ;;  %1221 = vrot.lane.b32.xlu1 %v914_v47, %s1931_s17 }
 0x214   : > { %1171 = vrot.lane.b32.xlu0 %v1152_v42, %s1930_s8  ;;  %1269 = vrot.lane.b32.xlu1 %v1105_v49, %s1932_s9 }
 0x218   : > { %1219 = vrot.lane.b32.xlu0 %v913_v50, %s1931_s17  ;;  %1028 = vrot.lane.b32.xlu1 %v1152_v42, %s1927_s26 }
 0x21c   : > { %1124 = vrot.lane.b32.xlu0 %v961_v53, %s1929_s28  ;;  %1076 = vrot.lane.b32.xlu1 %v913_v50, %s1928_s27 }
 0x220   : > { %1034 = vrot.lane.b32.xlu0 %v1011_v54, %s1927_s26  ;;  %1267 = vrot.lane.b32.xlu1 %v961_v53, %s1932_s9 }
 0x224   : > { %1082 = vrot.lane.b32.xlu0 %v1059_v55, %s1928_s27  ;;  %1130 = vrot.lane.b32.xlu1 %v1107_v57, %s1929_s28 }
 0x228   : > { %1177 = vrot.lane.b32.xlu0 %v1011_v54, %s1930_s8  ;;  %1032 = vrot.lane.b32.xlu1 %v1010_v52, %s1927_s26  ;;  %s2398_s26 = scalar_lea.vmem %s2574_s5, %s1835_s20 }
 0x229   : > { %1534 = vst.msk [vmem:[%s2398_s26] sm:$0xff] %vm233_vm0, %v1933_v51  ;;  %1538 = vst.msk [vmem:[%s2398_s26 + $0x20] sm:$0xff] %vm233_vm0, %v1933_v51 }
 0x22a   : > { %1535 = vst.msk [vmem:[%s2398_s26 + $0x8] sm:$0x3] %vm863_vm10, %v1933_v51  ;;  %1539 = vst.msk [vmem:[%s2398_s26 + $0x28] sm:$0x3] %vm863_vm10, %v1933_v51 }
 0x22b   : > { %1552 = vst.msk [vmem:[%s2398_s26 + $0x90] sm:$0xff] %vm233_vm0, %v1933_v51  ;;  %1536 = vst.msk [vmem:[%s2398_s26 + $0x10] sm:$0xff] %vm233_vm0, %v1933_v51 }
 0x22c   : > { %1225 = vrot.lane.b32.xlu0 %v1059_v55, %s1931_s17  ;;  %1080 = vrot.lane.b32.xlu1 %v1058_v59, %s1928_s27  ;;  %1553 = vst.msk [vmem:[%s2398_s26 + $0x98] sm:$0x3] %vm863_vm10, %v1933_v51  ;;  %1537 = vst.msk [vmem:[%s2398_s26 + $0x18] sm:$0x3] %vm863_vm10, %v1933_v51 }
 0x22d   : > { %1540 = vst.msk [vmem:[%s2398_s26 + $0x30] sm:$0xff] %vm233_vm0, %v1933_v51  ;;  %1542 = vst.msk [vmem:[%s2398_s26 + $0x40] sm:$0xff] %vm233_vm0, %v1933_v51 }
 0x22e   : > { %1541 = vst.msk [vmem:[%s2398_s26 + $0x38] sm:$0x3] %vm863_vm10, %v1933_v51  ;;  %1543 = vst.msk [vmem:[%s2398_s26 + $0x48] sm:$0x3] %vm863_vm10, %v1933_v51 }
 0x22f   : > { %1544 = vst.msk [vmem:[%s2398_s26 + $0x50] sm:$0xff] %vm233_vm0, %v1933_v51  ;;  %1546 = vst.msk [vmem:[%s2398_s26 + $0x60] sm:$0xff] %vm233_vm0, %v1933_v51 }
 0x230   : > { %938 = vrot.lane.b32.xlu0 %v1058_v59, %s1926_s25  ;;  %1128 = vrot.lane.b32.xlu1 %v1106_v61, %s1929_s28  ;;  %1545 = vst.msk [vmem:[%s2398_s26 + $0x58] sm:$0x3] %vm863_vm10, %v1933_v51  ;;  %1547 = vst.msk [vmem:[%s2398_s26 + $0x68] sm:$0x3] %vm863_vm10, %v1933_v51 }
 0x231   : > { %v1071_v63 = vpop.permute.xlu0 %1070  ;;  %1548 = vst.msk [vmem:[%s2398_s26 + $0x70] sm:$0xff] %vm233_vm0, %v1933_v51  ;;  %1550 = vst.msk [vmem:[%s2398_s26 + $0x80] sm:$0xff] %vm233_vm0, %v1933_v51 }
 0x232   : > { %v1023_v0 = vpop.permute.xlu1 %1022  ;;  %1549 = vst.msk [vmem:[%s2398_s26 + $0x78] sm:$0x3] %vm863_vm10, %v1933_v51  ;;  %1551 = vst.msk [vmem:[%s2398_s26 + $0x88] sm:$0x3] %vm863_vm10, %v1933_v51 }
 0x234   : > { %986 = vrot.lane.b32.xlu0 %v1106_v61, %s1925_s24  ;;  %1275 = vrot.lane.b32.xlu1 %v1252_v62, %s1932_s9 }
 0x235   : > { %v1119_v1 = vpop.permute.xlu0 %1118 }
 0x236   : > { %v929_v2 = vpop.permute.xlu1 %928 }
 0x237   : > { %950 = vst.msk [vmem:[#allocation2 + $0x10] sm:$0xff] %vm282_vm1, %v929_v2 }
 0x238   : > { %1175 = vrot.lane.b32.xlu0 %v1010_v52, %s1930_s8 }
 0x239   : > { %v1021_v3 = vpop.permute.xlu0 %1020 }
 0x23a   : > { %v977_v56 = vpop.permute.xlu1 %976  ;;  %1044 = vst.msk [vmem:[#allocation2] sm:$0xff] %vm381_vm3, %v1021_v3 }
 0x23b   : > { %998 = vst.msk [vmem:[#allocation2 + $0x10] sm:$0xff] %vm331_vm2, %v977_v56 }
 0x23c   : > { %1223 = vrot.lane.b32.xlu0 %v1058_v59, %s1931_s17 }
 0x23d   : > { %v1069_v5 = vpop.permute.xlu0 %1068 }
 0x23e   : > { %v1166_v4 = vpop.permute.xlu1 %1165  ;;  %1092 = vst.msk [vmem:[#allocation2] sm:$0xff] %vm430_vm4, %v1069_v5 }
 0x240   : > { %1271 = vrot.lane.b32.xlu0 %v1106_v61, %s1932_s9 }
 0x242   : > { %v1214_v6 = vpop.permute.xlu1 %1213 }
 0x244   : > { %1273 = vrot.lane.b32.xlu0 %v1107_v57, %s1932_s9 }
 0x246   : > { %v1262_v7 = vpop.permute.xlu1 %1261 }
 0x24a   : > { %v927_v8 = vpop.permute.xlu1 %926 }
 0x24b   : > { %949 = vst.msk [vmem:[#allocation2 + $0x8] sm:$0xff] %vm282_vm1, %v927_v8 }
 0x24e   : > { %v975_v9 = vpop.permute.xlu1 %974 }
 0x24f   : > { %997 = vst.msk [vmem:[#allocation2 + $0x8] sm:$0xff] %vm331_vm2, %v975_v9 }
 0x250   : > { %1045 = vst.msk [vmem:[#allocation2 + $0x8] sm:$0xff] %vm381_vm3, %v1023_v0 }
 0x251   : > { %1093 = vst.msk [vmem:[#allocation2 + $0x8] sm:$0xff] %vm430_vm4, %v1071_v63  ;;  %v1027_v10 = vpop.permute.xlu0 %1026 }
 0x252   : > { %1141 = vst.msk [vmem:[#allocation2 + $0x8] sm:$0xff] %vm479_vm5, %v1119_v1  ;;  %v1117_v11 = vpop.permute.xlu1 %1116 }
 0x253   : > { %1140 = vst.msk [vmem:[#allocation2] sm:$0xff] %vm479_vm5, %v1117_v11 }
 0x254   : > { %1189 = vst.msk [vmem:[#allocation2] sm:$0xff] %vm529_vm6, %v1166_v4 }
 0x255   : > { %1237 = vst.msk [vmem:[#allocation2] sm:$0xff] %vm578_vm7, %v1214_v6  ;;  %v933_v51 = vpop.permute.xlu0 %932 }
 0x256   : > { %1285 = vst.msk [vmem:[#allocation2] sm:$0xff] %vm627_vm8, %v1262_v7  ;;  %v1075_v12 = vpop.permute.xlu1 %1074 }
 0x257   : > { %952 = vst.msk [vmem:[#allocation2 + $0x20] sm:$0xff] %vm282_vm1, %v933_v51 }
 0x259   : > { %v1123_v13 = vpop.permute.xlu0 %1122 }
 0x25a   : > { %v981_v14 = vpop.permute.xlu1 %980 }
 0x25b   : > { %1000 = vst.msk [vmem:[#allocation2 + $0x20] sm:$0xff] %vm331_vm2, %v981_v14 }
 0x25d   : > { %v1293_v15 = vld [vmem:[#allocation2] sm:$0xff]  ;;  %v931_v16 = vpop.permute.xlu0 %930 }
 0x25e   : > { %1791 = vmatprep.mubr.msk.f32.mxu1 %vm660_vm9, %v1293_v15  ;;  %v1170_v17 = vpop.permute.xlu1 %1169  ;;  %951 = vst.msk [vmem:[#allocation2 + $0x18] sm:$0xff] %vm282_vm1, %v931_v16 }
 0x261   : > { %v979_v18 = vpop.permute.xlu0 %978 }
 0x262   : > { %v1218_v19 = vpop.permute.xlu1 %1217  ;;  %999 = vst.msk [vmem:[#allocation2 + $0x18] sm:$0xff] %vm331_vm2, %v979_v18 }
 0x263   : > { %1047 = vst.msk [vmem:[#allocation2 + $0x18] sm:$0xff] %vm381_vm3, %v1027_v10 }
 0x264   : > { %1095 = vst.msk [vmem:[#allocation2 + $0x18] sm:$0xff] %vm430_vm4, %v1075_v12 }
 0x265   : > { %1143 = vst.msk [vmem:[#allocation2 + $0x18] sm:$0xff] %vm479_vm5, %v1123_v13  ;;  %v1168_v20 = vpop.permute.xlu0 %1167 }
 0x266   : > { %v1266_v21 = vpop.permute.xlu1 %1265  ;;  %1190 = vst.msk [vmem:[#allocation2 + $0x8] sm:$0xff] %vm529_vm6, %v1168_v20 }
 0x269   : > { %v1216_v22 = vpop.permute.xlu0 %1215 }
 0x26a   : > { %v1025_v23 = vpop.permute.xlu1 %1024  ;;  %1238 = vst.msk [vmem:[#allocation2 + $0x8] sm:$0xff] %vm578_vm7, %v1216_v22 }
 0x26b   : > { %1046 = vst.msk [vmem:[#allocation2 + $0x10] sm:$0xff] %vm381_vm3, %v1025_v23 }
 0x26d   : > { %v1121_v24 = vpop.permute.xlu0 %1120 }
 0x26e   : > { %v1073_v25 = vpop.permute.xlu1 %1072 }
 0x26f   : > { %1094 = vst.msk [vmem:[#allocation2 + $0x10] sm:$0xff] %vm430_vm4, %v1073_v25 }
 0x270   : > { %1142 = vst.msk [vmem:[#allocation2 + $0x10] sm:$0xff] %vm479_vm5, %v1121_v24 }
 0x271   : > { %1191 = vst.msk [vmem:[#allocation2 + $0x10] sm:$0xff] %vm529_vm6, %v1170_v17 }
 0x272   : > { %1239 = vst.msk [vmem:[#allocation2 + $0x10] sm:$0xff] %vm578_vm7, %v1218_v19  ;;  %v1031_v26 = vpop.permute.xlu0 %1030  ;;  %v1264_v27 = vpop.permute.xlu1 %1263 }
 0x273   : > { %1287 = vst.msk [vmem:[#allocation2 + $0x10] sm:$0xff] %vm627_vm8, %v1266_v21  ;;  %1286 = vst.msk [vmem:[#allocation2 + $0x8] sm:$0xff] %vm627_vm8, %v1264_v27 }
 0x276   : > { %v937_v28 = vpop.permute.xlu0 %936  ;;  %v1079_v29 = vpop.permute.xlu1 %1078 }
 0x277   : > { %954 = vst.msk [vmem:[#allocation2 + $0x30] sm:$0xff] %vm282_vm1, %v937_v28 }
 0x27a   : > { %v1127_v30 = vpop.permute.xlu0 %1126  ;;  %v985_v31 = vpop.permute.xlu1 %984  ;;  %v1294_v32 = vld [vmem:[#allocation2 + $0x8] sm:$0xff]  ;;  %v1295_v33 = vld [vmem:[#allocation2 + $0x10] sm:$0xff] }
 0x27b   : > { %1002 = vst.msk [vmem:[#allocation2 + $0x30] sm:$0xff] %vm331_vm2, %v985_v31  ;;  %1792 = vmatmul.mubr.msk.f32.vlgmr.msra.gmra.mrb[0].mxu1 %vm660_vm9, %v1294_v32 }
 0x27c   : > { %1794 = vmatprep.mubr.msk.f32.mxu1 %vm660_vm9, %v1295_v33 }
 0x27e   : > { %v935_v34 = vpop.permute.xlu0 %934  ;;  %v1174_v35 = vpop.permute.xlu1 %1173 }
 0x27f   : > { %953 = vst.msk [vmem:[#allocation2 + $0x28] sm:$0xff] %vm282_vm1, %v935_v34 }
 0x282   : > { %v983_v36 = vpop.permute.xlu0 %982  ;;  %v1222_v37 = vpop.permute.xlu1 %1221 }
 0x283   : > { %1001 = vst.msk [vmem:[#allocation2 + $0x28] sm:$0xff] %vm331_vm2, %v983_v36 }
 0x284   : > { %1049 = vst.msk [vmem:[#allocation2 + $0x28] sm:$0xff] %vm381_vm3, %v1031_v26  ;;  %v1692_v26 = vld [vmem:[%s1980_s23 + $0x21] sm:$0xff] }
 0x285   : > { %1097 = vst.msk [vmem:[#allocation2 + $0x28] sm:$0xff] %vm430_vm4, %v1079_v29 }
 0x286   : > { %1145 = vst.msk [vmem:[#allocation2 + $0x28] sm:$0xff] %vm479_vm5, %v1127_v30  ;;  %v1172_v38 = vpop.permute.xlu0 %1171  ;;  %v1270_v39 = vpop.permute.xlu1 %1269  ;;  %v1691_v30 = vld [vmem:[%s1980_s23 + $0x11] sm:$0xff] }
 0x287   : > { %1192 = vst.msk [vmem:[#allocation2 + $0x18] sm:$0xff] %vm529_vm6, %v1172_v38 }
 0x28a   : > { %v1220_v40 = vpop.permute.xlu0 %1219  ;;  %v1029_v41 = vpop.permute.xlu1 %1028 }
 0x28b   : > { %1240 = vst.msk [vmem:[#allocation2 + $0x18] sm:$0xff] %vm578_vm7, %v1220_v40 }
 0x28c   : > { %1048 = vst.msk [vmem:[#allocation2 + $0x20] sm:$0xff] %vm381_vm3, %v1029_v41 }
 0x28e   : > { %v1125_v42 = vpop.permute.xlu0 %1124  ;;  %v1077_v43 = vpop.permute.xlu1 %1076 }
 0x28f   : > { %1096 = vst.msk [vmem:[#allocation2 + $0x20] sm:$0xff] %vm430_vm4, %v1077_v43 }
 0x290   : > { %1144 = vst.msk [vmem:[#allocation2 + $0x20] sm:$0xff] %vm479_vm5, %v1125_v42 }
 0x291   : > { %1193 = vst.msk [vmem:[#allocation2 + $0x20] sm:$0xff] %vm529_vm6, %v1174_v35 }
 0x292   : > { %1241 = vst.msk [vmem:[#allocation2 + $0x20] sm:$0xff] %vm578_vm7, %v1222_v37  ;;  %v1035_v44 = vpop.permute.xlu0 %1034  ;;  %v1268_v45 = vpop.permute.xlu1 %1267 }
 0x293   : > { %1289 = vst.msk [vmem:[#allocation2 + $0x20] sm:$0xff] %vm627_vm8, %v1270_v39  ;;  %1288 = vst.msk [vmem:[#allocation2 + $0x18] sm:$0xff] %vm627_vm8, %v1268_v45 }
 0x296   : > { %v1083_v46 = vpop.permute.xlu0 %1082  ;;  %v1131_v47 = vpop.permute.xlu1 %1130 }
 0x29a   : > { %v1178_v48 = vpop.permute.xlu0 %1177  ;;  %v1033_v49 = vpop.permute.xlu1 %1032  ;;  %v1296_v50 = vld [vmem:[#allocation2 + $0x18] sm:$0xff]  ;;  %v1297_v52 = vld [vmem:[#allocation2 + $0x20] sm:$0xff] }
 0x29b   : > { %1050 = vst.msk [vmem:[#allocation2 + $0x30] sm:$0xff] %vm381_vm3, %v1033_v49  ;;  %1795 = vmatmul.mubr.msk.f32.gmra.mrb[2].mxu1 %vm660_vm9, %v1296_v50 }
 0x29c   : > { %1797 = vmatprep.mubr.msk.f32.mxu1 %vm660_vm9, %v1297_v52 }
 0x29e   : > { %v1226_v53 = vpop.permute.xlu0 %1225  ;;  %v1081_v54 = vpop.permute.xlu1 %1080 }
 0x29f   : > { %1098 = vst.msk [vmem:[#allocation2 + $0x30] sm:$0xff] %vm430_vm4, %v1081_v54 }
 0x2a2   : > { %v939_v55 = vpop.permute.xlu0 %938  ;;  %v1129_v57 = vpop.permute.xlu1 %1128 }
 0x2a3   : > { %955 = vst.msk [vmem:[#allocation2 + $0x38] sm:$0xff] %vm282_vm1, %v939_v55 }
 0x2a4   : > { %1146 = vst.msk [vmem:[#allocation2 + $0x30] sm:$0xff] %vm479_vm5, %v1129_v57 }
 0x2a5   : > { %1195 = vst.msk [vmem:[#allocation2 + $0x30] sm:$0xff] %vm529_vm6, %v1178_v48 }
 0x2a6   : > { %1243 = vst.msk [vmem:[#allocation2 + $0x30] sm:$0xff] %vm578_vm7, %v1226_v53  ;;  %v987_v59 = vpop.permute.xlu0 %986  ;;  %v1276_v62 = vpop.permute.xlu1 %1275  ;;  %v1694_v53 = vld [vmem:[%s1980_s23 + $0x41] sm:$0xff] }
 0x2a7   : > { %1003 = vst.msk [vmem:[#allocation2 + $0x38] sm:$0xff] %vm331_vm2, %v987_v59  ;;  %v1693_v59 = vld [vmem:[%s1980_s23 + $0x31] sm:$0xff] }
 0x2a8   : > { %1051 = vst.msk [vmem:[#allocation2 + $0x38] sm:$0xff] %vm381_vm3, %v1035_v44 }
 0x2a9   : > { %1099 = vst.msk [vmem:[#allocation2 + $0x38] sm:$0xff] %vm430_vm4, %v1083_v46 }
 0x2aa   : > { %1147 = vst.msk [vmem:[#allocation2 + $0x38] sm:$0xff] %vm479_vm5, %v1131_v47  ;;  %v1176_v61 = vpop.permute.xlu0 %1175 }
 0x2ab   : > { %1194 = vst.msk [vmem:[#allocation2 + $0x28] sm:$0xff] %vm529_vm6, %v1176_v61  ;;  %1196 = vst.msk [vmem:[#allocation2 + $0x38] sm:$0xff] %vm529_vm6, %v2374_v58  ;;  %v2532_v58 = vld [vmem:[%s2573_s4] ss:$0 sm:$0xff] }
 0x2ac   : > { %1244 = vst.msk [vmem:[#allocation2 + $0x38] sm:$0xff] %vm578_vm7, %v2380_v60 }
 0x2ad   : > { %1292 = vst.msk [vmem:[#allocation2 + $0x38] sm:$0xff] %vm627_vm8, %v1276_v62 }
 0x2ae   : > { %v1224_v63 = vpop.permute.xlu0 %1223 }
 0x2af   : > { %1242 = vst.msk [vmem:[#allocation2 + $0x28] sm:$0xff] %vm578_vm7, %v1224_v63 }
 0x2b2   : > { %v1272_v0 = vpop.permute.xlu0 %1271 }
 0x2b3   : > { %1290 = vst.msk [vmem:[#allocation2 + $0x28] sm:$0xff] %vm627_vm8, %v1272_v0 }
 0x2b4   : > { %v1300_v56 = vld [vmem:[#allocation2 + $0x38] sm:$0xff] }
 0x2b6   : > { %v1274_v1 = vpop.permute.xlu0 %1273 }
 0x2b7   : > { %1291 = vst.msk [vmem:[#allocation2 + $0x30] sm:$0xff] %vm627_vm8, %v1274_v1 }
 0x2ba   : > { %v1298_v2 = vld [vmem:[#allocation2 + $0x28] sm:$0xff] }
 0x2bb   : > { %1798 = vmatmul.mubr.msk.f32.gmra.mrb[4].mxu1 %vm660_vm9, %v1298_v2 }
 0x2be   : > { %v1299_v3 = vld [vmem:[#allocation2 + $0x30] sm:$0xff] }
 0x2bf   : > { %1800 = vmatprep.mubr.msk.f32.mxu1 %vm660_vm9, %v1299_v3 }
 0x2c0   : > { %1801 = vmatmul.mubr.msk.f32.gmra.mrb[6].mxu1 %vm660_vm9, %v1300_v56 }
 0x34e   : > { %v1793_v60 = vpop.f32.mrb[0].mxu1 }
 0x34f   : > { %v1413_v4 = vadd.f32 %v1793_v60, %v2532_v58  ;;  %v1407_v5 = vpop.f32.mrb[1].mxu1 }
 0x350   : > { %v1408_v6 = vadd.f32 %v2532_v58, %v1407_v5 }
 0x351   : > { %v1447_v7 = vmin.f32 %v1413_v4, 20.0 }
 0x352   : > { %v1446_v8 = vmin.f32 %v1408_v6, 20.0 }
 0x353   : > { %v1456_v9 = vmul.f32 1.442695, %v1447_v7 }
 0x354   : > { %v1454_v10 = vmul.f32 1.442695, %v1446_v8 }
 0x355   : > { %1885 = vpow2.f32 %v1456_v9 }
 0x356   : > { %1887 = vpow2.f32 %v1454_v10 }
 0x35f   : > { %v1886_v11 = vpop.eup %1885 }
 0x360   : > { %v1888_v51 = vpop.eup %1887  ;;  %v1471_v12 = vadd.f32 2.0, %v1886_v11 }
 0x361   : > { %v1470_v13 = vadd.f32 2.0, %v1888_v51 }
 0x362   : > { %v1479_v14 = vmul.f32 %v1886_v11, %v1471_v12 }
 0x363   : > { %v1478_v15 = vmul.f32 %v1888_v51, %v1470_v13 }
 0x364   : > { %v1487_v16 = vadd.f32 2.0, %v1479_v14 }
 0x365   : > { %v1486_v17 = vadd.f32 2.0, %v1478_v15 }
 0x366   : > { %1889 = vrcp.f32 %v1487_v16 }
 0x367   : > { %1891 = vrcp.f32 %v1486_v17 }
 0x36e   : > { %v1796_v18 = vpop.f32.mrb[2].mxu1 }
 0x36f   : > { %v1423_v19 = vadd.f32 %v1796_v18, %v2532_v58  ;;  %v1417_v20 = vpop.f32.mrb[3].mxu1 }
 0x370   : > { %v1890_v21 = vpop.eup %1889  ;;  %v1418_v22 = vadd.f32 %v2532_v58, %v1417_v20 }
 0x371   : > { %v1892_v23 = vpop.eup %1891  ;;  %v1497_v24 = vmul.f32 %v1890_v21, %v1479_v14  ;;  %v1449_v25 = vmin.f32 %v1423_v19, 20.0 }
 0x372   : > { %v1495_v27 = vmul.f32 %v1892_v23, %v1478_v15  ;;  %v1448_v28 = vmin.f32 %v1418_v22, 20.0 }
 0x373   : > { %v1511_v29 = vmul.f32 %v1497_v24, %v1413_v4  ;;  %v1460_v31 = vmul.f32 1.442695, %v1449_v25  ;;  %v1696_v25 = vld [vmem:[%s1980_s23 + $0x61] sm:$0xff] }
 0x374   : > { %v1510_v32 = vmul.f32 %v1495_v27, %v1408_v6  ;;  %v1458_v33 = vmul.f32 1.442695, %v1448_v28  ;;  %v1695_v28 = vld [vmem:[%s1980_s23 + $0x51] sm:$0xff] }
 0x375   : > { %v1527_v34 = vadd.f32 %v1692_v26, %v1511_v29  ;;  %1893 = vpow2.f32 %v1460_v31 }
 0x376   : > { %v1526_v35 = vadd.f32 %v1691_v30, %v1510_v32  ;;  %1895 = vpow2.f32 %v1458_v33 }
 0x377   : > { %1700 = vst.msk [vmem:[%s2398_s26 + $0x21] sm:$0xff] %vm233_vm0, %v1527_v34 }
 0x378   : > { %1699 = vst.msk [vmem:[%s2398_s26 + $0x11] sm:$0xff] %vm233_vm0, %v1526_v35  ;;  %v1698_v35 = vld [vmem:[%s1980_s23 + $0x81] sm:$0xff] }
 0x37f   : > { %v1894_v36 = vpop.eup %1893 }
 0x380   : > { %v1896_v37 = vpop.eup %1895  ;;  %v1473_v38 = vadd.f32 2.0, %v1894_v36 }
 0x381   : > { %v1472_v39 = vadd.f32 2.0, %v1896_v37 }
 0x382   : > { %v1481_v40 = vmul.f32 %v1894_v36, %v1473_v38  ;;  %v1697_v38 = vld [vmem:[%s1980_s23 + $0x71] sm:$0xff] }
 0x383   : > { %v1480_v41 = vmul.f32 %v1896_v37, %v1472_v39 }
 0x384   : > { %v1489_v42 = vadd.f32 2.0, %v1481_v40 }
 0x385   : > { %v1488_v43 = vadd.f32 2.0, %v1480_v41 }
 0x386   : > { %1897 = vrcp.f32 %v1489_v42 }
 0x387   : > { %1899 = vrcp.f32 %v1488_v43 }
 0x38e   : > { %v1799_v44 = vpop.f32.mrb[4].mxu1 }
 0x38f   : > { %v1433_v45 = vadd.f32 %v1799_v44, %v2532_v58  ;;  %v1427_v46 = vpop.f32.mrb[5].mxu1 }
 0x390   : > { %v1898_v47 = vpop.eup %1897  ;;  %v1428_v48 = vadd.f32 %v2532_v58, %v1427_v46 }
 0x391   : > { %v1900_v49 = vpop.eup %1899  ;;  %v1501_v50 = vmul.f32 %v1898_v47, %v1481_v40  ;;  %v1451_v52 = vmin.f32 %v1433_v45, 20.0 }
 0x392   : > { %v1499_v54 = vmul.f32 %v1900_v49, %v1480_v41  ;;  %v1450_v55 = vmin.f32 %v1428_v48, 20.0 }
 0x393   : > { %v1513_v57 = vmul.f32 %v1501_v50, %v1423_v19  ;;  %v1464_v61 = vmul.f32 1.442695, %v1451_v52  ;;  %v1802_v62 = vpop.f32.mrb[6].mxu1 }
 0x394   : > { %v1512_v63 = vmul.f32 %v1499_v54, %v1418_v22  ;;  %v1462_v0 = vmul.f32 1.442695, %v1450_v55  ;;  %v1443_v1 = vadd.f32 %v1802_v62, %v2532_v58  ;;  %v1437_v2 = vpop.f32.mrb[7].mxu1 }
 0x395   : > { %v1529_v56 = vadd.f32 %v1694_v53, %v1513_v57  ;;  %1901 = vpow2.f32 %v1464_v61  ;;  %v1438_v3 = vadd.f32 %v2532_v58, %v1437_v2 }
 0x396   : > { %v1528_v60 = vadd.f32 %v1693_v59, %v1512_v63  ;;  %1903 = vpow2.f32 %v1462_v0  ;;  %v1453_v4 = vmin.f32 %v1443_v1, 20.0 }
 0x397   : > { %1702 = vst.msk [vmem:[%s2398_s26 + $0x41] sm:$0xff] %vm233_vm0, %v1529_v56  ;;  %v1452_v5 = vmin.f32 %v1438_v3, 20.0 }
 0x398   : > { %1701 = vst.msk [vmem:[%s2398_s26 + $0x31] sm:$0xff] %vm233_vm0, %v1528_v60  ;;  %v1468_v6 = vmul.f32 1.442695, %v1453_v4 }
 0x399   : > { %v1466_v7 = vmul.f32 1.442695, %v1452_v5 }
 0x39a   : > { %1905 = vpow2.f32 %v1468_v6 }
 0x39b   : > { %1907 = vpow2.f32 %v1466_v7 }
 0x39f   : > { %v1902_v8 = vpop.eup %1901 }
 0x3a0   : > { %v1904_v9 = vpop.eup %1903  ;;  %v1475_v10 = vadd.f32 2.0, %v1902_v8 }
 0x3a1   : > { %v1474_v11 = vadd.f32 2.0, %v1904_v9 }
 0x3a2   : > { %v1483_v51 = vmul.f32 %v1902_v8, %v1475_v10 }
 0x3a3   : > { %v1482_v12 = vmul.f32 %v1904_v9, %v1474_v11 }
 0x3a4   : > { %v1906_v13 = vpop.eup %1905  ;;  %v1491_v58 = vadd.f32 2.0, %v1483_v51 }
 0x3a5   : > { %v1908_v14 = vpop.eup %1907  ;;  %v1490_v15 = vadd.f32 2.0, %v1482_v12  ;;  %v1477_v16 = vadd.f32 2.0, %v1906_v13 }
 0x3a6   : > { %1909 = vrcp.f32 %v1491_v58  ;;  %v1476_v17 = vadd.f32 2.0, %v1908_v14 }
 0x3a7   : > { %1911 = vrcp.f32 %v1490_v15  ;;  %v1485_v18 = vmul.f32 %v1906_v13, %v1477_v16 }
 0x3a8   : > { %v1484_v19 = vmul.f32 %v1908_v14, %v1476_v17 }
 0x3a9   : > { %v1493_v20 = vadd.f32 2.0, %v1485_v18 }
 0x3aa   : > { %v1492_v21 = vadd.f32 2.0, %v1484_v19 }
 0x3ab   : > { %1913 = vrcp.f32 %v1493_v20 }
 0x3ac   : > { %1915 = vrcp.f32 %v1492_v21 }
 0x3b0   : > { %v1910_v22 = vpop.eup %1909 }
 0x3b1   : > { %v1912_v23 = vpop.eup %1911  ;;  %v1505_v24 = vmul.f32 %v1910_v22, %v1483_v51 }
 0x3b2   : > { %v1503_v26 = vmul.f32 %v1912_v23, %v1482_v12 }
 0x3b3   : > { %v1515_v27 = vmul.f32 %v1505_v24, %v1433_v45 }
 0x3b4   : > { %v1514_v29 = vmul.f32 %v1503_v26, %v1428_v48 }
 0x3b5   : > { %v1914_v30 = vpop.eup %1913  ;;  %v1531_v31 = vadd.f32 %v1696_v25, %v1515_v27 }
 0x3b6   : > { %v1916_v32 = vpop.eup %1915  ;;  %v1530_v33 = vadd.f32 %v1695_v28, %v1514_v29  ;;  %v1509_v34 = vmul.f32 %v1914_v30, %v1485_v18 }
 0x3b7   : > { %1704 = vst.msk [vmem:[%s2398_s26 + $0x61] sm:$0xff] %vm233_vm0, %v1531_v31  ;;  %v1507_v36 = vmul.f32 %v1916_v32, %v1484_v19 }
 0x3b8   : > { %1703 = vst.msk [vmem:[%s2398_s26 + $0x51] sm:$0xff] %vm233_vm0, %v1530_v33  ;;  %v1517_v37 = vmul.f32 %v1509_v34, %v1443_v1 }
 0x3b9   : > { %v1516_v39 = vmul.f32 %v1507_v36, %v1438_v3 }
 0x3ba   : > { %v1533_v40 = vadd.f32 %v1698_v35, %v1517_v37 }
 0x3bb   : > { %v1532_v41 = vadd.f32 %v1697_v38, %v1516_v39 }
 0x3bc   : > { %1706 = vst.msk [vmem:[%s2398_s26 + $0x81] sm:$0xff] %vm233_vm0, %v1533_v40 }
 0x3bd   : > { %1705 = vst.msk [vmem:[%s2398_s26 + $0x71] sm:$0xff] %vm233_vm0, %v1532_v41 }
 0x3be PF: > { %s15_s18 = sadd.s32 1, %s1923_s18  }
 0x3bf   : > { %p12_p4 = scmp.ge.s32.totalorder %s15_s18, 4  }
 0x3c1   :  { %14 = sbr.rel (!%p12_p4) target bundleno = 1 (0x1), region = 75 }

// kernel: impala_block.3
= control target key start
LH: loop header
LB: loop body
LE: loop exit
PB: predicated region body
PF: predicated region fallthrough
CT: control target
= control target key end

     0   :  { %s3403_s12 = smov 0   ;;  %s4748_s0 = inlined_call_operand.vmem [shape: f32[2,18,18,4], index: 0, kind: input, shape index: {}]   ;;  %s4749_s1 = inlined_call_operand.vmem [shape: f32[36,8], index: 1, kind: input, shape index: {}]   ;;  %s4750_s2 = inlined_call_operand.vmem [shape: f32[1,8], index: 2, kind: input, shape index: {}]   ;;  %s4751_s3 = inlined_call_operand.vmem [shape: f32[2,8,16,8], index: 3, kind: output, shape index: {}]  }
   0x1 LB: > { %s2873_s13 = sadd.s32 4294967295, %s3372_s12   ;;  %p2877_p0 = scmp.ge.s32.totalorder %s3372_s12, 1  ;;  %s3372_s12 = sphi %s3403_s12, %s13_s12  }
   0x2   : > { %p137_p1 = scmp.lt.s32.totalorder %s3372_s12, 3 }
   0x4   : > { %p138_p2 = pnand %p2877_p0, %p137_p1 }
   0x6   : > { %141 = sbr.rel (%p138_p2) target bundleno = 919 (0x397), region = 32 }
   0xd   : > { %p161_p3 = scmp.lt.s32.totalorder %s2873_s13, 1  ;;  %s3374_s18 = smov 4   ;;  %vm203_vm0 = vcmask 31744   ;;  %vm396_vm1 = vcmask 64544   ;;  %vm1923_vm2 = vcmask 1043456   ;;  %vm589_vm3 = vcmask 97344  }
   0xe   : > { %s3375_s19 = smov 8   ;;  %s3376_s20 = smov 12   ;;  %vm783_vm4 = vcmask 130144   ;;  %vm976_vm5 = vcmask 162944   ;;  %vm1169_vm6 = vcmask 195744   ;;  %vm1363_vm7 = vcmask 228544  }
   0xf   : > { %s4764_s13 = smov (!%p161_p3, %s2873_s13), 1  ;;  %s3377_s21 = smov 16   ;;  %vm1556_vm8 = vcmask 261344   ;;  %vm1749_vm9 = vcmask 294144   ;;  %vm1826_vm10 = vcmask 293888   ;;  %vm2440_vm11 = vcmask 64512  }
  0x10   : > { %s3219_s14 = smul.u32 432, %s4764_s13  ;;  %s3378_s22 = smov 20   ;;  %vm2443_vm12 = vcmask 58368  }
  0x11   : > { %s3379_s27 = smov 24   ;;  %s3380_s5 = smov 28  }
  0x12   : > { %s3417_s17 = scalar_lea.vmem %s4748_s0, %s3219_s14  ;;  %s3381_s8 = smov 32  }
  0x13   : > { %v3420_v0 = vld [vmem:[%s3417_s17 + $0x19] sm:$0xff]  ;;  %v236_v1 = vld [vmem:[%s3417_s17 + $0x1] sm:$0xff]  ;;  %v237_v3 = vld [vmem:[%s3417_s17 + $0x9] sm:$0xff]  ;;  %s3109_s11 = sshll.u32 %s4764_s13, 7 }
  0x14   : > { %304 = vrot.lane.b32.xlu1 %v3420_v0, %s3374_s18  ;;  %300 = vrot.lane.b32.xlu0 %v236_v1, %s3374_s18  ;;  %v3427_v2 = vld [vmem:[%s3417_s17 + $0x21] sm:$0xff]  ;;  %v3434_v4 = vld [vmem:[%s3417_s17 + $0x39] sm:$0xff]  ;;  %s4509_s15 = scalar_lea.vmem %s4751_s3, %s3109_s11 }
  0x15   : > { %v3437_v5 = vld [vmem:[%s3417_s17 + $0x31] sm:$0xff]  ;;  %v3447_v7 = vld [vmem:[%s3417_s17 + $0x49] sm:$0xff]  ;;  %v3457_v9 = vld [vmem:[%s3417_s17 + $0x61] sm:$0xff] }
  0x16   : > { %v3444_v6 = vld [vmem:[%s3417_s17 + $0x51] sm:$0xff]  ;;  %v3454_v8 = vld [vmem:[%s3417_s17 + $0x69] sm:$0xff]  ;;  %v3464_v10 = vld [vmem:[%s3417_s17 + $0x81] sm:$0xff] }
  0x17   : > { %v3467_v11 = vld [vmem:[%s3417_s17 + $0x79] sm:$0xff]  ;;  %v248_v15 = vld [vmem:[%s3417_s17 + $0x91] sm:$0xff]  ;;  %v172_v17 = vld [vmem:[%s3417_s17 + $0x8] sm:$0xff] }
  0x18   : > { %306 = vrot.lane.b32.xlu1 %v3427_v2, %s3374_s18  ;;  %302 = vrot.lane.b32.xlu0 %v237_v3, %s3374_s18  ;;  %v3474_v12 = vld [vmem:[%s3417_s17 + $0x18] sm:$0xff]  ;;  %v171_v13 = vld [vmem:[%s3417_s17] sm:$0xff]  ;;  %205 = vst.msk [vmem:[#allocation2 + $0x8] sm:$0xff] %vm203_vm0, %v172_v17 }
  0x19   : > { %v249_v14 = vld [vmem:[%s3417_s17 + $0x99] sm:$0xff]  ;;  %206 = vst.msk [vmem:[#allocation2 + $0x10] sm:$0xff] %vm203_vm0, %v3474_v12  ;;  %204 = vst.msk [vmem:[#allocation2] sm:$0xff] %vm203_vm0, %v171_v13  ;;  %v251_v18 = vld [vmem:[%s3417_s17 + $0xb1] sm:$0xff] }
  0x1a   : > { %v3483_v16 = vld [vmem:[%s3417_s17 + $0x20] sm:$0xff]  ;;  %v3491_v19 = vld [vmem:[%s3417_s17 + $0x38] sm:$0xff]  ;;  %v3494_v20 = vld [vmem:[%s3417_s17 + $0x30] sm:$0xff] }
  0x1b   : > { %207 = vst.msk [vmem:[#allocation2 + $0x18] sm:$0xff] %vm203_vm0, %v3483_v16  ;;  %v250_v21 = vld [vmem:[%s3417_s17 + $0xa9] sm:$0xff]  ;;  %209 = vst.msk [vmem:[#allocation2 + $0x28] sm:$0xff] %vm203_vm0, %v3491_v19  ;;  %v3515_v25 = vld [vmem:[%s3417_s17 + $0x60] sm:$0xff] }
  0x1c   : > { %310 = vrot.lane.b32.xlu1 %v3434_v4, %s3374_s18  ;;  %308 = vrot.lane.b32.xlu0 %v3437_v5, %s3374_s18  ;;  %208 = vst.msk [vmem:[#allocation2 + $0x20] sm:$0xff] %vm203_vm0, %v3494_v20  ;;  %v3504_v22 = vld [vmem:[%s3417_s17 + $0x50] sm:$0xff]  ;;  %v3509_v23 = vld [vmem:[%s3417_s17 + $0x48] sm:$0xff]  ;;  %212 = vst.msk [vmem:[#allocation2 + $0x40] sm:$0xff] %vm203_vm0, %v3515_v25 }
  0x1d   : > { %211 = vst.msk [vmem:[#allocation2 + $0x38] sm:$0xff] %vm203_vm0, %v3504_v22  ;;  %v3512_v24 = vld [vmem:[%s3417_s17 + $0x68] sm:$0xff]  ;;  %210 = vst.msk [vmem:[#allocation2 + $0x30] sm:$0xff] %vm203_vm0, %v3509_v23  ;;  %v3524_v26 = vld [vmem:[%s3417_s17 + $0x80] sm:$0xff] }
  0x1e   : > { %213 = vst.msk [vmem:[#allocation2 + $0x48] sm:$0xff] %vm203_vm0, %v3512_v24  ;;  %v3527_v27 = vld [vmem:[%s3417_s17 + $0x78] sm:$0xff]  ;;  %v253_v29 = vld [vmem:[%s3417_s17 + $0xc9] sm:$0xff]  ;;  %v252_v30 = vld [vmem:[%s3417_s17 + $0xc1] sm:$0xff] }
  0x1f   : > { %v3530_v28 = vld [vmem:[%s3417_s17 + $0x98] sm:$0xff]  ;;  %215 = vst.msk [vmem:[#allocation2 + $0x58] sm:$0xff] %vm203_vm0, %v3524_v26  ;;  %214 = vst.msk [vmem:[#allocation2 + $0x50] sm:$0xff] %vm203_vm0, %v3527_v27  ;;  %v3541_v31 = vld [vmem:[%s3417_s17 + $0x90] sm:$0xff] }
  0x20   : > { %314 = vrot.lane.b32.xlu1 %v3444_v6, %s3374_s18  ;;  %312 = vrot.lane.b32.xlu0 %v3447_v7, %s3374_s18  ;;  %217 = vst.msk [vmem:[#allocation2 + $0x68] sm:$0xff] %vm203_vm0, %v3530_v28  ;;  %v3544_v32 = vld [vmem:[%s3417_s17 + $0xb0] sm:$0xff]  ;;  %v3547_v33 = vld [vmem:[%s3417_s17 + $0xa8] sm:$0xff]  ;;  %216 = vst.msk [vmem:[#allocation2 + $0x60] sm:$0xff] %vm203_vm0, %v3541_v31 }
  0x21   : > { %4757 = vst [vmem:[#allocation4_spill] sm:$0xff] %v3544_v32  ;;  %219 = vst.msk [vmem:[#allocation2 + $0x78] sm:$0xff] %vm203_vm0, %v3544_v32  ;;  %v188_v34 = vld [vmem:[%s3417_s17 + $0xc8] sm:$0xff]  ;;  %v187_v35 = vld [vmem:[%s3417_s17 + $0xc0] sm:$0xff] }
  0x22   : > { %218 = vst.msk [vmem:[#allocation2 + $0x70] sm:$0xff] %vm203_vm0, %v3547_v33  ;;  %221 = vst.msk [vmem:[#allocation2 + $0x88] sm:$0xff] %vm203_vm0, %v188_v34  ;;  %v3562_v36 = vld [vmem:[%s3417_s17 + $0xe0] sm:$0xff]  ;;  %v3565_v37 = vld [vmem:[%s3417_s17 + $0xd8] sm:$0xff] }
  0x23   : > { %220 = vst.msk [vmem:[#allocation2 + $0x80] sm:$0xff] %vm203_vm0, %v187_v35  ;;  %v3568_v38 = vld [vmem:[%s3417_s17 + $0xf8] sm:$0xff]  ;;  %223 = vst.msk [vmem:[#allocation2 + $0x98] sm:$0xff] %vm203_vm0, %v3562_v36  ;;  %v3577_v39 = vld [vmem:[%s3417_s17 + $0xf0] sm:$0xff] }
  0x24   : > { %318 = vrot.lane.b32.xlu1 %v3454_v8, %s3374_s18  ;;  %316 = vrot.lane.b32.xlu0 %v3457_v9, %s3374_s18  ;;  %222 = vst.msk [vmem:[#allocation2 + $0x90] sm:$0xff] %vm203_vm0, %v3565_v37  ;;  %225 = vst.msk [vmem:[#allocation2 + $0xa8] sm:$0xff] %vm203_vm0, %v3568_v38  ;;  %v3580_v40 = vld [vmem:[%s3417_s17 + $0x110] sm:$0xff]  ;;  %v3583_v41 = vld [vmem:[%s3417_s17 + $0x108] sm:$0xff] }
  0x25   : > { %224 = vst.msk [vmem:[#allocation2 + $0xa0] sm:$0xff] %vm203_vm0, %v3577_v39  ;;  %227 = vst.msk [vmem:[#allocation2 + $0xb8] sm:$0xff] %vm203_vm0, %v3580_v40  ;;  %v3594_v42 = vld [vmem:[%s3417_s17 + $0xe1] sm:$0xff]  ;;  %v3597_v43 = vld [vmem:[%s3417_s17 + $0xd9] sm:$0xff] }
  0x26   : > { %226 = vst.msk [vmem:[#allocation2 + $0xb0] sm:$0xff] %vm203_vm0, %v3583_v41  ;;  %v3600_v44 = vld [vmem:[%s3417_s17 + $0x120] sm:$0xff]  ;;  %v3603_v45 = vld [vmem:[%s3417_s17 + $0x128] sm:$0xff]  ;;  %v3617_v47 = vld [vmem:[%s3417_s17 + $0xf1] sm:$0xff] }
  0x27   : > { %228 = vst.msk [vmem:[#allocation2 + $0xc0] sm:$0xff] %vm203_vm0, %v3600_v44  ;;  %229 = vst.msk [vmem:[#allocation2 + $0xc8] sm:$0xff] %vm203_vm0, %v3603_v45  ;;  %v3614_v46 = vld [vmem:[%s3417_s17 + $0xf9] sm:$0xff]  ;;  %v3634_v50 = vld [vmem:[%s3417_s17 + $0x111] sm:$0xff] }
  0x28   : > { %322 = vrot.lane.b32.xlu1 %v3464_v10, %s3374_s18  ;;  %320 = vrot.lane.b32.xlu0 %v3467_v11, %s3374_s18  ;;  %v3620_v48 = vld [vmem:[%s3417_s17 + $0x138] sm:$0xff]  ;;  %v3623_v49 = vld [vmem:[%s3417_s17 + $0x140] sm:$0xff] }
  0x29   : > { %4758 = vst [vmem:[#allocation5_spill] sm:$0xff] %v3623_v49  ;;  %230 = vst.msk [vmem:[#allocation2 + $0xd0] sm:$0xff] %vm203_vm0, %v3620_v48  ;;  %v3637_v51 = vld [vmem:[%s3417_s17 + $0x109] sm:$0xff]  ;;  %v200_v53 = vld [vmem:[%s3417_s17 + $0x158] sm:$0xff] }
  0x2a   : > { %231 = vst.msk [vmem:[#allocation2 + $0xd8] sm:$0xff] %vm203_vm0, %v3623_v49  ;;  %v3640_v52 = vld [vmem:[%s3417_s17 + $0x150] sm:$0xff]  ;;  %233 = vst.msk [vmem:[#allocation2 + $0xe8] sm:$0xff] %vm203_vm0, %v200_v53  ;;  %v260_v55 = vld [vmem:[%s3417_s17 + $0x121] sm:$0xff] }
  0x2b   : > { %4759 = vst [vmem:[#allocation6_spill] sm:$0xff] %v3640_v52  ;;  %232 = vst.msk [vmem:[#allocation2 + $0xe0] sm:$0xff] %vm203_vm0, %v3640_v52  ;;  %v261_v54 = vld [vmem:[%s3417_s17 + $0x129] sm:$0xff]  ;;  %v263_v58 = vld [vmem:[%s3417_s17 + $0x141] sm:$0xff] }
  0x2c   : > { %326 = vrot.lane.b32.xlu1 %v249_v14, %s3374_s18  ;;  %324 = vrot.lane.b32.xlu0 %v248_v15, %s3374_s18  ;;  %v201_v56 = vld [vmem:[%s3417_s17 + $0x168] sm:$0xff]  ;;  %v202_v57 = vld [vmem:[%s3417_s17 + $0x170] sm:$0xff] }
  0x2d   : > { %234 = vst.msk [vmem:[#allocation2 + $0xf0] sm:$0xff] %vm203_vm0, %v201_v56  ;;  %235 = vst.msk [vmem:[#allocation2 + $0xf8] sm:$0xff] %vm203_vm0, %v202_v57  ;;  %v262_v59 = vld [vmem:[%s3417_s17 + $0x139] sm:$0xff]  ;;  %v264_v61 = vld [vmem:[%s3417_s17 + $0x151] sm:$0xff] }
  0x2e   : > { %v265_v60 = vld [vmem:[%s3417_s17 + $0x159] sm:$0xff]  ;;  %v267_v62 = vld [vmem:[%s3417_s17 + $0x171] sm:$0xff]  ;;  %v266_v63 = vld [vmem:[%s3417_s17 + $0x169] sm:$0xff] }
  0x2f   : > { %v430_v1 = vld [vmem:[%s3417_s17 + $0xa] sm:$0xff]  ;;  %v429_v3 = vld [vmem:[%s3417_s17 + $0x2] sm:$0xff]  ;;  %v3678_v14 = vld [vmem:[%s3417_s17 + $0x1a] sm:$0xff] }
  0x30   : > { %330 = vrot.lane.b32.xlu1 %v251_v18, %s3374_s18  ;;  %328 = vrot.lane.b32.xlu0 %v250_v21, %s3374_s18  ;;  %v3675_v13 = vld [vmem:[%s3417_s17 + $0x22] sm:$0xff]  ;;  %v3685_v15 = vld [vmem:[%s3417_s17 + $0x3a] sm:$0xff] }
  0x31   : > { %v3688_v17 = vld [vmem:[%s3417_s17 + $0x32] sm:$0xff]  ;;  %v3698_v21 = vld [vmem:[%s3417_s17 + $0x4a] sm:$0xff]  ;;  %v3715_v34 = vld [vmem:[%s3417_s17 + $0x82] sm:$0xff] }
  0x32   : > { %v3695_v18 = vld [vmem:[%s3417_s17 + $0x52] sm:$0xff]  ;;  %v3718_v35 = vld [vmem:[%s3417_s17 + $0x7a] sm:$0xff]  ;;  %v443_v56 = vld [vmem:[%s3417_s17 + $0xaa] sm:$0xff] }
  0x33   : > { %v442_v53 = vld [vmem:[%s3417_s17 + $0x9a] sm:$0xff]  ;;  %v446_v57 = vld [vmem:[%s3417_s17 + $0xca] sm:$0xff]  ;;  %v457_v52 = vld [vmem:[%s3417_s17 + $0x152] sm:$0xff] }
  0x34   : > { %334 = vrot.lane.b32.xlu1 %v253_v29, %s3374_s18  ;;  %332 = vrot.lane.b32.xlu0 %v252_v30, %s3374_s18  ;;  %v3705_v29 = vld [vmem:[%s3417_s17 + $0x6a] sm:$0xff]  ;;  %v3708_v30 = vld [vmem:[%s3417_s17 + $0x62] sm:$0xff] }
  0x38   : > { %338 = vrot.lane.b32.xlu1 %v3594_v42, %s3374_s18  ;;  %336 = vrot.lane.b32.xlu0 %v3597_v43, %s3374_s18 }
  0x3c   : > { %342 = vrot.lane.b32.xlu1 %v3614_v46, %s3374_s18  ;;  %340 = vrot.lane.b32.xlu0 %v3617_v47, %s3374_s18 }
  0x40   : > { %346 = vrot.lane.b32.xlu1 %v3634_v50, %s3374_s18  ;;  %344 = vrot.lane.b32.xlu0 %v3637_v51, %s3374_s18 }
  0x44   : > { %350 = vrot.lane.b32.xlu1 %v261_v54, %s3374_s18  ;;  %348 = vrot.lane.b32.xlu0 %v260_v55, %s3374_s18  ;;  %v441_v54 = vld [vmem:[%s3417_s17 + $0x92] sm:$0xff] }
  0x45   : > { %v444_v55 = vld [vmem:[%s3417_s17 + $0xb2] sm:$0xff] }
  0x48   : > { %354 = vrot.lane.b32.xlu1 %v263_v58, %s3374_s18  ;;  %352 = vrot.lane.b32.xlu0 %v262_v59, %s3374_s18  ;;  %v445_v58 = vld [vmem:[%s3417_s17 + $0xc2] sm:$0xff] }
  0x49   : > { %v3737_v59 = vld [vmem:[%s3417_s17 + $0xe2] sm:$0xff] }
  0x4c   : > { %358 = vrot.lane.b32.xlu1 %v265_v60, %s3374_s18  ;;  %356 = vrot.lane.b32.xlu0 %v264_v61, %s3374_s18  ;;  %v3740_v60 = vld [vmem:[%s3417_s17 + $0xda] sm:$0xff] }
  0x4d   : > { %v3747_v61 = vld [vmem:[%s3417_s17 + $0xfa] sm:$0xff] }
  0x50   : > { %362 = vrot.lane.b32.xlu1 %v267_v62, %s3374_s18  ;;  %360 = vrot.lane.b32.xlu0 %v266_v63, %s3374_s18  ;;  %v3750_v62 = vld [vmem:[%s3417_s17 + $0xf2] sm:$0xff] }
  0x51   : > { %v3757_v63 = vld [vmem:[%s3417_s17 + $0x112] sm:$0xff] }
  0x54   : > { %495 = vrot.lane.b32.xlu1 %v430_v1, %s3375_s19  ;;  %493 = vrot.lane.b32.xlu0 %v429_v3, %s3375_s19  ;;  %v3760_v1 = vld [vmem:[%s3417_s17 + $0x10a] sm:$0xff] }
  0x55   : > { %v454_v3 = vld [vmem:[%s3417_s17 + $0x12a] sm:$0xff] }
  0x58   : > { %499 = vrot.lane.b32.xlu1 %v3675_v13, %s3375_s19  ;;  %497 = vrot.lane.b32.xlu0 %v3678_v14, %s3375_s19 }
  0x5c   : > { %503 = vrot.lane.b32.xlu1 %v3685_v15, %s3375_s19  ;;  %501 = vrot.lane.b32.xlu0 %v3688_v17, %s3375_s19 }
  0x60   : > { %507 = vrot.lane.b32.xlu1 %v3695_v18, %s3375_s19  ;;  %505 = vrot.lane.b32.xlu0 %v3698_v21, %s3375_s19 }
  0x64   : > { %511 = vrot.lane.b32.xlu1 %v3705_v29, %s3375_s19  ;;  %509 = vrot.lane.b32.xlu0 %v3708_v30, %s3375_s19 }
  0x68   : > { %515 = vrot.lane.b32.xlu1 %v3715_v34, %s3375_s19  ;;  %513 = vrot.lane.b32.xlu0 %v3718_v35, %s3375_s19 }
  0x6c   : > { %519 = vrot.lane.b32.xlu1 %v442_v53, %s3375_s19  ;;  %517 = vrot.lane.b32.xlu0 %v441_v54, %s3375_s19  ;;  %v453_v53 = vld [vmem:[%s3417_s17 + $0x122] sm:$0xff] }
  0x6d   : > { %v456_v54 = vld [vmem:[%s3417_s17 + $0x142] sm:$0xff] }
  0x70   : > { %523 = vrot.lane.b32.xlu1 %v444_v55, %s3375_s19  ;;  %521 = vrot.lane.b32.xlu0 %v443_v56, %s3375_s19  ;;  %v455_v55 = vld [vmem:[%s3417_s17 + $0x13a] sm:$0xff] }
  0x74   : > { %527 = vrot.lane.b32.xlu1 %v446_v57, %s3375_s19  ;;  %525 = vrot.lane.b32.xlu0 %v445_v58, %s3375_s19  ;;  %v458_v58 = vld [vmem:[%s3417_s17 + $0x15a] sm:$0xff] }
  0x78   : > { %531 = vrot.lane.b32.xlu1 %v3737_v59, %s3375_s19  ;;  %529 = vrot.lane.b32.xlu0 %v3740_v60, %s3375_s19 }
  0x7c   : > { %535 = vrot.lane.b32.xlu1 %v3747_v61, %s3375_s19  ;;  %533 = vrot.lane.b32.xlu0 %v3750_v62, %s3375_s19 }
  0x80   : > { %539 = vrot.lane.b32.xlu1 %v3757_v63, %s3375_s19  ;;  %537 = vrot.lane.b32.xlu0 %v3760_v1, %s3375_s19 }
  0x84   : > { %543 = vrot.lane.b32.xlu1 %v454_v3, %s3375_s19  ;;  %541 = vrot.lane.b32.xlu0 %v453_v53, %s3375_s19  ;;  %v460_v53 = vld [vmem:[%s3417_s17 + $0x172] sm:$0xff] }
  0x86   : > { %v305_v56 = vpop.permute.xlu1 %304  ;;  %v301_v57 = vpop.permute.xlu0 %300 }
  0x87   : > { %399 = vst.msk [vmem:[#allocation2 + $0x10] sm:$0xff] %vm396_vm1, %v305_v56  ;;  %397 = vst.msk [vmem:[#allocation2] sm:$0xff] %vm396_vm1, %v301_v57  ;;  %v459_v56 = vld [vmem:[%s3417_s17 + $0x16a] sm:$0xff] }
  0x88   : > { %547 = vrot.lane.b32.xlu1 %v456_v54, %s3375_s19  ;;  %545 = vrot.lane.b32.xlu0 %v455_v55, %s3375_s19 }
  0x8a   : > { %v307_v3 = vpop.permute.xlu1 %306  ;;  %v303_v32 = vpop.permute.xlu0 %302 }
  0x8b   : > { %400 = vst.msk [vmem:[#allocation2 + $0x18] sm:$0xff] %vm396_vm1, %v307_v3  ;;  %398 = vst.msk [vmem:[#allocation2 + $0x8] sm:$0xff] %vm396_vm1, %v303_v32 }
  0x8c   : > { %551 = vrot.lane.b32.xlu1 %v458_v58, %s3375_s19  ;;  %549 = vrot.lane.b32.xlu0 %v457_v52, %s3375_s19 }
  0x8e   : > { %v311_v49 = vpop.permute.xlu1 %310  ;;  %v309_v57 = vpop.permute.xlu0 %308 }
  0x8f   : > { %402 = vst.msk [vmem:[#allocation2 + $0x28] sm:$0xff] %vm396_vm1, %v311_v49  ;;  %401 = vst.msk [vmem:[#allocation2 + $0x20] sm:$0xff] %vm396_vm1, %v309_v57 }
  0x90   : > { %555 = vrot.lane.b32.xlu1 %v460_v53, %s3375_s19  ;;  %553 = vrot.lane.b32.xlu0 %v459_v56, %s3375_s19  ;;  %v1815_v56 = vld [vmem:[%s4749_s1 + $0x8] sm:$0xff] }
  0x92   : > { %v315_v54 = vpop.permute.xlu1 %314  ;;  %v313_v55 = vpop.permute.xlu0 %312 }
  0x93   : > { %404 = vst.msk [vmem:[#allocation2 + $0x38] sm:$0xff] %vm396_vm1, %v315_v54  ;;  %403 = vst.msk [vmem:[#allocation2 + $0x30] sm:$0xff] %vm396_vm1, %v313_v55  ;;  %v1816_v54 = vld [vmem:[%s4749_s1 + $0x10] sm:$0xff]  ;;  %v1817_v55 = vld [vmem:[%s4749_s1 + $0x18] sm:$0xff] }
  0x94   : > { %689 = vrot.lane.b32.xlu1 %v3483_v16, %s3376_s20  ;;  %687 = vrot.lane.b32.xlu0 %v3474_v12, %s3376_s20 }
  0x96   : > { %v319_v32 = vpop.permute.xlu1 %318  ;;  %v317_v49 = vpop.permute.xlu0 %316 }
  0x97   : > { %406 = vst.msk [vmem:[#allocation2 + $0x48] sm:$0xff] %vm396_vm1, %v319_v32  ;;  %405 = vst.msk [vmem:[#allocation2 + $0x40] sm:$0xff] %vm396_vm1, %v317_v49 }
  0x98   : > { %693 = vrot.lane.b32.xlu1 %v3491_v19, %s3376_s20  ;;  %691 = vrot.lane.b32.xlu0 %v3494_v20, %s3376_s20 }
  0x9a   : > { %v323_v52 = vpop.permute.xlu1 %322  ;;  %v321_v58 = vpop.permute.xlu0 %320 }
  0x9b   : > { %408 = vst.msk [vmem:[#allocation2 + $0x58] sm:$0xff] %vm396_vm1, %v323_v52  ;;  %407 = vst.msk [vmem:[#allocation2 + $0x50] sm:$0xff] %vm396_vm1, %v321_v58 }
  0x9c   : > { %880 = vrot.lane.b32.xlu1 %v3420_v0, %s3377_s21  ;;  %695 = vrot.lane.b32.xlu0 %v3509_v23, %s3376_s20  ;;  %v1814_v0 = vld [vmem:[%s4749_s1] sm:$0xff] }
  0x9d   : > { %v3205_v57 = vpack.c.bf16 %v1815_v56, %v1814_v0 }
  0x9e   : > { %v327_v12 = vpop.permute.xlu1 %326  ;;  %v325_v16 = vpop.permute.xlu0 %324 }
  0x9f   : > { %410 = vst.msk [vmem:[#allocation2 + $0x68] sm:$0xff] %vm396_vm1, %v327_v12  ;;  %409 = vst.msk [vmem:[#allocation2 + $0x60] sm:$0xff] %vm396_vm1, %v325_v16  ;;  %3206 = vmatprep.subr.bf16.mxu0 %v3205_v57  ;;  %3213 = vmatprep.subr.bf16.mxu1 %v3205_v57 }
  0xa0   : > { %1073 = vrot.lane.b32.xlu1 %v3678_v14, %s3378_s22  ;;  %882 = vrot.lane.b32.xlu0 %v3427_v2, %s3377_s21 }
  0xa1   : > { %3208 = vmatpush3.bf16.msra.mxu0 %v3205_v57  ;;  %3216 = vmatpush3.bf16.msra.mxu1 %v3205_v57 }
  0xa2   : > { %v331_v3 = vpop.permute.xlu1 %330  ;;  %v329_v53 = vpop.permute.xlu0 %328 }
  0xa3   : > { %412 = vst.msk [vmem:[#allocation2 + $0x78] sm:$0xff] %vm396_vm1, %v331_v3  ;;  %411 = vst.msk [vmem:[#allocation2 + $0x70] sm:$0xff] %vm396_vm1, %v329_v53 }
  0xa4   : > { %1267 = vrot.lane.b32.xlu1 %v3494_v20, %s3379_s27  ;;  %1075 = vrot.lane.b32.xlu0 %v3675_v13, %s3378_s22  ;;  %v3209_v20 = vpack.c.bf16 %v1817_v55, %v1816_v54 }
  0xa6   : > { %v335_v2 = vpop.permute.xlu1 %334  ;;  %v333_v14 = vpop.permute.xlu0 %332  ;;  %3210 = vmatprep.subr.bf16.mxu0 %v3209_v20  ;;  %3214 = vmatprep.subr.bf16.mxu1 %v3209_v20 }
  0xa7   : > { %414 = vst.msk [vmem:[#allocation2 + $0x88] sm:$0xff] %vm396_vm1, %v335_v2  ;;  %413 = vst.msk [vmem:[#allocation2 + $0x80] sm:$0xff] %vm396_vm1, %v333_v14  ;;  %3212 = vmatpush3.bf16.msra.mxu0 %v3209_v20  ;;  %3217 = vmatpush3.bf16.msra.mxu1 %v3209_v20 }
  0xa8   : > { %1460 = vrot.lane.b32.xlu1 %v3437_v5, %s3380_s5  ;;  %1269 = vrot.lane.b32.xlu0 %v3491_v19, %s3379_s27  ;;  %v1818_v19 = vld [vmem:[%s4749_s1 + $0x20] sm:$0xf] }
  0xa9   : > { %3155 = vmatprep.subr.msk.mxu0 %vm1923_vm2, %v1818_v19  ;;  %3215 = vmatprep.subr.msk.mxu1 %vm1923_vm2, %v1818_v19 }
  0xaa   : > { %v339_v13 = vpop.permute.xlu1 %338  ;;  %v337_v32 = vpop.permute.xlu0 %336 }
  0xab   : > { %416 = vst.msk [vmem:[#allocation2 + $0x98] sm:$0xff] %vm396_vm1, %v339_v13  ;;  %415 = vst.msk [vmem:[#allocation2 + $0x90] sm:$0xff] %vm396_vm1, %v337_v32  ;;  %3156 = vmatpush3.msk.msra.mxu0 %vm1923_vm2, %v1818_v19  ;;  %3218 = vmatpush3.msk.msra.mxu1 %vm1923_vm2, %v1818_v19 }
  0xac   : > { %1462 = vrot.lane.b32.xlu1 %v3434_v4, %s3380_s5  ;;  %884 = vrot.lane.b32.xlu0 %v3437_v5, %s3377_s21 }
  0xae   : > { %v343_v49 = vpop.permute.xlu1 %342  ;;  %v341_v52 = vpop.permute.xlu0 %340 }
  0xaf   : > { %418 = vst.msk [vmem:[#allocation2 + $0xa8] sm:$0xff] %vm396_vm1, %v343_v49  ;;  %417 = vst.msk [vmem:[#allocation2 + $0xa0] sm:$0xff] %vm396_vm1, %v341_v52 }
  0xb0   : > { %886 = vrot.lane.b32.xlu1 %v3434_v4, %s3377_s21  ;;  %1653 = vrot.lane.b32.xlu0 %v3688_v17, %s3381_s8 }
  0xb2   : > { %v347_v5 = vpop.permute.xlu1 %346  ;;  %v345_v58 = vpop.permute.xlu0 %344 }
  0xb3   : > { %420 = vst.msk [vmem:[#allocation2 + $0xb8] sm:$0xff] %vm396_vm1, %v347_v5  ;;  %419 = vst.msk [vmem:[#allocation2 + $0xb0] sm:$0xff] %vm396_vm1, %v345_v58 }
  0xb4   : > { %1655 = vrot.lane.b32.xlu1 %v3685_v15, %s3381_s8  ;;  %1077 = vrot.lane.b32.xlu0 %v3688_v17, %s3378_s22 }
  0xb6   : > { %v351_v12 = vpop.permute.xlu1 %350  ;;  %v349_v16 = vpop.permute.xlu0 %348 }
  0xb7   : > { %422 = vst.msk [vmem:[#allocation2 + $0xc8] sm:$0xff] %vm396_vm1, %v351_v12  ;;  %421 = vst.msk [vmem:[#allocation2 + $0xc0] sm:$0xff] %vm396_vm1, %v349_v16 }
  0xb8   : > { %1271 = vrot.lane.b32.xlu1 %v3509_v23, %s3379_s27  ;;  %1079 = vrot.lane.b32.xlu0 %v3685_v15, %s3378_s22 }
  0xba   : > { %v355_v4 = vpop.permute.xlu1 %354  ;;  %v353_v3 = vpop.permute.xlu0 %352 }
  0xbb   : > { %424 = vst.msk [vmem:[#allocation2 + $0xd8] sm:$0xff] %vm396_vm1, %v355_v4  ;;  %423 = vst.msk [vmem:[#allocation2 + $0xd0] sm:$0xff] %vm396_vm1, %v353_v3 }
  0xbc   : > { %1273 = vrot.lane.b32.xlu1 %v3504_v22, %s3379_s27  ;;  %719 = vrot.lane.b32.xlu0 %v3565_v37, %s3376_s20 }
  0xbe   : > { %v359_v17 = vpop.permute.xlu1 %358  ;;  %v357_v53 = vpop.permute.xlu0 %356 }
  0xbf   : > { %426 = vst.msk [vmem:[#allocation2 + $0xe8] sm:$0xff] %vm396_vm1, %v359_v17  ;;  %425 = vst.msk [vmem:[#allocation2 + $0xe0] sm:$0xff] %vm396_vm1, %v357_v53 }
  0xc0   : > { %697 = vrot.lane.b32.xlu1 %v3504_v22, %s3376_s20  ;;  %1464 = vrot.lane.b32.xlu0 %v3447_v7, %s3380_s5 }
  0xc2   : > { %v363_v23 = vpop.permute.xlu1 %362  ;;  %v361_v15 = vpop.permute.xlu0 %360 }
  0xc3   : > { %428 = vst.msk [vmem:[#allocation2 + $0xf8] sm:$0xff] %vm396_vm1, %v363_v23  ;;  %427 = vst.msk [vmem:[#allocation2 + $0xf0] sm:$0xff] %vm396_vm1, %v361_v15 }
  0xc4   : > { %888 = vrot.lane.b32.xlu1 %v3447_v7, %s3377_s21  ;;  %721 = vrot.lane.b32.xlu0 %v3562_v36, %s3376_s20 }
  0xc6   : > { %v496_v37 = vpop.permute.xlu1 %495  ;;  %v494_v0 = vpop.permute.xlu0 %493 }
  0xc7   : > { %591 = vst.msk [vmem:[#allocation2 + $0x8] sm:$0xff] %vm589_vm3, %v496_v37  ;;  %590 = vst.msk [vmem:[#allocation2] sm:$0xff] %vm589_vm3, %v494_v0 }
  0xc8   : > { %1466 = vrot.lane.b32.xlu1 %v3444_v6, %s3380_s5  ;;  %912 = vrot.lane.b32.xlu0 %v3597_v43, %s3377_s21 }
  0xca   : > { %v500_v22 = vpop.permute.xlu1 %499  ;;  %v498_v56 = vpop.permute.xlu0 %497 }
  0xcb   : > { %593 = vst.msk [vmem:[#allocation2 + $0x18] sm:$0xff] %vm589_vm3, %v500_v22  ;;  %592 = vst.msk [vmem:[#allocation2 + $0x10] sm:$0xff] %vm589_vm3, %v498_v56 }
  0xcc   : > { %890 = vrot.lane.b32.xlu1 %v3444_v6, %s3377_s21  ;;  %1657 = vrot.lane.b32.xlu0 %v3698_v21, %s3381_s8 }
  0xce   : > { %v504_v7 = vpop.permute.xlu1 %503  ;;  %v502_v36 = vpop.permute.xlu0 %501 }
  0xcf   : > { %595 = vst.msk [vmem:[#allocation2 + $0x28] sm:$0xff] %vm589_vm3, %v504_v7  ;;  %594 = vst.msk [vmem:[#allocation2 + $0x20] sm:$0xff] %vm589_vm3, %v502_v36 }
  0xd0   : > { %1081 = vrot.lane.b32.xlu1 %v3698_v21, %s3378_s22  ;;  %914 = vrot.lane.b32.xlu0 %v3594_v42, %s3377_s21 }
  0xd2   : > { %v508_v43 = vpop.permute.xlu1 %507  ;;  %v506_v57 = vpop.permute.xlu0 %505 }
  0xd3   : > { %597 = vst.msk [vmem:[#allocation2 + $0x38] sm:$0xff] %vm589_vm3, %v508_v43  ;;  %596 = vst.msk [vmem:[#allocation2 + $0x30] sm:$0xff] %vm589_vm3, %v506_v57 }
  0xd4   : > { %1659 = vrot.lane.b32.xlu1 %v3695_v18, %s3381_s8  ;;  %1105 = vrot.lane.b32.xlu0 %v3740_v60, %s3378_s22 }
  0xd6   : > { %v512_v6 = vpop.permute.xlu1 %511  ;;  %v510_v2 = vpop.permute.xlu0 %509 }
  0xd7   : > { %599 = vst.msk [vmem:[#allocation2 + $0x48] sm:$0xff] %vm589_vm3, %v512_v6  ;;  %598 = vst.msk [vmem:[#allocation2 + $0x40] sm:$0xff] %vm589_vm3, %v510_v2  ;;  %v3029_v2 = vld [vmem:[%s3417_s17 + $0x121] sm:$0xff] }
  0xd8   : > { %1107 = vrot.lane.b32.xlu1 %v3737_v59, %s3378_s22  ;;  %1083 = vrot.lane.b32.xlu0 %v3695_v18, %s3378_s22 }
  0xda   : > { %v516_v42 = vpop.permute.xlu1 %515  ;;  %v514_v21 = vpop.permute.xlu0 %513 }
  0xdb   : > { %601 = vst.msk [vmem:[#allocation2 + $0x58] sm:$0xff] %vm589_vm3, %v516_v42  ;;  %600 = vst.msk [vmem:[#allocation2 + $0x50] sm:$0xff] %vm589_vm3, %v514_v21  ;;  %v3017_v42 = vld [vmem:[%s3417_s17 + $0x91] sm:$0xff] }
  0xdc   : > { %1299 = vrot.lane.b32.xlu1 %v3577_v39, %s3379_s27  ;;  %1275 = vrot.lane.b32.xlu0 %v3515_v25, %s3379_s27 }
  0xde   : > { %v520_v60 = vpop.permute.xlu1 %519  ;;  %v518_v14 = vpop.permute.xlu0 %517 }
  0xdf   : > { %603 = vst.msk [vmem:[#allocation2 + $0x68] sm:$0xff] %vm589_vm3, %v520_v60  ;;  %602 = vst.msk [vmem:[#allocation2 + $0x60] sm:$0xff] %vm589_vm3, %v518_v14 }
  0xe0   : > { %723 = vrot.lane.b32.xlu1 %v3577_v39, %s3376_s20  ;;  %699 = vrot.lane.b32.xlu0 %v3515_v25, %s3376_s20 }
  0xe2   : > { %v524_v18 = vpop.permute.xlu1 %523  ;;  %v522_v59 = vpop.permute.xlu0 %521 }
  0xe3   : > { %605 = vst.msk [vmem:[#allocation2 + $0x78] sm:$0xff] %vm589_vm3, %v524_v18  ;;  %604 = vst.msk [vmem:[#allocation2 + $0x70] sm:$0xff] %vm589_vm3, %v522_v59 }
  0xe4   : > { %1301 = vrot.lane.b32.xlu1 %v3568_v38, %s3379_s27  ;;  %1277 = vrot.lane.b32.xlu0 %v3512_v24, %s3379_s27 }
  0xe6   : > { %v528_v54 = vpop.permute.xlu1 %527  ;;  %v526_v55 = vpop.permute.xlu0 %525 }
  0xe7   : > { %607 = vst.msk [vmem:[#allocation2 + $0x88] sm:$0xff] %vm589_vm3, %v528_v54  ;;  %606 = vst.msk [vmem:[#allocation2 + $0x80] sm:$0xff] %vm589_vm3, %v526_v55  ;;  %v3030_v55 = vld [vmem:[%s3417_s17 + $0x129] sm:$0xff] }
  0xe8   : > { %1492 = vrot.lane.b32.xlu1 %v3617_v47, %s3380_s5  ;;  %1468 = vrot.lane.b32.xlu0 %v3457_v9, %s3380_s5 }
  0xea   : > { %v532_v25 = vpop.permute.xlu1 %531  ;;  %v530_v39 = vpop.permute.xlu0 %529 }
  0xeb   : > { %609 = vst.msk [vmem:[#allocation2 + $0x98] sm:$0xff] %vm589_vm3, %v532_v25  ;;  %608 = vst.msk [vmem:[#allocation2 + $0x90] sm:$0xff] %vm589_vm3, %v530_v39 }
  0xec   : > { %725 = vrot.lane.b32.xlu1 %v3568_v38, %s3376_s20  ;;  %701 = vrot.lane.b32.xlu0 %v3512_v24, %s3376_s20 }
  0xee   : > { %v536_v20 = vpop.permute.xlu1 %535  ;;  %v534_v13 = vpop.permute.xlu0 %533 }
  0xef   : > { %611 = vst.msk [vmem:[#allocation2 + $0xa8] sm:$0xff] %vm589_vm3, %v536_v20  ;;  %610 = vst.msk [vmem:[#allocation2 + $0xa0] sm:$0xff] %vm589_vm3, %v534_v13  ;;  %v3049_v20 = vld [vmem:[%s3417_s17 + $0x92] sm:$0xff] }
  0xf0   : > { %916 = vrot.lane.b32.xlu1 %v3617_v47, %s3377_s21  ;;  %892 = vrot.lane.b32.xlu0 %v3457_v9, %s3377_s21 }
  0xf2   : > { %v540_v32 = vpop.permute.xlu1 %539  ;;  %v538_v19 = vpop.permute.xlu0 %537 }
  0xf3   : > { %613 = vst.msk [vmem:[#allocation2 + $0xb8] sm:$0xff] %vm589_vm3, %v540_v32  ;;  %612 = vst.msk [vmem:[#allocation2 + $0xb0] sm:$0xff] %vm589_vm3, %v538_v19 }
  0xf4   : > { %1494 = vrot.lane.b32.xlu1 %v3614_v46, %s3380_s5  ;;  %1470 = vrot.lane.b32.xlu0 %v3454_v8, %s3380_s5 }
  0xf6   : > { %v544_v24 = vpop.permute.xlu1 %543  ;;  %v542_v38 = vpop.permute.xlu0 %541 }
  0xf7   : > { %615 = vst.msk [vmem:[#allocation2 + $0xc8] sm:$0xff] %vm589_vm3, %v544_v24  ;;  %614 = vst.msk [vmem:[#allocation2 + $0xc0] sm:$0xff] %vm589_vm3, %v542_v38 }
  0xf8   : > { %1685 = vrot.lane.b32.xlu1 %v3750_v62, %s3381_s8  ;;  %1661 = vrot.lane.b32.xlu0 %v3708_v30, %s3381_s8 }
  0xfa   : > { %v548_v9 = vpop.permute.xlu1 %547  ;;  %v546_v47 = vpop.permute.xlu0 %545 }
  0xfb   : > { %617 = vst.msk [vmem:[#allocation2 + $0xd8] sm:$0xff] %vm589_vm3, %v548_v9  ;;  %616 = vst.msk [vmem:[#allocation2 + $0xd0] sm:$0xff] %vm589_vm3, %v546_v47  ;;  %v3062_v47 = vld [vmem:[%s3417_s17 + $0x12a] sm:$0xff] }
  0xfc   : > { %918 = vrot.lane.b32.xlu1 %v3614_v46, %s3377_s21  ;;  %894 = vrot.lane.b32.xlu0 %v3454_v8, %s3377_s21 }
  0xfe   : > { %v552_v49 = vpop.permute.xlu1 %551  ;;  %v550_v52 = vpop.permute.xlu0 %549 }
  0xff   : > { %619 = vst.msk [vmem:[#allocation2 + $0xe8] sm:$0xff] %vm589_vm3, %v552_v49  ;;  %618 = vst.msk [vmem:[#allocation2 + $0xe0] sm:$0xff] %vm589_vm3, %v550_v52  ;;  %v3050_v49 = vld [vmem:[%s3417_s17 + $0x9a] sm:$0xff] }
 0x100   : > { %1109 = vrot.lane.b32.xlu1 %v3750_v62, %s3378_s22  ;;  %1085 = vrot.lane.b32.xlu0 %v3708_v30, %s3378_s22 }
 0x102   : > { %v556_v5 = vpop.permute.xlu1 %555  ;;  %v554_v58 = vpop.permute.xlu0 %553 }
 0x103   : > { %621 = vst.msk [vmem:[#allocation2 + $0xf8] sm:$0xff] %vm589_vm3, %v556_v5  ;;  %620 = vst.msk [vmem:[#allocation2 + $0xf0] sm:$0xff] %vm589_vm3, %v554_v58 }
 0x104   : > { %1687 = vrot.lane.b32.xlu1 %v3747_v61, %s3381_s8  ;;  %1663 = vrot.lane.b32.xlu0 %v3705_v29, %s3381_s8 }
 0x106   : > { %v690_v8 = vpop.permute.xlu1 %689  ;;  %v688_v46 = vpop.permute.xlu0 %687 }
 0x107   : > { %785 = vst.msk [vmem:[#allocation2 + $0x8] sm:$0xff] %vm783_vm4, %v690_v8  ;;  %784 = vst.msk [vmem:[#allocation2] sm:$0xff] %vm783_vm4, %v688_v46 }
 0x108   : > { %1111 = vrot.lane.b32.xlu1 %v3747_v61, %s3378_s22  ;;  %1087 = vrot.lane.b32.xlu0 %v3705_v29, %s3378_s22 }
 0x10a   : > { %v694_v30 = vpop.permute.xlu1 %693  ;;  %v692_v62 = vpop.permute.xlu0 %691 }
 0x10b   : > { %787 = vst.msk [vmem:[#allocation2 + $0x18] sm:$0xff] %vm783_vm4, %v694_v30  ;;  %786 = vst.msk [vmem:[#allocation2 + $0x10] sm:$0xff] %vm783_vm4, %v692_v62 }
 0x10c   : > { %1303 = vrot.lane.b32.xlu1 %v3583_v41, %s3379_s27  ;;  %1279 = vrot.lane.b32.xlu0 %v3527_v27, %s3379_s27 }
 0x10e   : > { %v881_v12 = vpop.permute.xlu1 %880  ;;  %v696_v16 = vpop.permute.xlu0 %695 }
 0x10f   : > { %977 = vst.msk [vmem:[#allocation2] sm:$0xff] %vm976_vm5, %v881_v12 }
 0x110   : > { %788 = vst.msk [vmem:[#allocation2 + $0x20] sm:$0xff] %vm783_vm4, %v696_v16  ;;  %727 = vrot.lane.b32.xlu1 %v3583_v41, %s3376_s20  ;;  %703 = vrot.lane.b32.xlu0 %v3527_v27, %s3376_s20 }
 0x112   : > { %v1074_v29 = vpop.permute.xlu1 %1073  ;;  %v883_v61 = vpop.permute.xlu0 %882 }
 0x113   : > { %1170 = vst.msk [vmem:[#allocation2] sm:$0xff] %vm1169_vm6, %v1074_v29 }
 0x114   : > { %978 = vst.msk [vmem:[#allocation2 + $0x8] sm:$0xff] %vm976_vm5, %v883_v61  ;;  %1305 = vrot.lane.b32.xlu1 %v3580_v40, %s3379_s27  ;;  %1281 = vrot.lane.b32.xlu0 %v3524_v26, %s3379_s27 }
 0x116   : > { %v1268_v4 = vpop.permute.xlu1 %1267  ;;  %v1076_v3 = vpop.permute.xlu0 %1075 }
 0x117   : > { %1364 = vst.msk [vmem:[#allocation2] sm:$0xff] %vm1363_vm7, %v1268_v4 }
 0x118   : > { %1171 = vst.msk [vmem:[#allocation2 + $0x8] sm:$0xff] %vm1169_vm6, %v1076_v3  ;;  %1496 = vrot.lane.b32.xlu1 %v3637_v51, %s3380_s5  ;;  %1472 = vrot.lane.b32.xlu0 %v3467_v11, %s3380_s5  ;;  %v4760_v3 = vld [vmem:[#allocation5_spill] sm:$0xff] }
 0x11a   : > { %v1461_v27 = vpop.permute.xlu1 %1460  ;;  %v1270_v41 = vpop.permute.xlu0 %1269 }
 0x11b   : > { %1557 = vst.msk [vmem:[#allocation2] sm:$0xff] %vm1556_vm8, %v1461_v27  ;;  %v3019_v27 = vld [vmem:[%s3417_s17 + $0xa9] sm:$0xff] }
 0x11c   : > { %1365 = vst.msk [vmem:[#allocation2 + $0x8] sm:$0xff] %vm1363_vm7, %v1270_v41  ;;  %729 = vrot.lane.b32.xlu1 %v3580_v40, %s3376_s20  ;;  %705 = vrot.lane.b32.xlu0 %v3524_v26, %s3376_s20 }
 0x11e   : > { %v1463_v17 = vpop.permute.xlu1 %1462  ;;  %v885_v53 = vpop.permute.xlu0 %884 }
 0x11f   : > { %1558 = vst.msk [vmem:[#allocation2 + $0x8] sm:$0xff] %vm1556_vm8, %v1463_v17 }
 0x120   : > { %979 = vst.msk [vmem:[#allocation2 + $0x10] sm:$0xff] %vm976_vm5, %v885_v53  ;;  %920 = vrot.lane.b32.xlu1 %v3637_v51, %s3377_s21  ;;  %896 = vrot.lane.b32.xlu0 %v3467_v11, %s3377_s21  ;;  %v2922_v11 = vld [vmem:[%s3417_s17 + $0x81] sm:$0xff]  ;;  %v2894_v53 = vld [vmem:[%s3417_s17 + $0xb0] sm:$0xff] }
 0x122   : > { %v887_v23 = vpop.permute.xlu1 %886  ;;  %v1654_v15 = vpop.permute.xlu0 %1653 }
 0x123   : > { %980 = vst.msk [vmem:[#allocation2 + $0x18] sm:$0xff] %vm976_vm5, %v887_v23 }
 0x124   : > { %1750 = vst.msk [vmem:[#allocation2] sm:$0xff] %vm1749_vm9, %v1654_v15  ;;  %1498 = vrot.lane.b32.xlu1 %v3634_v50, %s3380_s5  ;;  %1474 = vrot.lane.b32.xlu0 %v3464_v10, %s3380_s5 }
 0x126   : > { %v1656_v26 = vpop.permute.xlu1 %1655  ;;  %v1078_v40 = vpop.permute.xlu0 %1077 }
 0x127   : > { %1751 = vst.msk [vmem:[#allocation2 + $0x8] sm:$0xff] %vm1749_vm9, %v1656_v26 }
 0x128   : > { %1172 = vst.msk [vmem:[#allocation2 + $0x10] sm:$0xff] %vm1169_vm6, %v1078_v40  ;;  %1689 = vrot.lane.b32.xlu1 %v3760_v1, %s3381_s8  ;;  %1665 = vrot.lane.b32.xlu0 %v3718_v35, %s3381_s8 }
 0x12a   : > { %v1272_v51 = vpop.permute.xlu1 %1271  ;;  %v1080_v37 = vpop.permute.xlu0 %1079 }
 0x12b   : > { %v1782_v0 = vld [vmem:[#allocation2] sm:$0xff]  ;;  %1366 = vst.msk [vmem:[#allocation2 + $0x10] sm:$0xff] %vm1363_vm7, %v1272_v51 }
 0x12c   : > { %1173 = vst.msk [vmem:[#allocation2 + $0x18] sm:$0xff] %vm1169_vm6, %v1080_v37  ;;  %3157 = vmatprep.mubr.msk.f32.mxu0 %vm1826_vm10, %v1782_v0  ;;  %922 = vrot.lane.b32.xlu1 %v3634_v50, %s3377_s21  ;;  %v3032_v37 = vld [vmem:[%s3417_s17 + $0x141] sm:$0xff]  ;;  %v3020_v0 = vld [vmem:[%s3417_s17 + $0xb1] sm:$0xff] }
 0x12d   : > { %898 = vrot.lane.b32.xlu0 %v2922_v11, %s3377_s21 }
 0x12e   : > { %v1274_v10 = vpop.permute.xlu1 %1273  ;;  %v720_v22 = vpop.permute.xlu0 %719  ;;  %v1783_v56 = vld [vmem:[#allocation2 + $0x8] sm:$0xff] }
 0x12f   : > { %1367 = vst.msk [vmem:[#allocation2 + $0x18] sm:$0xff] %vm1363_vm7, %v1274_v10  ;;  %3158 = vmatmul.mubr.msk.f32.vlgmr.msra.gmra.mrb[0].mxu0 %vm1826_vm10, %v1783_v56  ;;  %v3063_v56 = vld [vmem:[%s3417_s17 + $0x13a] sm:$0xff] }
 0x130   : > { %800 = vst.msk [vmem:[#allocation2 + $0x80] sm:$0xff] %vm783_vm4, %v720_v22  ;;  %1113 = vrot.lane.b32.xlu1 %v3760_v1, %s3378_s22 }
 0x131   : > { %1089 = vrot.lane.b32.xlu0 %v3718_v35, %s3378_s22 }
 0x132   : > { %v698_v7 = vpop.permute.xlu1 %697  ;;  %v1465_v36 = vpop.permute.xlu0 %1464 }
 0x133   : > { %789 = vst.msk [vmem:[#allocation2 + $0x28] sm:$0xff] %vm783_vm4, %v698_v7  ;;  %v3051_v7 = vld [vmem:[%s3417_s17 + $0xaa] sm:$0xff] }
 0x134   : > { %1559 = vst.msk [vmem:[#allocation2 + $0x10] sm:$0xff] %vm1556_vm8, %v1465_v36  ;;  %1691 = vrot.lane.b32.xlu1 %v3757_v63, %s3381_s8 }
 0x135   : > { %1667 = vrot.lane.b32.xlu0 %v3715_v34, %s3381_s8 }
 0x136   : > { %v889_v50 = vpop.permute.xlu1 %888  ;;  %v722_v43 = vpop.permute.xlu0 %721 }
 0x137   : > { %981 = vst.msk [vmem:[#allocation2 + $0x20] sm:$0xff] %vm976_vm5, %v889_v50 }
 0x138   : > { %801 = vst.msk [vmem:[#allocation2 + $0x88] sm:$0xff] %vm783_vm4, %v722_v43  ;;  %1115 = vrot.lane.b32.xlu1 %v3757_v63, %s3378_s22 }
 0x139   : > { %1091 = vrot.lane.b32.xlu0 %v3715_v34, %s3378_s22 }
 0x13a   : > { %v1467_v35 = vpop.permute.xlu1 %1466  ;;  %v913_v1 = vpop.permute.xlu0 %912 }
 0x13b   : > { %1560 = vst.msk [vmem:[#allocation2 + $0x18] sm:$0xff] %vm1556_vm8, %v1467_v35 }
 0x13c   : > { %993 = vst.msk [vmem:[#allocation2 + $0x80] sm:$0xff] %vm976_vm5, %v913_v1  ;;  %1307 = vrot.lane.b32.xlu1 %v3600_v44, %s3379_s27 }
 0x13d   : > { %1283 = vrot.lane.b32.xlu0 %v3541_v31, %s3379_s27 }
 0x13e   : > { %v891_v57 = vpop.permute.xlu1 %890  ;;  %v1658_v6 = vpop.permute.xlu0 %1657 }
 0x13f   : > { %982 = vst.msk [vmem:[#allocation2 + $0x28] sm:$0xff] %vm976_vm5, %v891_v57 }
 0x140   : > { %1752 = vst.msk [vmem:[#allocation2 + $0x10] sm:$0xff] %vm1749_vm9, %v1658_v6  ;;  %731 = vrot.lane.b32.xlu1 %v3600_v44, %s3376_s20  ;;  %v3064_v6 = vld [vmem:[%s3417_s17 + $0x142] sm:$0xff] }
 0x141   : > { %707 = vrot.lane.b32.xlu0 %v3541_v31, %s3376_s20 }
 0x142   : > { %v1082_v34 = vpop.permute.xlu1 %1081  ;;  %v915_v63 = vpop.permute.xlu0 %914 }
 0x143   : > { %1174 = vst.msk [vmem:[#allocation2 + $0x20] sm:$0xff] %vm1169_vm6, %v1082_v34  ;;  %v3052_v34 = vld [vmem:[%s3417_s17 + $0xb2] sm:$0xff] }
 0x144   : > { %994 = vst.msk [vmem:[#allocation2 + $0x88] sm:$0xff] %vm976_vm5, %v915_v63  ;;  %1309 = vrot.lane.b32.xlu1 %v3603_v45, %s3379_s27 }
 0x145   : > { %1285 = vrot.lane.b32.xlu0 %v3530_v28, %s3379_s27 }
 0x146   : > { %v1660_v21 = vpop.permute.xlu1 %1659  ;;  %v1106_v60 = vpop.permute.xlu0 %1105 }
 0x147   : > { %v1784_v44 = vld [vmem:[#allocation2 + $0x10] sm:$0xff]  ;;  %1753 = vst.msk [vmem:[#allocation2 + $0x18] sm:$0xff] %vm1749_vm9, %v1660_v21 }
 0x148   : > { %1186 = vst.msk [vmem:[#allocation2 + $0x80] sm:$0xff] %vm1169_vm6, %v1106_v60  ;;  %3160 = vmatprep.mubr.msk.f32.mxu0 %vm1826_vm10, %v1784_v44  ;;  %1500 = vrot.lane.b32.xlu1 %v3029_v2, %s3380_s5  ;;  %v2989_v60 = vld [vmem:[%s3417_s17 + $0xc0] sm:$0xff] }
 0x149   : > { %1476 = vrot.lane.b32.xlu0 %v3017_v42, %s3380_s5 }
 0x14a   : > { %v1108_v31 = vpop.permute.xlu1 %1107  ;;  %v1084_v14 = vpop.permute.xlu0 %1083 }
 0x14b   : > { %1187 = vst.msk [vmem:[#allocation2 + $0x88] sm:$0xff] %vm1169_vm6, %v1108_v31  ;;  %1175 = vst.msk [vmem:[#allocation2 + $0x28] sm:$0xff] %vm1169_vm6, %v1084_v14  ;;  %v4762_v14 = vld [vmem:[#allocation6_spill] sm:$0xff] }
 0x14c   : > { %733 = vrot.lane.b32.xlu1 %v3603_v45, %s3376_s20  ;;  %v3018_v45 = vld [vmem:[%s3417_s17 + $0x99] sm:$0xff] }
 0x14d   : > { %709 = vrot.lane.b32.xlu0 %v3530_v28, %s3376_s20  ;;  %v3061_v28 = vld [vmem:[%s3417_s17 + $0x122] sm:$0xff] }
 0x14e   : > { %v1300_v18 = vpop.permute.xlu1 %1299  ;;  %v1276_v59 = vpop.permute.xlu0 %1275  ;;  %v1785_v54 = vld [vmem:[#allocation2 + $0x18] sm:$0xff] }
 0x14f   : > { %1380 = vst.msk [vmem:[#allocation2 + $0x80] sm:$0xff] %vm1363_vm7, %v1300_v18  ;;  %1368 = vst.msk [vmem:[#allocation2 + $0x20] sm:$0xff] %vm1363_vm7, %v1276_v59  ;;  %3161 = vmatmul.mubr.msk.f32.gmra.mrb[2].mxu0 %vm1826_vm10, %v1785_v54  ;;  %v4203_v54 = vld [vmem:[%s3417_s17 + $0x158] sm:$0xff] }
 0x150   : > { %924 = vrot.lane.b32.xlu1 %v3029_v2, %s3377_s21 }
 0x151   : > { %900 = vrot.lane.b32.xlu0 %v3017_v42, %s3377_s21 }
 0x152   : > { %v724_v25 = vpop.permute.xlu1 %723  ;;  %v700_v39 = vpop.permute.xlu0 %699 }
 0x153   : > { %802 = vst.msk [vmem:[#allocation2 + $0x90] sm:$0xff] %vm783_vm4, %v724_v25  ;;  %790 = vst.msk [vmem:[#allocation2 + $0x30] sm:$0xff] %vm783_vm4, %v700_v39 }
 0x154   : > { %1502 = vrot.lane.b32.xlu1 %v3030_v55, %s3380_s5 }
 0x155   : > { %1478 = vrot.lane.b32.xlu0 %v3018_v45, %s3380_s5 }
 0x156   : > { %v1302_v13 = vpop.permute.xlu1 %1301  ;;  %v1278_v32 = vpop.permute.xlu0 %1277 }
 0x157   : > { %1381 = vst.msk [vmem:[#allocation2 + $0x88] sm:$0xff] %vm1363_vm7, %v1302_v13  ;;  %1369 = vst.msk [vmem:[#allocation2 + $0x28] sm:$0xff] %vm1363_vm7, %v1278_v32  ;;  %v4220_v13 = vld [vmem:[%s3417_s17 + $0xc1] sm:$0xff] }
 0x158   : > { %1693 = vrot.lane.b32.xlu1 %v3061_v28, %s3381_s8 }
 0x159   : > { %1669 = vrot.lane.b32.xlu0 %v3049_v20, %s3381_s8 }
 0x15a   : > { %v1493_v19 = vpop.permute.xlu1 %1492  ;;  %v1469_v24 = vpop.permute.xlu0 %1468 }
 0x15b   : > { %1573 = vst.msk [vmem:[#allocation2 + $0x80] sm:$0xff] %vm1556_vm8, %v1493_v19  ;;  %1561 = vst.msk [vmem:[#allocation2 + $0x20] sm:$0xff] %vm1556_vm8, %v1469_v24  ;;  %v3382_v24 = vmov -inf  }
 0x15c   : > { %926 = vrot.lane.b32.xlu1 %v3030_v55, %s3377_s21  ;;  %v4206_v55 = vld [vmem:[%s3417_s17 + $0xc8] sm:$0xff]  ;;  %2446 = vst.msk [vmem:[#allocation3 + $0x20] sm:$0xff] %vm2440_vm11, %v3382_v24  ;;  %2441 = vst.msk [vmem:[#allocation3] sm:$0xff] %vm2440_vm11, %v3382_v24 }
 0x15d   : > { %902 = vrot.lane.b32.xlu0 %v3018_v45, %s3377_s21  ;;  %2447 = vst.msk [vmem:[#allocation3 + $0x28] sm:$0x3] %vm2443_vm12, %v3382_v24  ;;  %2444 = vst.msk [vmem:[#allocation3 + $0x10] sm:$0x3] %vm2443_vm12, %v3382_v24 }
 0x15e   : > { %v726_v38 = vpop.permute.xlu1 %725  ;;  %v702_v9 = vpop.permute.xlu0 %701  ;;  %2442 = vst.msk [vmem:[#allocation3 + $0x8] sm:$0xff] %vm2440_vm11, %v3382_v24  ;;  %2445 = vst.msk [vmem:[#allocation3 + $0x18] sm:$0xff] %vm2440_vm11, %v3382_v24 }
 0x15f   : > { %803 = vst.msk [vmem:[#allocation2 + $0x98] sm:$0xff] %vm783_vm4, %v726_v38  ;;  %791 = vst.msk [vmem:[#allocation2 + $0x38] sm:$0xff] %vm783_vm4, %v702_v9 }
 0x160   : > { %1117 = vrot.lane.b32.xlu1 %v3061_v28, %s3378_s22  ;;  %2448 = vst.msk [vmem:[#allocation3 + $0x30] sm:$0xff] %vm2440_vm11, %v3382_v24  ;;  %2449 = vst.msk [vmem:[#allocation3 + $0x38] sm:$0xff] %vm2440_vm11, %v3382_v24 }
 0x161   : > { %1093 = vrot.lane.b32.xlu0 %v3049_v20, %s3378_s22  ;;  %v4217_v20 = vld [vmem:[%s3417_s17 + $0x151] sm:$0xff]  ;;  %2450 = vst.msk [vmem:[#allocation3 + $0x40] sm:$0x3] %vm2443_vm12, %v3382_v24  ;;  %2453 = vst.msk [vmem:[#allocation3 + $0x58] sm:$0x3] %vm2443_vm12, %v3382_v24 }
 0x162   : > { %v917_v52 = vpop.permute.xlu1 %916  ;;  %v893_v5 = vpop.permute.xlu0 %892  ;;  %2451 = vst.msk [vmem:[#allocation3 + $0x48] sm:$0xff] %vm2440_vm11, %v3382_v24  ;;  %2452 = vst.msk [vmem:[#allocation3 + $0x50] sm:$0xff] %vm2440_vm11, %v3382_v24 }
 0x163   : > { %995 = vst.msk [vmem:[#allocation2 + $0x90] sm:$0xff] %vm976_vm5, %v917_v52  ;;  %983 = vst.msk [vmem:[#allocation2 + $0x30] sm:$0xff] %vm976_vm5, %v893_v5 }
 0x164   : > { %1695 = vrot.lane.b32.xlu1 %v3062_v47, %s3381_s8  ;;  %2454 = vst.msk [vmem:[#allocation3 + $0x60] sm:$0xff] %vm2440_vm11, %v3382_v24  ;;  %2455 = vst.msk [vmem:[#allocation3 + $0x68] sm:$0xff] %vm2440_vm11, %v3382_v24 }
 0x165   : > { %1671 = vrot.lane.b32.xlu0 %v3050_v49, %s3381_s8  ;;  %2456 = vst.msk [vmem:[#allocation3 + $0x70] sm:$0x3] %vm2443_vm12, %v3382_v24  ;;  %2459 = vst.msk [vmem:[#allocation3 + $0x88] sm:$0x3] %vm2443_vm12, %v3382_v24 }
 0x166   : > { %v1495_v58 = vpop.permute.xlu1 %1494  ;;  %v1471_v8 = vpop.permute.xlu0 %1470  ;;  %2457 = vst.msk [vmem:[#allocation3 + $0x78] sm:$0xff] %vm2440_vm11, %v3382_v24  ;;  %2458 = vst.msk [vmem:[#allocation3 + $0x80] sm:$0xff] %vm2440_vm11, %v3382_v24 }
 0x167   : > { %1574 = vst.msk [vmem:[#allocation2 + $0x88] sm:$0xff] %vm1556_vm8, %v1495_v58  ;;  %1562 = vst.msk [vmem:[#allocation2 + $0x28] sm:$0xff] %vm1556_vm8, %v1471_v8  ;;  %v3034_v58 = vld [vmem:[%s3417_s17 + $0x159] sm:$0xff]  ;;  %v3022_v8 = vld [vmem:[%s3417_s17 + $0xc9] sm:$0xff] }
 0x168   : > { %1119 = vrot.lane.b32.xlu1 %v3062_v47, %s3378_s22  ;;  %2460 = vst.msk [vmem:[#allocation3 + $0x90] sm:$0xff] %vm2440_vm11, %v3382_v24  ;;  %2461 = vst.msk [vmem:[#allocation3 + $0x98] sm:$0xff] %vm2440_vm11, %v3382_v24 }
 0x169   : > { %1095 = vrot.lane.b32.xlu0 %v3050_v49, %s3378_s22  ;;  %2462 = vst.msk [vmem:[#allocation3 + $0xa0] sm:$0x3] %vm2443_vm12, %v3382_v24  ;;  %2465 = vst.msk [vmem:[#allocation3 + $0xb8] sm:$0x3] %vm2443_vm12, %v3382_v24 }
 0x16a   : > { %v1686_v46 = vpop.permute.xlu1 %1685  ;;  %v1662_v30 = vpop.permute.xlu0 %1661  ;;  %2463 = vst.msk [vmem:[#allocation3 + $0xa8] sm:$0xff] %vm2440_vm11, %v3382_v24  ;;  %2464 = vst.msk [vmem:[#allocation3 + $0xb0] sm:$0xff] %vm2440_vm11, %v3382_v24 }
 0x16b   : > { %1766 = vst.msk [vmem:[#allocation2 + $0x80] sm:$0xff] %vm1749_vm9, %v1686_v46  ;;  %1754 = vst.msk [vmem:[#allocation2 + $0x20] sm:$0xff] %vm1749_vm9, %v1662_v30 }
 0x16c   : > { %1311 = vrot.lane.b32.xlu1 %v3620_v48, %s3379_s27  ;;  %2466 = vst.msk [vmem:[#allocation3 + $0xc0] sm:$0xff] %vm2440_vm11, %v3382_v24  ;;  %2467 = vst.msk [vmem:[#allocation3 + $0xc8] sm:$0xff] %vm2440_vm11, %v3382_v24 }
 0x16d   : > { %1287 = vrot.lane.b32.xlu0 %v3547_v33, %s3379_s27  ;;  %2468 = vst.msk [vmem:[#allocation3 + $0xd0] sm:$0x3] %vm2443_vm12, %v3382_v24  ;;  %2471 = vst.msk [vmem:[#allocation3 + $0xe8] sm:$0x3] %vm2443_vm12, %v3382_v24 }
 0x16e   : > { %v919_v62 = vpop.permute.xlu1 %918  ;;  %v895_v12 = vpop.permute.xlu0 %894  ;;  %2469 = vst.msk [vmem:[#allocation3 + $0xd8] sm:$0xff] %vm2440_vm11, %v3382_v24  ;;  %2470 = vst.msk [vmem:[#allocation3 + $0xe0] sm:$0xff] %vm2440_vm11, %v3382_v24 }
 0x16f   : > { %996 = vst.msk [vmem:[#allocation2 + $0x98] sm:$0xff] %vm976_vm5, %v919_v62  ;;  %984 = vst.msk [vmem:[#allocation2 + $0x38] sm:$0xff] %vm976_vm5, %v895_v12  ;;  %v3065_v62 = vld [vmem:[%s3417_s17 + $0x152] sm:$0xff]  ;;  %v3053_v12 = vld [vmem:[%s3417_s17 + $0xc2] sm:$0xff] }
 0x170   : > { %735 = vrot.lane.b32.xlu1 %v3620_v48, %s3376_s20  ;;  %v4761_v48 = vld [vmem:[#allocation4_spill] sm:$0xff]  ;;  %2472 = vst.msk [vmem:[#allocation3 + $0xf0] sm:$0xff] %vm2440_vm11, %v3382_v24  ;;  %2473 = vst.msk [vmem:[#allocation3 + $0xf8] sm:$0xff] %vm2440_vm11, %v3382_v24 }
 0x171   : > { %711 = vrot.lane.b32.xlu0 %v3547_v33, %s3376_s20  ;;  %v3031_v33 = vld [vmem:[%s3417_s17 + $0x139] sm:$0xff]  ;;  %2474 = vst.msk [vmem:[#allocation3 + $0x100] sm:$0x3] %vm2443_vm12, %v3382_v24  ;;  %2477 = vst.msk [vmem:[#allocation3 + $0x118] sm:$0x3] %vm2443_vm12, %v3382_v24 }
 0x172   : > { %v1110_v16 = vpop.permute.xlu1 %1109  ;;  %v1086_v29 = vpop.permute.xlu0 %1085  ;;  %v1786_v61 = vld [vmem:[#allocation2 + $0x20] sm:$0xff]  ;;  %2475 = vst.msk [vmem:[#allocation3 + $0x108] sm:$0xff] %vm2440_vm11, %v3382_v24  ;;  %2476 = vst.msk [vmem:[#allocation3 + $0x110] sm:$0xff] %vm2440_vm11, %v3382_v24 }
 0x173   : > { %v1798_v4 = vld [vmem:[#allocation2 + $0x80] sm:$0xff]  ;;  %1188 = vst.msk [vmem:[#allocation2 + $0x90] sm:$0xff] %vm1169_vm6, %v1110_v16  ;;  %1176 = vst.msk [vmem:[#allocation2 + $0x30] sm:$0xff] %vm1169_vm6, %v1086_v29  ;;  %3163 = vmatprep.mubr.msk.f32.mxu0 %vm1826_vm10, %v1786_v61 }
 0x174   : > { %3181 = vmatprep.mubr.msk.f32.mxu1 %vm1826_vm10, %v1798_v4  ;;  %1313 = vrot.lane.b32.xlu1 %v4760_v3, %s3379_s27  ;;  %2478 = vst.msk [vmem:[#allocation3 + $0x120] sm:$0xff] %vm2440_vm11, %v3382_v24  ;;  %2479 = vst.msk [vmem:[#allocation3 + $0x128] sm:$0xff] %vm2440_vm11, %v3382_v24 }
 0x175   : > { %1289 = vrot.lane.b32.xlu0 %v4761_v48, %s3379_s27  ;;  %2480 = vst.msk [vmem:[#allocation3 + $0x130] sm:$0x3] %vm2443_vm12, %v3382_v24  ;;  %2483 = vst.msk [vmem:[#allocation3 + $0x148] sm:$0x3] %vm2443_vm12, %v3382_v24 }
 0x176   : > { %v1688_v41 = vpop.permute.xlu1 %1687  ;;  %v1664_v17 = vpop.permute.xlu0 %1663  ;;  %2481 = vst.msk [vmem:[#allocation3 + $0x138] sm:$0xff] %vm2440_vm11, %v3382_v24  ;;  %2482 = vst.msk [vmem:[#allocation3 + $0x140] sm:$0xff] %vm2440_vm11, %v3382_v24 }
 0x177   : > { %1767 = vst.msk [vmem:[#allocation2 + $0x88] sm:$0xff] %vm1749_vm9, %v1688_v41  ;;  %1755 = vst.msk [vmem:[#allocation2 + $0x28] sm:$0xff] %vm1749_vm9, %v1664_v17 }
 0x178   : > { %1504 = vrot.lane.b32.xlu1 %v3031_v33, %s3380_s5  ;;  %2484 = vst.msk [vmem:[#allocation3 + $0x150] sm:$0xff] %vm2440_vm11, %v3382_v24  ;;  %2485 = vst.msk [vmem:[#allocation3 + $0x158] sm:$0xff] %vm2440_vm11, %v3382_v24 }
 0x179   : > { %1480 = vrot.lane.b32.xlu0 %v3019_v27, %s3380_s5  ;;  %2486 = vst.msk [vmem:[#allocation3 + $0x160] sm:$0x3] %vm2443_vm12, %v3382_v24  ;;  %2489 = vst.msk [vmem:[#allocation3 + $0x178] sm:$0x3] %vm2443_vm12, %v3382_v24 }
 0x17a   : > { %v1112_v23 = vpop.permute.xlu1 %1111  ;;  %v1088_v15 = vpop.permute.xlu0 %1087  ;;  %2487 = vst.msk [vmem:[#allocation3 + $0x168] sm:$0xff] %vm2440_vm11, %v3382_v24  ;;  %2488 = vst.msk [vmem:[#allocation3 + $0x170] sm:$0xff] %vm2440_vm11, %v3382_v24 }
 0x17b   : > { %1189 = vst.msk [vmem:[#allocation2 + $0x98] sm:$0xff] %vm1169_vm6, %v1112_v23  ;;  %1177 = vst.msk [vmem:[#allocation2 + $0x38] sm:$0xff] %vm1169_vm6, %v1088_v15  ;;  %v3003_v15 = vld [vmem:[%s3417_s17 + $0x168] sm:$0xff] }
 0x17c   : > { %737 = vrot.lane.b32.xlu1 %v4760_v3, %s3376_s20  ;;  %2490 = vst.msk [vmem:[#allocation3 + $0x180] sm:$0xff] %vm2440_vm11, %v3382_v24  ;;  %2491 = vst.msk [vmem:[#allocation3 + $0x188] sm:$0xff] %vm2440_vm11, %v3382_v24 }
 0x17d   : > { %713 = vrot.lane.b32.xlu0 %v2894_v53, %s3376_s20  ;;  %2492 = vst.msk [vmem:[#allocation3 + $0x190] sm:$0x3] %vm2443_vm12, %v3382_v24  ;;  %v3038_v24 = vld [vmem:[%s3417_s17 + $0x189] sm:$0xff] }
 0x17e   : > { %v1304_v26 = vpop.permute.xlu1 %1303  ;;  %v1280_v40 = vpop.permute.xlu0 %1279  ;;  %v1787_v11 = vld [vmem:[#allocation2 + $0x28] sm:$0xff] }
 0x17f   : > { %v1799_v51 = vld [vmem:[#allocation2 + $0x88] sm:$0xff]  ;;  %1382 = vst.msk [vmem:[#allocation2 + $0x90] sm:$0xff] %vm1363_vm7, %v1304_v26  ;;  %1370 = vst.msk [vmem:[#allocation2 + $0x30] sm:$0xff] %vm1363_vm7, %v1280_v40  ;;  %3164 = vmatmul.mubr.msk.f32.gmra.mrb[4].mxu0 %vm1826_vm10, %v1787_v11  ;;  %v2991_v26 = vld [vmem:[%s3417_s17 + $0xd8] sm:$0xff] }
 0x180   : > { %3182 = vmatmul.mubr.msk.f32.vlgmr.msra.gmra.mrb[0].mxu1 %vm1826_vm10, %v1799_v51  ;;  %928 = vrot.lane.b32.xlu1 %v3031_v33, %s3377_s21  ;;  %v3066_v33 = vld [vmem:[%s3417_s17 + $0x15a] sm:$0xff] }
 0x181   : > { %904 = vrot.lane.b32.xlu0 %v3019_v27, %s3377_s21  ;;  %v3054_v27 = vld [vmem:[%s3417_s17 + $0xca] sm:$0xff]  ;;  %v2992_v51 = vld [vmem:[%s3417_s17 + $0xe0] sm:$0xff] }
 0x182   : > { %v728_v10 = vpop.permute.xlu1 %727  ;;  %v704_v22 = vpop.permute.xlu0 %703 }
 0x183   : > { %804 = vst.msk [vmem:[#allocation2 + $0xa0] sm:$0xff] %vm783_vm4, %v728_v10  ;;  %792 = vst.msk [vmem:[#allocation2 + $0x40] sm:$0xff] %vm783_vm4, %v704_v22  ;;  %v3023_v10 = vld [vmem:[%s3417_s17 + $0xd9] sm:$0xff]  ;;  %v3004_v22 = vld [vmem:[%s3417_s17 + $0x170] sm:$0xff] }
 0x184   : > { %1506 = vrot.lane.b32.xlu1 %v3032_v37, %s3380_s5 }
 0x185   : > { %1482 = vrot.lane.b32.xlu0 %v3020_v0, %s3380_s5 }
 0x186   : > { %v1306_v36 = vpop.permute.xlu1 %1305  ;;  %v1282_v50 = vpop.permute.xlu0 %1281 }
 0x187   : > { %1383 = vst.msk [vmem:[#allocation2 + $0x98] sm:$0xff] %vm1363_vm7, %v1306_v36  ;;  %1371 = vst.msk [vmem:[#allocation2 + $0x38] sm:$0xff] %vm1363_vm7, %v1282_v50 }
 0x188   : > { %1697 = vrot.lane.b32.xlu1 %v3063_v56, %s3381_s8 }
 0x189   : > { %1673 = vrot.lane.b32.xlu0 %v3051_v7, %s3381_s8 }
 0x18a   : > { %v1497_v43 = vpop.permute.xlu1 %1496  ;;  %v1473_v35 = vpop.permute.xlu0 %1472 }
 0x18b   : > { %1575 = vst.msk [vmem:[#allocation2 + $0x90] sm:$0xff] %vm1556_vm8, %v1497_v43  ;;  %1563 = vst.msk [vmem:[#allocation2 + $0x30] sm:$0xff] %vm1556_vm8, %v1473_v35  ;;  %v3035_v43 = vld [vmem:[%s3417_s17 + $0x169] sm:$0xff] }
 0x18c   : > { %930 = vrot.lane.b32.xlu1 %v3032_v37, %s3377_s21 }
 0x18d   : > { %906 = vrot.lane.b32.xlu0 %v3020_v0, %s3377_s21 }
 0x18e   : > { %v730_v1 = vpop.permute.xlu1 %729  ;;  %v706_v57 = vpop.permute.xlu0 %705 }
 0x18f   : > { %805 = vst.msk [vmem:[#allocation2 + $0xa8] sm:$0xff] %vm783_vm4, %v730_v1  ;;  %793 = vst.msk [vmem:[#allocation2 + $0x48] sm:$0xff] %vm783_vm4, %v706_v57  ;;  %v3024_v57 = vld [vmem:[%s3417_s17 + $0xe1] sm:$0xff] }
 0x190   : > { %1121 = vrot.lane.b32.xlu1 %v3063_v56, %s3378_s22 }
 0x191   : > { %1097 = vrot.lane.b32.xlu0 %v3051_v7, %s3378_s22 }
 0x192   : > { %v921_v63 = vpop.permute.xlu1 %920  ;;  %v897_v2 = vpop.permute.xlu0 %896 }
 0x193   : > { %997 = vst.msk [vmem:[#allocation2 + $0xa0] sm:$0xff] %vm976_vm5, %v921_v63  ;;  %985 = vst.msk [vmem:[#allocation2 + $0x40] sm:$0xff] %vm976_vm5, %v897_v2  ;;  %v3055_v63 = vld [vmem:[%s3417_s17 + $0xda] sm:$0xff]  ;;  %v3036_v2 = vld [vmem:[%s3417_s17 + $0x171] sm:$0xff] }
 0x194   : > { %1699 = vrot.lane.b32.xlu1 %v3064_v6, %s3381_s8 }
 0x195   : > { %1675 = vrot.lane.b32.xlu0 %v3052_v34, %s3381_s8 }
 0x196   : > { %v1499_v42 = vpop.permute.xlu1 %1498  ;;  %v1475_v21 = vpop.permute.xlu0 %1474 }
 0x197   : > { %1576 = vst.msk [vmem:[#allocation2 + $0x98] sm:$0xff] %vm1556_vm8, %v1499_v42  ;;  %1564 = vst.msk [vmem:[#allocation2 + $0x38] sm:$0xff] %vm1556_vm8, %v1475_v21 }
 0x198   : > { %1123 = vrot.lane.b32.xlu1 %v3064_v6, %s3378_s22 }
 0x199   : > { %1099 = vrot.lane.b32.xlu0 %v3052_v34, %s3378_s22 }
 0x19a   : > { %v1690_v44 = vpop.permute.xlu1 %1689  ;;  %v1666_v31 = vpop.permute.xlu0 %1665 }
 0x19b   : > { %1768 = vst.msk [vmem:[#allocation2 + $0x90] sm:$0xff] %vm1749_vm9, %v1690_v44  ;;  %1756 = vst.msk [vmem:[#allocation2 + $0x30] sm:$0xff] %vm1749_vm9, %v1666_v31  ;;  %v3067_v31 = vld [vmem:[%s3417_s17 + $0x16a] sm:$0xff] }
 0x19c   : > { %1315 = vrot.lane.b32.xlu1 %v4762_v14, %s3379_s27 }
 0x19d   : > { %1291 = vrot.lane.b32.xlu0 %v2989_v60, %s3379_s27 }
 0x19e   : > { %v923_v18 = vpop.permute.xlu1 %922 }
 0x19f   : > { %v899_v59 = vpop.permute.xlu0 %898  ;;  %998 = vst.msk [vmem:[#allocation2 + $0xa8] sm:$0xff] %vm976_vm5, %v923_v18 }
 0x1a0   : > { %986 = vst.msk [vmem:[#allocation2 + $0x48] sm:$0xff] %vm976_vm5, %v899_v59  ;;  %739 = vrot.lane.b32.xlu1 %v4762_v14, %s3376_s20  ;;  %v3056_v59 = vld [vmem:[%s3417_s17 + $0xe2] sm:$0xff] }
 0x1a1   : > { %715 = vrot.lane.b32.xlu0 %v2989_v60, %s3376_s20 }
 0x1a2   : > { %v1114_v45 = vpop.permute.xlu1 %1113  ;;  %v1788_v39 = vld [vmem:[#allocation2 + $0x30] sm:$0xff] }
 0x1a3   : > { %v1090_v25 = vpop.permute.xlu0 %1089  ;;  %v1800_v28 = vld [vmem:[#allocation2 + $0x90] sm:$0xff]  ;;  %1190 = vst.msk [vmem:[#allocation2 + $0xa0] sm:$0xff] %vm1169_vm6, %v1114_v45  ;;  %3166 = vmatprep.mubr.msk.f32.mxu0 %vm1826_vm10, %v1788_v39 }
 0x1a4   : > { %1178 = vst.msk [vmem:[#allocation2 + $0x40] sm:$0xff] %vm1169_vm6, %v1090_v25  ;;  %3184 = vmatprep.mubr.msk.f32.mxu1 %vm1826_vm10, %v1800_v28  ;;  %1317 = vrot.lane.b32.xlu1 %v4203_v54, %s3379_s27  ;;  %v3068_v45 = vld [vmem:[%s3417_s17 + $0x172] sm:$0xff]  ;;  %v3005_v28 = vld [vmem:[%s3417_s17 + $0x180] sm:$0xff] }
 0x1a5   : > { %1293 = vrot.lane.b32.xlu0 %v4206_v55, %s3379_s27 }
 0x1a6   : > { %v1692_v32 = vpop.permute.xlu1 %1691 }
 0x1a7   : > { %v1668_v19 = vpop.permute.xlu0 %1667  ;;  %1769 = vst.msk [vmem:[#allocation2 + $0x98] sm:$0xff] %vm1749_vm9, %v1692_v32 }
 0x1a8   : > { %1757 = vst.msk [vmem:[#allocation2 + $0x38] sm:$0xff] %vm1749_vm9, %v1668_v19  ;;  %1508 = vrot.lane.b32.xlu1 %v4217_v20, %s3380_s5  ;;  %v3037_v19 = vld [vmem:[%s3417_s17 + $0x181] sm:$0xff] }
 0x1a9   : > { %1484 = vrot.lane.b32.xlu0 %v4220_v13, %s3380_s5 }
 0x1aa   : > { %v1116_v38 = vpop.permute.xlu1 %1115 }
 0x1ab   : > { %v1092_v9 = vpop.permute.xlu0 %1091  ;;  %1191 = vst.msk [vmem:[#allocation2 + $0xa8] sm:$0xff] %vm1169_vm6, %v1116_v38 }
 0x1ac   : > { %1179 = vst.msk [vmem:[#allocation2 + $0x48] sm:$0xff] %vm1169_vm6, %v1092_v9  ;;  %741 = vrot.lane.b32.xlu1 %v4203_v54, %s3376_s20 }
 0x1ad   : > { %717 = vrot.lane.b32.xlu0 %v4206_v55, %s3376_s20 }
 0x1ae   : > { %v1308_v47 = vpop.permute.xlu1 %1307  ;;  %v1801_v5 = vld [vmem:[#allocation2 + $0x98] sm:$0xff] }
 0x1af   : > { %v1284_v49 = vpop.permute.xlu0 %1283  ;;  %v1789_v52 = vld [vmem:[#allocation2 + $0x38] sm:$0xff]  ;;  %1384 = vst.msk [vmem:[#allocation2 + $0xa0] sm:$0xff] %vm1363_vm7, %v1308_v47  ;;  %3185 = vmatmul.mubr.msk.f32.gmra.mrb[2].mxu1 %vm1826_vm10, %v1801_v5  ;;  %v3069_v47 = vld [vmem:[%s3417_s17 + $0x182] sm:$0xff]  ;;  %v3070_v5 = vld [vmem:[%s3417_s17 + $0x18a] sm:$0xff] }
 0x1b0   : > { %1372 = vst.msk [vmem:[#allocation2 + $0x40] sm:$0xff] %vm1363_vm7, %v1284_v49  ;;  %3167 = vmatmul.mubr.msk.f32.gmra.mrb[6].mxu0 %vm1826_vm10, %v1789_v52  ;;  %932 = vrot.lane.b32.xlu1 %v4217_v20, %s3377_s21  ;;  %v3006_v20 = vld [vmem:[%s3417_s17 + $0x188] sm:$0xff] }
 0x1b1   : > { %908 = vrot.lane.b32.xlu0 %v4220_v13, %s3377_s21 }
 0x1b2   : > { %v732_v46 = vpop.permute.xlu1 %731 }
 0x1b3   : > { %v708_v30 = vpop.permute.xlu0 %707  ;;  %806 = vst.msk [vmem:[#allocation2 + $0xb0] sm:$0xff] %vm783_vm4, %v732_v46 }
 0x1b4   : > { %794 = vst.msk [vmem:[#allocation2 + $0x50] sm:$0xff] %vm783_vm4, %v708_v30  ;;  %1510 = vrot.lane.b32.xlu1 %v3034_v58, %s3380_s5 }
 0x1b5   : > { %1486 = vrot.lane.b32.xlu0 %v3022_v8, %s3380_s5 }
 0x1b6   : > { %v1310_v16 = vpop.permute.xlu1 %1309 }
 0x1b7   : > { %v1286_v29 = vpop.permute.xlu0 %1285  ;;  %1385 = vst.msk [vmem:[#allocation2 + $0xa8] sm:$0xff] %vm1363_vm7, %v1310_v16 }
 0x1b8   : > { %1373 = vst.msk [vmem:[#allocation2 + $0x48] sm:$0xff] %vm1363_vm7, %v1286_v29  ;;  %1701 = vrot.lane.b32.xlu1 %v3065_v62, %s3381_s8 }
 0x1b9   : > { %1677 = vrot.lane.b32.xlu0 %v3053_v12, %s3381_s8 }
 0x1ba   : > { %v1501_v61 = vpop.permute.xlu1 %1500 }
 0x1bb   : > { %v1477_v4 = vpop.permute.xlu0 %1476  ;;  %1577 = vst.msk [vmem:[#allocation2 + $0xa0] sm:$0xff] %vm1556_vm8, %v1501_v61 }
 0x1bc   : > { %1565 = vst.msk [vmem:[#allocation2 + $0x40] sm:$0xff] %vm1556_vm8, %v1477_v4  ;;  %934 = vrot.lane.b32.xlu1 %v3034_v58, %s3377_s21 }
 0x1bd   : > { %910 = vrot.lane.b32.xlu0 %v3022_v8, %s3377_s21 }
 0x1be   : > { %v734_v3 = vpop.permute.xlu1 %733 }
 0x1bf   : > { %v710_v48 = vpop.permute.xlu0 %709  ;;  %807 = vst.msk [vmem:[#allocation2 + $0xb8] sm:$0xff] %vm783_vm4, %v734_v3 }
 0x1c0   : > { %795 = vst.msk [vmem:[#allocation2 + $0x58] sm:$0xff] %vm783_vm4, %v710_v48  ;;  %1125 = vrot.lane.b32.xlu1 %v3065_v62, %s3378_s22  ;;  %v4404_v62 = vld [vmem:[%s4750_s2] ss:$0 sm:$0xff] }
 0x1c1   : > { %1101 = vrot.lane.b32.xlu0 %v3053_v12, %s3378_s22 }
 0x1c2   : > { %v925_v41 = vpop.permute.xlu1 %924 }
 0x1c3   : > { %v901_v17 = vpop.permute.xlu0 %900  ;;  %999 = vst.msk [vmem:[#allocation2 + $0xb0] sm:$0xff] %vm976_vm5, %v925_v41  ;;  %v3008_v41 = vld [vmem:[%s3417_s17 + $0x1a0] sm:$0xff] }
 0x1c4   : > { %987 = vst.msk [vmem:[#allocation2 + $0x50] sm:$0xff] %vm976_vm5, %v901_v17  ;;  %1703 = vrot.lane.b32.xlu1 %v3066_v33, %s3381_s8 }
 0x1c5   : > { %1679 = vrot.lane.b32.xlu0 %v3054_v27, %s3381_s8 }
 0x1c6   : > { %v1503_v53 = vpop.permute.xlu1 %1502 }
 0x1c7   : > { %v1479_v23 = vpop.permute.xlu0 %1478  ;;  %1578 = vst.msk [vmem:[#allocation2 + $0xa8] sm:$0xff] %vm1556_vm8, %v1503_v53 }
 0x1c8   : > { %1566 = vst.msk [vmem:[#allocation2 + $0x48] sm:$0xff] %vm1556_vm8, %v1479_v23  ;;  %1127 = vrot.lane.b32.xlu1 %v3066_v33, %s3378_s22 }
 0x1c9   : > { %1103 = vrot.lane.b32.xlu0 %v3054_v27, %s3378_s22  ;;  %v3007_v27 = vld [vmem:[%s3417_s17 + $0x198] sm:$0xff] }
 0x1ca   : > { %v1694_v40 = vpop.permute.xlu1 %1693 }
 0x1cb   : > { %v1670_v11 = vpop.permute.xlu0 %1669  ;;  %1770 = vst.msk [vmem:[#allocation2 + $0xa0] sm:$0xff] %vm1749_vm9, %v1694_v40 }
 0x1cc   : > { %1758 = vst.msk [vmem:[#allocation2 + $0x40] sm:$0xff] %vm1749_vm9, %v1670_v11  ;;  %1319 = vrot.lane.b32.xlu1 %v3003_v15, %s3379_s27  ;;  %v3039_v11 = vld [vmem:[%s3417_s17 + $0x199] sm:$0xff] }
 0x1cd   : > { %1295 = vrot.lane.b32.xlu0 %v2991_v26, %s3379_s27 }
 0x1ce   : > { %v927_v37 = vpop.permute.xlu1 %926 }
 0x1cf   : > { %v903_v0 = vpop.permute.xlu0 %902  ;;  %1000 = vst.msk [vmem:[#allocation2 + $0xb8] sm:$0xff] %vm976_vm5, %v927_v37 }
 0x1d0   : > { %988 = vst.msk [vmem:[#allocation2 + $0x58] sm:$0xff] %vm976_vm5, %v903_v0  ;;  %1297 = vrot.lane.b32.xlu1 %v2992_v51, %s3379_s27  ;;  %v3040_v51 = vld [vmem:[%s3417_s17 + $0x1a1] sm:$0xff] }
 0x1d1   : > { %743 = vrot.lane.b32.xlu0 %v3003_v15, %s3376_s20 }
 0x1d2   : > { %v1118_v56 = vpop.permute.xlu1 %1117  ;;  %v1802_v50 = vld [vmem:[#allocation2 + $0xa0] sm:$0xff] }
 0x1d3   : > { %v1094_v7 = vpop.permute.xlu0 %1093  ;;  %v1790_v36 = vld [vmem:[#allocation2 + $0x40] sm:$0xff]  ;;  %1192 = vst.msk [vmem:[#allocation2 + $0xb0] sm:$0xff] %vm1169_vm6, %v1118_v56  ;;  %3187 = vmatprep.mubr.msk.f32.mxu1 %vm1826_vm10, %v1802_v50 }
 0x1d4   : > { %1180 = vst.msk [vmem:[#allocation2 + $0x50] sm:$0xff] %vm1169_vm6, %v1094_v7  ;;  %3169 = vmatprep.mubr.msk.f32.mxu0 %vm1826_vm10, %v1790_v36  ;;  %1488 = vrot.lane.b32.xlu1 %v3023_v10, %s3380_s5  ;;  %v3071_v10 = vld [vmem:[%s3417_s17 + $0x19a] sm:$0xff] }
 0x1d5   : > { %1321 = vrot.lane.b32.xlu0 %v3004_v22, %s3379_s27 }
 0x1d6   : > { %v1696_v35 = vpop.permute.xlu1 %1695 }
 0x1d7   : > { %v1672_v1 = vpop.permute.xlu0 %1671  ;;  %1771 = vst.msk [vmem:[#allocation2 + $0xa8] sm:$0xff] %vm1749_vm9, %v1696_v35 }
 0x1d8   : > { %1759 = vst.msk [vmem:[#allocation2 + $0x48] sm:$0xff] %vm1749_vm9, %v1672_v1  ;;  %745 = vrot.lane.b32.xlu1 %v3004_v22, %s3376_s20  ;;  %v3072_v22 = vld [vmem:[%s3417_s17 + $0x1a2] sm:$0xff] }
 0x1d9   : > { %1512 = vrot.lane.b32.xlu0 %v3035_v43, %s3380_s5 }
 0x1da   : > { %v1120_v6 = vpop.permute.xlu1 %1119 }
 0x1db   : > { %v1096_v34 = vpop.permute.xlu0 %1095  ;;  %1193 = vst.msk [vmem:[#allocation2 + $0xb8] sm:$0xff] %vm1169_vm6, %v1120_v6 }
 0x1dc   : > { %1181 = vst.msk [vmem:[#allocation2 + $0x58] sm:$0xff] %vm1169_vm6, %v1096_v34  ;;  %1490 = vrot.lane.b32.xlu1 %v3024_v57, %s3380_s5 }
 0x1dd   : > { %936 = vrot.lane.b32.xlu0 %v3035_v43, %s3377_s21 }
 0x1de   : > { %v1312_v42 = vpop.permute.xlu1 %1311  ;;  %v1803_v44 = vld [vmem:[#allocation2 + $0xa8] sm:$0xff] }
 0x1df   : > { %v1288_v21 = vpop.permute.xlu0 %1287  ;;  %v1791_v60 = vld [vmem:[#allocation2 + $0x48] sm:$0xff]  ;;  %1386 = vst.msk [vmem:[#allocation2 + $0xb0] sm:$0xff] %vm1363_vm7, %v1312_v42  ;;  %3188 = vmatmul.mubr.msk.f32.gmra.mrb[4].mxu1 %vm1826_vm10, %v1803_v44 }
 0x1e0   : > { %1374 = vst.msk [vmem:[#allocation2 + $0x50] sm:$0xff] %vm1363_vm7, %v1288_v21  ;;  %3170 = vmatmul.mubr.msk.f32.gmra.mrb[8].mxu0 %vm1826_vm10, %v1791_v60  ;;  %1681 = vrot.lane.b32.xlu1 %v3055_v63, %s3381_s8 }
 0x1e1   : > { %1514 = vrot.lane.b32.xlu0 %v3036_v2, %s3380_s5 }
 0x1e2   : > { %v736_v14 = vpop.permute.xlu1 %735 }
 0x1e3   : > { %v712_v18 = vpop.permute.xlu0 %711  ;;  %808 = vst.msk [vmem:[#allocation2 + $0xc0] sm:$0xff] %vm783_vm4, %v736_v14 }
 0x1e4   : > { %796 = vst.msk [vmem:[#allocation2 + $0x60] sm:$0xff] %vm783_vm4, %v712_v18  ;;  %938 = vrot.lane.b32.xlu1 %v3036_v2, %s3377_s21 }
 0x1e5   : > { %1705 = vrot.lane.b32.xlu0 %v3067_v31, %s3381_s8 }
 0x1e6   : > { %v1314_v54 = vpop.permute.xlu1 %1313 }
 0x1e7   : > { %v1290_v55 = vpop.permute.xlu0 %1289  ;;  %1387 = vst.msk [vmem:[#allocation2 + $0xb8] sm:$0xff] %vm1363_vm7, %v1314_v54 }
 0x1e8   : > { %1375 = vst.msk [vmem:[#allocation2 + $0x58] sm:$0xff] %vm1363_vm7, %v1290_v55  ;;  %1683 = vrot.lane.b32.xlu1 %v3056_v59, %s3381_s8 }
 0x1e9   : > { %1129 = vrot.lane.b32.xlu0 %v3067_v31, %s3378_s22 }
 0x1ea   : > { %v1505_v25 = vpop.permute.xlu1 %1504 }
 0x1eb   : > { %v1481_v39 = vpop.permute.xlu0 %1480  ;;  %1579 = vst.msk [vmem:[#allocation2 + $0xb0] sm:$0xff] %vm1556_vm8, %v1505_v25 }
 0x1ec   : > { %1567 = vst.msk [vmem:[#allocation2 + $0x50] sm:$0xff] %vm1556_vm8, %v1481_v39  ;;  %1131 = vrot.lane.b32.xlu1 %v3068_v45, %s3378_s22 }
 0x1ed   : > { %1707 = vrot.lane.b32.xlu0 %v3068_v45, %s3381_s8 }
 0x1ee   : > { %v738_v13 = vpop.permute.xlu1 %737 }
 0x1ef   : > { %v714_v32 = vpop.permute.xlu0 %713  ;;  %809 = vst.msk [vmem:[#allocation2 + $0xc8] sm:$0xff] %vm783_vm4, %v738_v13 }
 0x1f0   : > { %797 = vst.msk [vmem:[#allocation2 + $0x68] sm:$0xff] %vm783_vm4, %v714_v32  ;;  %1325 = vrot.lane.b32.xlu1 %v3006_v20, %s3379_s27 }
 0x1f1   : > { %1323 = vrot.lane.b32.xlu0 %v3005_v28, %s3379_s27 }
 0x1f2   : > { %v929_v38 = vpop.permute.xlu1 %928 }
 0x1f3   : > { %v905_v9 = vpop.permute.xlu0 %904  ;;  %1001 = vst.msk [vmem:[#allocation2 + $0xc0] sm:$0xff] %vm976_vm5, %v929_v38 }
 0x1f4   : > { %989 = vst.msk [vmem:[#allocation2 + $0x60] sm:$0xff] %vm976_vm5, %v905_v9  ;;  %1518 = vrot.lane.b32.xlu1 %v3038_v24, %s3380_s5 }
 0x1f5   : > { %1516 = vrot.lane.b32.xlu0 %v3037_v19, %s3380_s5 }
 0x1f6   : > { %v1507_v49 = vpop.permute.xlu1 %1506 }
 0x1f7   : > { %v1483_v52 = vpop.permute.xlu0 %1482  ;;  %1580 = vst.msk [vmem:[#allocation2 + $0xb8] sm:$0xff] %vm1556_vm8, %v1507_v49 }
 0x1f8   : > { %1568 = vst.msk [vmem:[#allocation2 + $0x58] sm:$0xff] %vm1556_vm8, %v1483_v52  ;;  %747 = vrot.lane.b32.xlu1 %v3005_v28, %s3376_s20 }
 0x1f9   : > { %1709 = vrot.lane.b32.xlu0 %v3069_v47, %s3381_s8 }
 0x1fa   : > { %v1698_v58 = vpop.permute.xlu1 %1697 }
 0x1fb   : > { %v1674_v8 = vpop.permute.xlu0 %1673  ;;  %1772 = vst.msk [vmem:[#allocation2 + $0xb0] sm:$0xff] %vm1749_vm9, %v1698_v58 }
 0x1fc   : > { %1760 = vst.msk [vmem:[#allocation2 + $0x50] sm:$0xff] %vm1749_vm9, %v1674_v8  ;;  %749 = vrot.lane.b32.xlu1 %v3006_v20, %s3376_s20 }
 0x1fd   : > { %1711 = vrot.lane.b32.xlu0 %v3070_v5, %s3381_s8 }
 0x1fe   : > { %v931_v46 = vpop.permute.xlu1 %930 }
 0x1ff   : > { %v907_v30 = vpop.permute.xlu0 %906  ;;  %1002 = vst.msk [vmem:[#allocation2 + $0xc8] sm:$0xff] %vm976_vm5, %v931_v46 }
 0x200   : > { %990 = vst.msk [vmem:[#allocation2 + $0x68] sm:$0xff] %vm976_vm5, %v907_v30  ;;  %942 = vrot.lane.b32.xlu1 %v3038_v24, %s3377_s21 }
 0x201   : > { %940 = vrot.lane.b32.xlu0 %v3037_v19, %s3377_s21 }
 0x202   : > { %v1122_v12 = vpop.permute.xlu1 %1121  ;;  %v1804_v61 = vld [vmem:[#allocation2 + $0xb0] sm:$0xff]  ;;  %v3159_v4 = vpop.f32.mrb[0].mxu0 }
 0x203   : > { %v1098_v16 = vpop.permute.xlu0 %1097  ;;  %v1792_v29 = vld [vmem:[#allocation2 + $0x50] sm:$0xff]  ;;  %1194 = vst.msk [vmem:[#allocation2 + $0xc0] sm:$0xff] %vm1169_vm6, %v1122_v12  ;;  %3190 = vmatprep.mubr.msk.f32.mxu1 %vm1826_vm10, %v1804_v61  ;;  %v4411_v3 = vadd.f32 %v3159_v4, %v4404_v62  ;;  %v1993_v48 = vpop.f32.mrb[1].mxu0 }
 0x204   : > { %1182 = vst.msk [vmem:[#allocation2 + $0x60] sm:$0xff] %vm1169_vm6, %v1098_v16  ;;  %3172 = vmatprep.mubr.msk.f32.mxu0 %vm1826_vm10, %v1792_v29  ;;  %1135 = vrot.lane.b32.xlu1 %v3070_v5, %s3378_s22  ;;  %v4416_v33 = vadd.f32 %v4404_v62, %v1993_v48 }
 0x205   : > { %1133 = vrot.lane.b32.xlu0 %v3069_v47, %s3378_s22  ;;  %v2153_v17 = vmin.f32 %v4411_v3, 20.0 }
 0x206   : > { %v1700_v53 = vpop.permute.xlu1 %1699  ;;  %v2152_v15 = vmin.f32 %v4416_v33, 20.0 }
 0x207   : > { %v1676_v23 = vpop.permute.xlu0 %1675  ;;  %1773 = vst.msk [vmem:[#allocation2 + $0xb8] sm:$0xff] %vm1749_vm9, %v1700_v53  ;;  %v2186_v26 = vmul.f32 1.442695, %v2153_v17 }
 0x208   : > { %1761 = vst.msk [vmem:[#allocation2 + $0x58] sm:$0xff] %vm1749_vm9, %v1676_v23  ;;  %1329 = vrot.lane.b32.xlu1 %v3008_v41, %s3379_s27  ;;  %v2184_v40 = vmul.f32 1.442695, %v2152_v15 }
 0x209   : > { %1327 = vrot.lane.b32.xlu0 %v3007_v27, %s3379_s27  ;;  %3237 = vpow2.f32 %v2186_v26 }
 0x20a   : > { %v1124_v37 = vpop.permute.xlu1 %1123  ;;  %3239 = vpow2.f32 %v2184_v40 }
 0x20b   : > { %v1100_v0 = vpop.permute.xlu0 %1099  ;;  %1195 = vst.msk [vmem:[#allocation2 + $0xc8] sm:$0xff] %vm1169_vm6, %v1124_v37  ;;  %v2530_v37 = vld [vmem:[#allocation3 + $0x8] sm:$0xff] }
 0x20c   : > { %1183 = vst.msk [vmem:[#allocation2 + $0x68] sm:$0xff] %vm1169_vm6, %v1100_v0  ;;  %1522 = vrot.lane.b32.xlu1 %v3040_v51, %s3380_s5  ;;  %v2529_v51 = vld [vmem:[#allocation3] sm:$0xff] }
 0x20d   : > { %1520 = vrot.lane.b32.xlu0 %v3039_v11, %s3380_s5  ;;  %v2545_v0 = vld [vmem:[#allocation3 + $0x1] sm:$0xff] }
 0x20e   : > { %v1316_v56 = vpop.permute.xlu1 %1315  ;;  %v1805_v50 = vld [vmem:[#allocation2 + $0xb8] sm:$0xff] }
 0x20f   : > { %v1292_v7 = vpop.permute.xlu0 %1291  ;;  %v1793_v36 = vld [vmem:[#allocation2 + $0x58] sm:$0xff]  ;;  %1388 = vst.msk [vmem:[#allocation2 + $0xc0] sm:$0xff] %vm1363_vm7, %v1316_v56  ;;  %3191 = vmatmul.mubr.msk.f32.gmra.mrb[6].mxu1 %vm1826_vm10, %v1805_v50  ;;  %v2561_v50 = vmax.f32 %v2529_v51, %v2545_v0 }
 0x210   : > { %1376 = vst.msk [vmem:[#allocation2 + $0x60] sm:$0xff] %vm1363_vm7, %v1292_v7  ;;  %3173 = vmatmul.mubr.msk.f32.gmra.mrb[10].mxu0 %vm1826_vm10, %v1793_v36  ;;  %1715 = vrot.lane.b32.xlu1 %v3072_v22, %s3381_s8 }
 0x211   : > { %1713 = vrot.lane.b32.xlu0 %v3071_v10, %s3381_s8  ;;  %v2546_v10 = vld [vmem:[#allocation3 + $0x9] sm:$0xff] }
 0x212   : > { %v740_v43 = vpop.permute.xlu1 %739 }
 0x213   : > { %v716_v35 = vpop.permute.xlu0 %715  ;;  %810 = vst.msk [vmem:[#allocation2 + $0xd0] sm:$0xff] %vm783_vm4, %v740_v43  ;;  %v3238_v1 = vpop.eup %3237  ;;  %v2562_v43 = vmax.f32 %v2530_v37, %v2546_v10 }
 0x214   : > { %798 = vst.msk [vmem:[#allocation2 + $0x70] sm:$0xff] %vm783_vm4, %v716_v35  ;;  %v3240_v57 = vpop.eup %3239  ;;  %v2249_v6 = vadd.f32 2.0, %v3238_v1  ;;  %v2577_v35 = vld [vmem:[#allocation3 + $0x2] sm:$0xff] }
 0x215   : > { %v2248_v34 = vadd.f32 2.0, %v3240_v57 }
 0x216   : > { %v1318_v63 = vpop.permute.xlu1 %1317  ;;  %v2281_v42 = vmul.f32 %v3238_v1, %v2249_v6  ;;  %v2578_v1 = vld [vmem:[#allocation3 + $0xa] sm:$0xff] }
 0x217   : > { %v1294_v2 = vpop.permute.xlu0 %1293  ;;  %1389 = vst.msk [vmem:[#allocation2 + $0xc8] sm:$0xff] %vm1363_vm7, %v1318_v63  ;;  %v2280_v21 = vmul.f32 %v3240_v57, %v2248_v34  ;;  %v2593_v63 = vmax.f32 %v2561_v50, %v2577_v35 }
 0x218   : > { %1377 = vst.msk [vmem:[#allocation2 + $0x68] sm:$0xff] %vm1363_vm7, %v1294_v2  ;;  %v2313_v60 = vadd.f32 2.0, %v2281_v42  ;;  %v2594_v2 = vmax.f32 %v2562_v43, %v2578_v1 }
 0x219   : > { %v2312_v44 = vadd.f32 2.0, %v2280_v21 }
 0x21a   : > { %v1509_v31 = vpop.permute.xlu1 %1508  ;;  %3241 = vrcp.f32 %v2313_v60 }
 0x21b   : > { %v1485_v14 = vpop.permute.xlu0 %1484  ;;  %1581 = vst.msk [vmem:[#allocation2 + $0xc0] sm:$0xff] %vm1556_vm8, %v1509_v31  ;;  %3243 = vrcp.f32 %v2312_v44 }
 0x21c   : > { %1569 = vst.msk [vmem:[#allocation2 + $0x60] sm:$0xff] %vm1556_vm8, %v1485_v14 }
 0x21e   : > { %v742_v18 = vpop.permute.xlu1 %741 }
 0x21f   : > { %v718_v59 = vpop.permute.xlu0 %717  ;;  %811 = vst.msk [vmem:[#allocation2 + $0xd8] sm:$0xff] %vm783_vm4, %v742_v18 }
 0x220   : > { %799 = vst.msk [vmem:[#allocation2 + $0x78] sm:$0xff] %vm783_vm4, %v718_v59 }
 0x222   : > { %v933_v54 = vpop.permute.xlu1 %932  ;;  %v3162_v45 = vpop.f32.mrb[2].mxu0 }
 0x223   : > { %v909_v55 = vpop.permute.xlu0 %908  ;;  %1003 = vst.msk [vmem:[#allocation2 + $0xd0] sm:$0xff] %vm976_vm5, %v933_v54  ;;  %v4451_v25 = vadd.f32 %v3162_v45, %v4404_v62  ;;  %v2003_v39 = vpop.f32.mrb[3].mxu0 }
 0x224   : > { %991 = vst.msk [vmem:[#allocation2 + $0x70] sm:$0xff] %vm976_vm5, %v909_v55  ;;  %v3242_v28 = vpop.eup %3241  ;;  %v4454_v20 = vadd.f32 %v4404_v62, %v2003_v39 }
 0x225   : > { %v3244_v13 = vpop.eup %3243  ;;  %v2347_v32 = vmul.f32 %v3242_v28, %v2281_v42  ;;  %v2155_v19 = vmin.f32 %v4451_v25, 20.0 }
 0x226   : > { %v1511_v24 = vpop.permute.xlu1 %1510  ;;  %v2345_v9 = vmul.f32 %v3244_v13, %v2280_v21  ;;  %v2154_v47 = vmin.f32 %v4454_v20, 20.0 }
 0x227   : > { %v1487_v38 = vpop.permute.xlu0 %1486  ;;  %1582 = vst.msk [vmem:[#allocation2 + $0xc8] sm:$0xff] %vm1556_vm8, %v1511_v24  ;;  %v2409_v49 = vmul.f32 %v2347_v32, %v4411_v3  ;;  %v2190_v52 = vmul.f32 1.442695, %v2155_v19 }
 0x228   : > { %1570 = vst.msk [vmem:[#allocation2 + $0x68] sm:$0xff] %vm1556_vm8, %v1487_v38  ;;  %v2408_v5 = vmul.f32 %v2345_v9, %v4416_v33  ;;  %v2188_v58 = vmul.f32 1.442695, %v2154_v47 }
 0x229   : > { %2498 = vst.msk [vmem:[#allocation3 + $0x21] sm:$0xff] %vm2440_vm11, %v2409_v49  ;;  %3245 = vpow2.f32 %v2190_v52 }
 0x22a   : > { %v1702_v8 = vpop.permute.xlu1 %1701  ;;  %2497 = vst.msk [vmem:[#allocation3 + $0x19] sm:$0xff] %vm2440_vm11, %v2408_v5  ;;  %3247 = vpow2.f32 %v2188_v58 }
 0x22b   : > { %v1678_v46 = vpop.permute.xlu0 %1677  ;;  %1774 = vst.msk [vmem:[#allocation2 + $0xc0] sm:$0xff] %vm1749_vm9, %v1702_v8 }
 0x22c   : > { %1762 = vst.msk [vmem:[#allocation2 + $0x60] sm:$0xff] %vm1749_vm9, %v1678_v46 }
 0x22e   : > { %v935_v30 = vpop.permute.xlu1 %934 }
 0x22f   : > { %v911_v12 = vpop.permute.xlu0 %910  ;;  %1004 = vst.msk [vmem:[#allocation2 + $0xd8] sm:$0xff] %vm976_vm5, %v935_v30 }
 0x230   : > { %992 = vst.msk [vmem:[#allocation2 + $0x78] sm:$0xff] %vm976_vm5, %v911_v12  ;;  %v2642_v13 = vld [vmem:[#allocation3 + $0x21] sm:$0xff] }
 0x231   : > { %v2609_v21 = vld [vmem:[#allocation3 + $0x18] sm:$0xff]  ;;  %v2610_v60 = vld [vmem:[#allocation3 + $0x20] sm:$0xff] }
 0x232   : > { %v1126_v16 = vpop.permute.xlu1 %1125  ;;  %v1806_v4 = vld [vmem:[#allocation2 + $0xc0] sm:$0xff]  ;;  %v2625_v54 = vmax.f32 %v2593_v63, %v2609_v21  ;;  %v2626_v55 = vmax.f32 %v2594_v2, %v2610_v60 }
 0x233   : > { %v1102_v29 = vpop.permute.xlu0 %1101  ;;  %1196 = vst.msk [vmem:[#allocation2 + $0xd0] sm:$0xff] %vm1169_vm6, %v1126_v16  ;;  %v1794_v61 = vld [vmem:[#allocation2 + $0x60] sm:$0xff]  ;;  %v3246_v3 = vpop.eup %3245  ;;  %3193 = vmatprep.mubr.msk.f32.mxu1 %vm1826_vm10, %v1806_v4 }
 0x234   : > { %1184 = vst.msk [vmem:[#allocation2 + $0x70] sm:$0xff] %vm1169_vm6, %v1102_v29  ;;  %3175 = vmatprep.mubr.msk.f32.mxu0 %vm1826_vm10, %v1794_v61  ;;  %v3248_v48 = vpop.eup %3247  ;;  %v2251_v33 = vadd.f32 2.0, %v3246_v3  ;;  %v2641_v32 = vld [vmem:[#allocation3 + $0x19] sm:$0xff]  ;;  %v2658_v24 = vmax.f32 %v2626_v55, %v2642_v13 }
 0x235   : > { %v2250_v27 = vadd.f32 2.0, %v3248_v48  ;;  %v2657_v19 = vmax.f32 %v2625_v54, %v2641_v32  ;;  %v2673_v9 = vld [vmem:[#allocation3 + $0x1a] sm:$0xff] }
 0x236   : > { %v1704_v41 = vpop.permute.xlu1 %1703  ;;  %v2283_v53 = vmul.f32 %v3246_v3, %v2251_v33 }
 0x237   : > { %v1680_v17 = vpop.permute.xlu0 %1679  ;;  %1775 = vst.msk [vmem:[#allocation2 + $0xc8] sm:$0xff] %vm1749_vm9, %v1704_v41  ;;  %v2282_v23 = vmul.f32 %v3248_v48, %v2250_v27  ;;  %v2689_v47 = vmax.f32 %v2657_v19, %v2673_v9 }
 0x238   : > { %1763 = vst.msk [vmem:[#allocation2 + $0x68] sm:$0xff] %vm1749_vm9, %v1680_v17  ;;  %v2315_v15 = vadd.f32 2.0, %v2283_v53 }
 0x239   : > { %v2314_v26 = vadd.f32 2.0, %v2282_v23 }
 0x23a   : > { %v1128_v40 = vpop.permute.xlu1 %1127  ;;  %3249 = vrcp.f32 %v2315_v15 }
 0x23b   : > { %v1104_v11 = vpop.permute.xlu0 %1103  ;;  %1197 = vst.msk [vmem:[#allocation2 + $0xd8] sm:$0xff] %vm1169_vm6, %v1128_v40  ;;  %3251 = vrcp.f32 %v2314_v26 }
 0x23c   : > { %1185 = vst.msk [vmem:[#allocation2 + $0x78] sm:$0xff] %vm1169_vm6, %v1104_v11 }
 0x23e   : > { %v1320_v22 = vpop.permute.xlu1 %1319  ;;  %v1807_v36 = vld [vmem:[#allocation2 + $0xc8] sm:$0xff] }
 0x23f   : > { %v1296_v56 = vpop.permute.xlu0 %1295  ;;  %v1795_v7 = vld [vmem:[#allocation2 + $0x68] sm:$0xff]  ;;  %1390 = vst.msk [vmem:[#allocation2 + $0xd0] sm:$0xff] %vm1363_vm7, %v1320_v22  ;;  %3194 = vmatmul.mubr.msk.f32.gmra.mrb[8].mxu1 %vm1826_vm10, %v1807_v36 }
 0x240   : > { %1378 = vst.msk [vmem:[#allocation2 + $0x70] sm:$0xff] %vm1363_vm7, %v1296_v56  ;;  %3176 = vmatmul.mubr.msk.f32.gmra.mrb[12].mxu0 %vm1826_vm10, %v1795_v7 }
 0x242   : > { %v1298_v57 = vpop.permute.xlu1 %1297 }
 0x243   : > { %v744_v6 = vpop.permute.xlu0 %743  ;;  %1379 = vst.msk [vmem:[#allocation2 + $0x78] sm:$0xff] %vm1363_vm7, %v1298_v57 }
 0x244   : > { %812 = vst.msk [vmem:[#allocation2 + $0xe0] sm:$0xff] %vm783_vm4, %v744_v6  ;;  %v3250_v34 = vpop.eup %3249 }
 0x245   : > { %v3252_v42 = vpop.eup %3251  ;;  %v2351_v44 = vmul.f32 %v3250_v34, %v2283_v53 }
 0x246   : > { %v1489_v31 = vpop.permute.xlu1 %1488  ;;  %v2349_v18 = vmul.f32 %v3252_v42, %v2282_v23 }
 0x247   : > { %v1322_v14 = vpop.permute.xlu0 %1321  ;;  %1571 = vst.msk [vmem:[#allocation2 + $0x70] sm:$0xff] %vm1556_vm8, %v1489_v31  ;;  %v2411_v59 = vmul.f32 %v2351_v44, %v4451_v25 }
 0x248   : > { %1391 = vst.msk [vmem:[#allocation2 + $0xd8] sm:$0xff] %vm1363_vm7, %v1322_v14  ;;  %v2410_v45 = vmul.f32 %v2349_v18, %v4454_v20  ;;  %v2674_v20 = vld [vmem:[#allocation3 + $0x22] sm:$0xff] }
 0x249   : > { %2500 = vst.msk [vmem:[#allocation3 + $0x39] sm:$0xff] %vm2440_vm11, %v2411_v59  ;;  %v2690_v52 = vmax.f32 %v2658_v24, %v2674_v20 }
 0x24a   : > { %v746_v39 = vpop.permute.xlu1 %745  ;;  %2499 = vst.msk [vmem:[#allocation3 + $0x31] sm:$0xff] %vm2440_vm11, %v2410_v45 }
 0x24b   : > { %v1513_v28 = vpop.permute.xlu0 %1512  ;;  %813 = vst.msk [vmem:[#allocation2 + $0xe8] sm:$0xff] %vm783_vm4, %v746_v39 }
 0x24c   : > { %1583 = vst.msk [vmem:[#allocation2 + $0xd0] sm:$0xff] %vm1556_vm8, %v1513_v28 }
 0x24e   : > { %v1491_v25 = vpop.permute.xlu1 %1490 }
 0x24f   : > { %v937_v38 = vpop.permute.xlu0 %936  ;;  %1572 = vst.msk [vmem:[#allocation2 + $0x78] sm:$0xff] %vm1556_vm8, %v1491_v25 }
 0x250   : > { %1005 = vst.msk [vmem:[#allocation2 + $0xe0] sm:$0xff] %vm976_vm5, %v937_v38  ;;  %v2548_v49 = vld [vmem:[#allocation3 + $0x39] sm:$0xff] }
 0x251   : > { %v2531_v5 = vld [vmem:[#allocation3 + $0x30] sm:$0xff]  ;;  %v2532_v58 = vld [vmem:[#allocation3 + $0x38] sm:$0xff] }
 0x252   : > { %v2547_v8 = vld [vmem:[#allocation3 + $0x31] sm:$0xff]  ;;  %v1682_v46 = vpop.permute.xlu1 %1681  ;;  %v2564_v16 = vmax.f32 %v2532_v58, %v2548_v49  ;;  %v2722_v29 = vmax.f32 %v2689_v47, %v2531_v5  ;;  %v2723_v61 = vmax.f32 %v2690_v52, %v2532_v58  ;;  %v3165_v4 = vpop.f32.mrb[4].mxu0  ;;  %v2580_v53 = vld [vmem:[#allocation3 + $0x3a] sm:$0xff] }
 0x253   : > { %v1515_v30 = vpop.permute.xlu0 %1514  ;;  %v2563_v12 = vmax.f32 %v2531_v5, %v2547_v8  ;;  %1764 = vst.msk [vmem:[#allocation2 + $0x70] sm:$0xff] %vm1749_vm9, %v1682_v46  ;;  %v3183_v3 = vpop.f32.mrb[0].mxu1  ;;  %v2579_v48 = vld [vmem:[#allocation3 + $0x32] sm:$0xff]  ;;  %v4496_v33 = vadd.f32 %v3165_v4, %v4404_v62 }
 0x254   : > { %1584 = vst.msk [vmem:[#allocation2 + $0xd8] sm:$0xff] %vm1556_vm8, %v1515_v30  ;;  %v4499_v27 = vadd.f32 %v3183_v3, %v4404_v62  ;;  %v2013_v41 = vpop.f32.mrb[5].mxu0  ;;  %v2073_v17 = vpop.f32.mrb[1].mxu1  ;;  %v2754_v15 = vmax.f32 %v2722_v29, %v2547_v8  ;;  %v2755_v26 = vmax.f32 %v2723_v61, %v2548_v49  ;;  %v4513_v37 = vmax.f32 %v2564_v16, %v2580_v53 }
 0x255   : > { %v4501_v23 = vmax.f32 %v2563_v12, %v2579_v48  ;;  %v4504_v40 = vadd.f32 %v4404_v62, %v2013_v41  ;;  %v2157_v11 = vmin.f32 %v4496_v33, 20.0  ;;  %v4516_v0 = vadd.f32 %v4404_v62, %v2073_v17 }
 0x256   : > { %v2169_v51 = vmin.f32 %v4499_v27, 20.0  ;;  %v939_v10 = vpop.permute.xlu1 %938  ;;  %v2786_v56 = vmax.f32 %v2754_v15, %v2579_v48  ;;  %v2787_v7 = vmax.f32 %v2755_v26, %v2580_v53 }
 0x257   : > { %v1706_v22 = vpop.permute.xlu0 %1705  ;;  %v2156_v36 = vmin.f32 %v4504_v40, 20.0  ;;  %1006 = vst.msk [vmem:[#allocation2 + $0xe8] sm:$0xff] %vm976_vm5, %v939_v10  ;;  %v2194_v50 = vmul.f32 1.442695, %v2157_v11  ;;  %v2168_v35 = vmin.f32 %v4516_v0, 20.0 }
 0x258   : > { %1776 = vst.msk [vmem:[#allocation2 + $0xd0] sm:$0xff] %vm1749_vm9, %v1706_v22  ;;  %v2218_v43 = vmul.f32 1.442695, %v2169_v51 }
 0x259   : > { %2802 = vst.msk [vmem:[%s4509_s15] sm:$0xff] %vm2440_vm11, %v2786_v56  ;;  %2803 = vst.msk [vmem:[%s4509_s15 + $0x8] sm:$0xff] %vm2440_vm11, %v2787_v7  ;;  %v2192_v1 = vmul.f32 1.442695, %v2156_v36  ;;  %3253 = vpow2.f32 %v2194_v50  ;;  %v2216_v57 = vmul.f32 1.442695, %v2168_v35 }
 0x25a   : > { %v1684_v6 = vpop.permute.xlu1 %1683  ;;  %v1796_v63 = vld [vmem:[#allocation2 + $0x70] sm:$0xff]  ;;  %3255 = vpow2.f32 %v2218_v43 }
 0x25b   : > { %v1130_v34 = vpop.permute.xlu0 %1129  ;;  %1765 = vst.msk [vmem:[#allocation2 + $0x78] sm:$0xff] %vm1749_vm9, %v1684_v6  ;;  %3178 = vmatprep.mubr.msk.f32.mxu0 %vm1826_vm10, %v1796_v63  ;;  %3257 = vpow2.f32 %v2192_v1 }
 0x25c   : > { %1198 = vst.msk [vmem:[#allocation2 + $0xe0] sm:$0xff] %vm1169_vm6, %v1130_v34  ;;  %3259 = vpow2.f32 %v2216_v57 }
 0x25e   : > { %v1132_v42 = vpop.permute.xlu1 %1131 }
 0x25f   : > { %v1708_v2 = vpop.permute.xlu0 %1707  ;;  %v1808_v21 = vld [vmem:[#allocation2 + $0xd0] sm:$0xff]  ;;  %1199 = vst.msk [vmem:[#allocation2 + $0xe8] sm:$0xff] %vm1169_vm6, %v1132_v42 }
 0x260   : > { %1777 = vst.msk [vmem:[#allocation2 + $0xd8] sm:$0xff] %vm1749_vm9, %v1708_v2  ;;  %3196 = vmatprep.mubr.msk.f32.mxu1 %vm1826_vm10, %v1808_v21 }
 0x262   : > { %v1326_v44 = vpop.permute.xlu1 %1325  ;;  %v1797_v31 = vld [vmem:[#allocation2 + $0x78] sm:$0xff] }
 0x263   : > { %v1324_v60 = vpop.permute.xlu0 %1323  ;;  %1393 = vst.msk [vmem:[#allocation2 + $0xe8] sm:$0xff] %vm1363_vm7, %v1326_v44  ;;  %3179 = vmatmul.mubr.msk.f32.gmra.mrb[14].mxu0 %vm1826_vm10, %v1797_v31  ;;  %v3254_v14 = vpop.eup %3253 }
 0x264   : > { %1392 = vst.msk [vmem:[#allocation2 + $0xe0] sm:$0xff] %vm1363_vm7, %v1324_v60  ;;  %v3256_v18 = vpop.eup %3255  ;;  %v2253_v59 = vadd.f32 2.0, %v3254_v14 }
 0x265   : > { %v3258_v54 = vpop.eup %3257  ;;  %v2265_v55 = vadd.f32 2.0, %v3256_v18 }
 0x266   : > { %v1519_v39 = vpop.permute.xlu1 %1518  ;;  %v3260_v13 = vpop.eup %3259  ;;  %v2285_v32 = vmul.f32 %v3254_v14, %v2253_v59  ;;  %v2252_v19 = vadd.f32 2.0, %v3258_v54 }
 0x267   : > { %v1517_v45 = vpop.permute.xlu0 %1516  ;;  %v1809_v28 = vld [vmem:[#allocation2 + $0xd8] sm:$0xff]  ;;  %1586 = vst.msk [vmem:[#allocation2 + $0xe8] sm:$0xff] %vm1556_vm8, %v1519_v39  ;;  %v2297_v24 = vmul.f32 %v3256_v18, %v2265_v55  ;;  %v2264_v25 = vadd.f32 2.0, %v3260_v13 }
 0x268   : > { %1585 = vst.msk [vmem:[#allocation2 + $0xe0] sm:$0xff] %vm1556_vm8, %v1517_v45  ;;  %3197 = vmatmul.mubr.msk.f32.gmra.mrb[10].mxu1 %vm1826_vm10, %v1809_v28  ;;  %v2317_v38 = vadd.f32 2.0, %v2285_v32  ;;  %v2284_v20 = vmul.f32 %v3258_v54, %v2252_v19 }
 0x269   : > { %v2329_v9 = vadd.f32 2.0, %v2297_v24  ;;  %v2296_v47 = vmul.f32 %v3260_v13, %v2264_v25 }
 0x26a   : > { %v748_v52 = vpop.permute.xlu1 %747  ;;  %3261 = vrcp.f32 %v2317_v38  ;;  %v2316_v5 = vadd.f32 2.0, %v2284_v20 }
 0x26b   : > { %v1710_v49 = vpop.permute.xlu0 %1709  ;;  %814 = vst.msk [vmem:[#allocation2 + $0xf0] sm:$0xff] %vm783_vm4, %v748_v52  ;;  %3263 = vrcp.f32 %v2329_v9  ;;  %v2328_v58 = vadd.f32 2.0, %v2296_v47 }
 0x26c   : > { %1778 = vst.msk [vmem:[#allocation2 + $0xe0] sm:$0xff] %vm1749_vm9, %v1710_v49  ;;  %3265 = vrcp.f32 %v2316_v5 }
 0x26d   : > { %3267 = vrcp.f32 %v2328_v58 }
 0x26e   : > { %v750_v46 = vpop.permute.xlu1 %749 }
 0x26f   : > { %v1712_v8 = vpop.permute.xlu0 %1711  ;;  %815 = vst.msk [vmem:[#allocation2 + $0xf8] sm:$0xff] %vm783_vm4, %v750_v46 }
 0x270   : > { %1779 = vst.msk [vmem:[#allocation2 + $0xe8] sm:$0xff] %vm1749_vm9, %v1712_v8 }
 0x272   : > { %v943_v12 = vpop.permute.xlu1 %942 }
 0x273   : > { %v941_v30 = vpop.permute.xlu0 %940  ;;  %v1810_v16 = vld [vmem:[#allocation2 + $0xe0] sm:$0xff]  ;;  %1008 = vst.msk [vmem:[#allocation2 + $0xf8] sm:$0xff] %vm976_vm5, %v943_v12 }
 0x274   : > { %1007 = vst.msk [vmem:[#allocation2 + $0xf0] sm:$0xff] %vm976_vm5, %v941_v30  ;;  %3199 = vmatprep.mubr.msk.f32.mxu1 %vm1826_vm10, %v1810_v16  ;;  %v3262_v29 = vpop.eup %3261 }
 0x275   : > { %v3264_v61 = vpop.eup %3263  ;;  %v2355_v4 = vmul.f32 %v3262_v29, %v2285_v32 }
 0x276   : > { %v1136_v48 = vpop.permute.xlu1 %1135  ;;  %v3266_v17 = vpop.eup %3265  ;;  %v2379_v53 = vmul.f32 %v3264_v61, %v2297_v24 }
 0x277   : > { %v1134_v3 = vpop.permute.xlu0 %1133  ;;  %v1811_v41 = vld [vmem:[#allocation2 + $0xe8] sm:$0xff]  ;;  %1201 = vst.msk [vmem:[#allocation2 + $0xf8] sm:$0xff] %vm1169_vm6, %v1136_v48  ;;  %v3268_v15 = vpop.eup %3267  ;;  %v2413_v26 = vmul.f32 %v2355_v4, %v4496_v33  ;;  %v2353_v11 = vmul.f32 %v3266_v17, %v2284_v20 }
 0x278   : > { %1200 = vst.msk [vmem:[#allocation2 + $0xf0] sm:$0xff] %vm1169_vm6, %v1134_v3  ;;  %3200 = vmatmul.mubr.msk.f32.gmra.mrb[12].mxu1 %vm1826_vm10, %v1811_v41  ;;  %v2425_v51 = vmul.f32 %v2379_v53, %v4499_v27  ;;  %v2377_v10 = vmul.f32 %v3268_v15, %v2296_v47 }
 0x279   : > { %2502 = vst.msk [vmem:[#allocation3 + $0x51] sm:$0xff] %vm2440_vm11, %v2413_v26  ;;  %v2412_v22 = vmul.f32 %v2353_v11, %v4504_v40 }
 0x27a   : > { %v1330_v7 = vpop.permute.xlu1 %1329  ;;  %2514 = vst.msk [vmem:[#allocation3 + $0xe1] sm:$0xff] %vm2440_vm11, %v2425_v51  ;;  %v2424_v36 = vmul.f32 %v2377_v10, %v4516_v0 }
 0x27b   : > { %v1328_v56 = vpop.permute.xlu0 %1327  ;;  %1395 = vst.msk [vmem:[#allocation2 + $0xf8] sm:$0xff] %vm1363_vm7, %v1330_v7 }
 0x27c   : > { %1394 = vst.msk [vmem:[#allocation2 + $0xf0] sm:$0xff] %vm1363_vm7, %v1328_v56 }
 0x27d   : > { %2501 = vst.msk [vmem:[#allocation3 + $0x49] sm:$0xff] %vm2440_vm11, %v2412_v22  ;;  %2513 = vst.msk [vmem:[#allocation3 + $0xd9] sm:$0xff] %vm2440_vm11, %v2424_v36 }
 0x27e   : > { %v1523_v27 = vpop.permute.xlu1 %1522 }
 0x27f   : > { %v1521_v33 = vpop.permute.xlu0 %1520  ;;  %1588 = vst.msk [vmem:[#allocation2 + $0xf8] sm:$0xff] %vm1556_vm8, %v1523_v27 }
 0x280   : > { %1587 = vst.msk [vmem:[#allocation2 + $0xf0] sm:$0xff] %vm1556_vm8, %v1521_v33  ;;  %v2644_v11 = vld [vmem:[#allocation3 + $0x51] sm:$0xff] }
 0x281   : > { %v2676_v56 = vld [vmem:[#allocation3 + $0x52] sm:$0xff] }
 0x282   : > { %v3186_v43 = vpop.f32.mrb[2].mxu1  ;;  %v1716_v35 = vpop.permute.xlu1 %1715 }
 0x283   : > { %v1714_v40 = vpop.permute.xlu0 %1713  ;;  %v3168_v50 = vpop.f32.mrb[6].mxu0  ;;  %v2089_v1 = vadd.f32 %v3186_v43, %v4404_v62  ;;  %1781 = vst.msk [vmem:[#allocation2 + $0xf8] sm:$0xff] %vm1749_vm9, %v1716_v35 }
 0x284   : > { %1780 = vst.msk [vmem:[#allocation2 + $0xf0] sm:$0xff] %vm1749_vm9, %v1714_v40  ;;  %v2029_v0 = vadd.f32 %v3168_v50, %v4404_v62  ;;  %v2023_v57 = vpop.f32.mrb[7].mxu0  ;;  %v2083_v6 = vpop.f32.mrb[3].mxu1  ;;  %v2611_v12 = vld [vmem:[#allocation3 + $0x48] sm:$0xff]  ;;  %v2612_v16 = vld [vmem:[#allocation3 + $0x50] sm:$0xff] }
 0x285   : > { %v2024_v63 = vadd.f32 %v4404_v62, %v2023_v57  ;;  %v2084_v2 = vadd.f32 %v4404_v62, %v2083_v6  ;;  %v2171_v42 = vmin.f32 %v2089_v1, 20.0  ;;  %v2627_v17 = vmax.f32 %v4501_v23, %v2611_v12  ;;  %v2643_v51 = vld [vmem:[#allocation3 + $0x49] sm:$0xff] }
 0x286   : > { %v2159_v34 = vmin.f32 %v2029_v0, 20.0  ;;  %v2628_v53 = vmax.f32 %v4513_v37, %v2612_v16  ;;  %v2675_v7 = vld [vmem:[#allocation3 + $0x4a] sm:$0xff] }
 0x287   : > { %v2158_v60 = vmin.f32 %v2024_v63, 20.0  ;;  %v2170_v44 = vmin.f32 %v2084_v2, 20.0  ;;  %v2222_v31 = vmul.f32 1.442695, %v2171_v42  ;;  %v2659_v10 = vmax.f32 %v2627_v17, %v2643_v51 }
 0x288   : > { %v2198_v21 = vmul.f32 1.442695, %v2159_v34  ;;  %v2660_v22 = vmax.f32 %v2628_v53, %v2644_v11 }
 0x289   : > { %v2196_v14 = vmul.f32 1.442695, %v2158_v60  ;;  %v2220_v18 = vmul.f32 1.442695, %v2170_v44  ;;  %v2691_v23 = vmax.f32 %v2659_v10, %v2675_v7 }
 0x28a   : > { %3269 = vpow2.f32 %v2198_v21  ;;  %v1813_v54 = vld [vmem:[#allocation2 + $0xf8] sm:$0xff]  ;;  %v2692_v33 = vmax.f32 %v2660_v22, %v2676_v56 }
 0x28b   : > { %3271 = vpow2.f32 %v2222_v31  ;;  %v1812_v59 = vld [vmem:[#allocation2 + $0xf0] sm:$0xff] }
 0x28c   : > { %3273 = vpow2.f32 %v2196_v14  ;;  %3202 = vmatprep.mubr.msk.f32.mxu1 %vm1826_vm10, %v1812_v59 }
 0x28d   : > { %3275 = vpow2.f32 %v2220_v18  ;;  %3203 = vmatmul.mubr.msk.f32.gmra.mrb[14].mxu1 %vm1826_vm10, %v1813_v54 }
 0x294   : > { %v3270_v55 = vpop.eup %3269 }
 0x295   : > { %v3272_v45 = vpop.eup %3271  ;;  %v2255_v39 = vadd.f32 2.0, %v3270_v55 }
 0x296   : > { %v3274_v28 = vpop.eup %3273  ;;  %v2267_v13 = vadd.f32 2.0, %v3272_v45 }
 0x297   : > { %v3276_v32 = vpop.eup %3275  ;;  %v2287_v19 = vmul.f32 %v3270_v55, %v2255_v39  ;;  %v2254_v24 = vadd.f32 2.0, %v3274_v28 }
 0x298   : > { %v2299_v25 = vmul.f32 %v3272_v45, %v2267_v13  ;;  %v2266_v38 = vadd.f32 2.0, %v3276_v32 }
 0x299   : > { %v2319_v20 = vadd.f32 2.0, %v2287_v19  ;;  %v2286_v9 = vmul.f32 %v3274_v28, %v2254_v24 }
 0x29a   : > { %v2331_v47 = vadd.f32 2.0, %v2299_v25  ;;  %v2298_v49 = vmul.f32 %v3276_v32, %v2266_v38 }
 0x29b   : > { %3277 = vrcp.f32 %v2319_v20  ;;  %v2318_v52 = vadd.f32 2.0, %v2286_v9 }
 0x29c   : > { %3279 = vrcp.f32 %v2331_v47  ;;  %v2330_v5 = vadd.f32 2.0, %v2298_v49 }
 0x29d   : > { %3281 = vrcp.f32 %v2318_v52 }
 0x29e   : > { %3283 = vrcp.f32 %v2330_v5 }
 0x2a5   : > { %v3278_v58 = vpop.eup %3277 }
 0x2a6   : > { %v3280_v8 = vpop.eup %3279  ;;  %v2359_v46 = vmul.f32 %v3278_v58, %v2287_v19 }
 0x2a7   : > { %v3282_v30 = vpop.eup %3281  ;;  %v2383_v29 = vmul.f32 %v3280_v8, %v2299_v25 }
 0x2a8   : > { %v3284_v61 = vpop.eup %3283  ;;  %v2415_v4 = vmul.f32 %v2359_v46, %v2029_v0  ;;  %v2357_v3 = vmul.f32 %v3282_v30, %v2286_v9 }
 0x2a9   : > { %v2427_v48 = vmul.f32 %v2383_v29, %v2089_v1  ;;  %v2381_v41 = vmul.f32 %v3284_v61, %v2298_v49 }
 0x2aa   : > { %2504 = vst.msk [vmem:[#allocation3 + $0x69] sm:$0xff] %vm2440_vm11, %v2415_v4  ;;  %v2414_v15 = vmul.f32 %v2357_v3, %v2024_v63 }
 0x2ab   : > { %2516 = vst.msk [vmem:[#allocation3 + $0xf9] sm:$0xff] %vm2440_vm11, %v2427_v48  ;;  %v2426_v26 = vmul.f32 %v2381_v41, %v2084_v2 }
 0x2ac   : > { %2503 = vst.msk [vmem:[#allocation3 + $0x61] sm:$0xff] %vm2440_vm11, %v2414_v15 }
 0x2ad   : > { %2515 = vst.msk [vmem:[#allocation3 + $0xf1] sm:$0xff] %vm2440_vm11, %v2426_v26 }
 0x2b1   : > { %v2550_v36 = vld [vmem:[#allocation3 + $0x69] sm:$0xff] }
 0x2b2   : > { %v3189_v0 = vpop.f32.mrb[4].mxu1  ;;  %v2582_v60 = vld [vmem:[#allocation3 + $0x6a] sm:$0xff] }
 0x2b3   : > { %v2533_v37 = vld [vmem:[#allocation3 + $0x60] sm:$0xff]  ;;  %v2534_v27 = vld [vmem:[#allocation3 + $0x68] sm:$0xff]  ;;  %v3171_v50 = vpop.f32.mrb[8].mxu0  ;;  %v2093_v34 = vpop.f32.mrb[5].mxu1  ;;  %v2099_v42 = vadd.f32 %v3189_v0, %v4404_v62 }
 0x2b4   : > { %v2549_v40 = vld [vmem:[#allocation3 + $0x61] sm:$0xff]  ;;  %v2566_v35 = vmax.f32 %v2534_v27, %v2550_v36  ;;  %v2724_v1 = vmax.f32 %v2691_v23, %v2533_v37  ;;  %v2725_v57 = vmax.f32 %v2692_v33, %v2534_v27  ;;  %v2033_v6 = vpop.f32.mrb[9].mxu0  ;;  %v2039_v2 = vadd.f32 %v3171_v50, %v4404_v62 }
 0x2b5   : > { %v2565_v43 = vmax.f32 %v2533_v37, %v2549_v40  ;;  %v2581_v63 = vld [vmem:[#allocation3 + $0x62] sm:$0xff]  ;;  %v2034_v21 = vadd.f32 %v4404_v62, %v2033_v6  ;;  %v2173_v59 = vmin.f32 %v2099_v42, 20.0  ;;  %v2094_v28 = vadd.f32 %v4404_v62, %v2093_v34 }
 0x2b6   : > { %v2756_v31 = vmax.f32 %v2724_v1, %v2549_v40  ;;  %v2757_v14 = vmax.f32 %v2725_v57, %v2550_v36  ;;  %v2161_v18 = vmin.f32 %v2039_v2, 20.0  ;;  %v4579_v55 = vmax.f32 %v2566_v35, %v2582_v60 }
 0x2b7   : > { %v4577_v44 = vmax.f32 %v2565_v43, %v2581_v63  ;;  %v2160_v54 = vmin.f32 %v2034_v21, 20.0  ;;  %v2226_v32 = vmul.f32 1.442695, %v2173_v59  ;;  %v2172_v24 = vmin.f32 %v2094_v28, 20.0 }
 0x2b8   : > { %v2788_v45 = vmax.f32 %v2756_v31, %v2581_v63  ;;  %v2789_v39 = vmax.f32 %v2757_v14, %v2582_v60  ;;  %v2202_v13 = vmul.f32 1.442695, %v2161_v18 }
 0x2b9   : > { %v2200_v19 = vmul.f32 1.442695, %v2160_v54  ;;  %v2224_v25 = vmul.f32 1.442695, %v2172_v24  ;;  %v4597_v24 = vld [vmem:[#allocation3 + $0xf9] sm:$0xff] }
 0x2ba   : > { %2804 = vst.msk [vmem:[%s4509_s15 + $0x10] sm:$0xff] %vm2440_vm11, %v2788_v45  ;;  %2805 = vst.msk [vmem:[%s4509_s15 + $0x18] sm:$0xff] %vm2440_vm11, %v2789_v39  ;;  %3285 = vpow2.f32 %v2202_v13 }
 0x2bb   : > { %3287 = vpow2.f32 %v2226_v32 }
 0x2bc   : > { %3289 = vpow2.f32 %v2200_v19 }
 0x2bd   : > { %3291 = vpow2.f32 %v2224_v25  ;;  %v4599_v25 = vld [vmem:[#allocation3 + $0xf0] sm:$0xff] }
 0x2c4   : > { %v3286_v38 = vpop.eup %3285 }
 0x2c5   : > { %v3288_v20 = vpop.eup %3287  ;;  %v2257_v9 = vadd.f32 2.0, %v3286_v38 }
 0x2c6   : > { %v3290_v47 = vpop.eup %3289  ;;  %v2269_v49 = vadd.f32 2.0, %v3288_v20 }
 0x2c7   : > { %v3292_v52 = vpop.eup %3291  ;;  %v2289_v5 = vmul.f32 %v3286_v38, %v2257_v9  ;;  %v2256_v58 = vadd.f32 2.0, %v3290_v47  ;;  %v4601_v38 = vld [vmem:[#allocation3 + $0xf8] sm:$0xff] }
 0x2c8   : > { %v2301_v8 = vmul.f32 %v3288_v20, %v2269_v49  ;;  %v2268_v46 = vadd.f32 2.0, %v3292_v52  ;;  %v4603_v20 = vld [vmem:[#allocation3 + $0xf1] sm:$0xff]  ;;  %v2572_v49 = vmax.f32 %v4601_v38, %v4597_v24 }
 0x2c9   : > { %v2321_v30 = vadd.f32 2.0, %v2289_v5  ;;  %v2288_v12 = vmul.f32 %v3290_v47, %v2256_v58  ;;  %v2571_v47 = vmax.f32 %v4599_v25, %v4603_v20 }
 0x2ca   : > { %v2333_v16 = vadd.f32 2.0, %v2301_v8  ;;  %v2300_v29 = vmul.f32 %v3292_v52, %v2268_v46 }
 0x2cb   : > { %3293 = vrcp.f32 %v2321_v30  ;;  %v2320_v61 = vadd.f32 2.0, %v2288_v12 }
 0x2cc   : > { %3295 = vrcp.f32 %v2333_v16  ;;  %v2332_v4 = vadd.f32 2.0, %v2300_v29 }
 0x2cd   : > { %3297 = vrcp.f32 %v2320_v61 }
 0x2ce   : > { %3299 = vrcp.f32 %v2332_v4 }
 0x2d5   : > { %v3294_v3 = vpop.eup %3293 }
 0x2d6   : > { %v3296_v48 = vpop.eup %3295  ;;  %v2363_v41 = vmul.f32 %v3294_v3, %v2289_v5 }
 0x2d7   : > { %v3298_v17 = vpop.eup %3297  ;;  %v2387_v53 = vmul.f32 %v3296_v48, %v2301_v8  ;;  %v4609_v8 = vld [vmem:[#allocation3 + $0xfa] sm:$0xff] }
 0x2d8   : > { %v3300_v15 = vpop.eup %3299  ;;  %v2417_v26 = vmul.f32 %v2363_v41, %v2039_v2  ;;  %v2361_v11 = vmul.f32 %v3298_v17, %v2288_v12  ;;  %v2604_v17 = vmax.f32 %v2572_v49, %v4609_v8  ;;  %v4625_v49 = vld [vmem:[%s4750_s2] ss:$0 sm:$0xff] }
 0x2d9   : > { %v2429_v51 = vmul.f32 %v2387_v53, %v2099_v42  ;;  %v2385_v10 = vmul.f32 %v3300_v15, %v2300_v29  ;;  %v4611_v29 = vld [vmem:[#allocation3 + $0xf2] sm:$0xff] }
 0x2da   : > { %2506 = vst.msk [vmem:[#allocation3 + $0x81] sm:$0xff] %vm2440_vm11, %v2417_v26  ;;  %v2416_v22 = vmul.f32 %v2361_v11, %v2034_v21  ;;  %v2603_v41 = vmax.f32 %v2571_v47, %v4611_v29 }
 0x2db   : > { %2518 = vst.msk [vmem:[#allocation3 + $0x111] sm:$0xff] %vm2440_vm11, %v2429_v51  ;;  %v2428_v56 = vmul.f32 %v2385_v10, %v2094_v28 }
 0x2dc   : > { %2505 = vst.msk [vmem:[#allocation3 + $0x79] sm:$0xff] %vm2440_vm11, %v2416_v22 }
 0x2dd   : > { %2517 = vst.msk [vmem:[#allocation3 + $0x109] sm:$0xff] %vm2440_vm11, %v2428_v56 }
 0x2e2   : > { %v3192_v36 = vpop.f32.mrb[6].mxu1 }
 0x2e3   : > { %v3174_v7 = vpop.f32.mrb[10].mxu0  ;;  %v2109_v33 = vadd.f32 %v3192_v36, %v4404_v62  ;;  %v2103_v27 = vpop.f32.mrb[7].mxu1  ;;  %v2613_v46 = vld [vmem:[#allocation3 + $0x78] sm:$0xff]  ;;  %v2614_v30 = vld [vmem:[#allocation3 + $0x80] sm:$0xff] }
 0x2e4   : > { %v2049_v23 = vadd.f32 %v3174_v7, %v4404_v62  ;;  %v2043_v37 = vpop.f32.mrb[11].mxu0  ;;  %v4594_v50 = vadd.f32 %v4404_v62, %v2103_v27  ;;  %v2619_v61 = vld [vmem:[#allocation3 + $0x108] sm:$0xff]  ;;  %v2620_v4 = vld [vmem:[#allocation3 + $0x110] sm:$0xff]  ;;  %v2629_v26 = vmax.f32 %v4577_v44, %v2613_v46  ;;  %v2630_v11 = vmax.f32 %v4579_v55, %v2614_v30  ;;  %v2645_v36 = vld [vmem:[#allocation3 + $0x79] sm:$0xff] }
 0x2e5   : > { %v2044_v40 = vadd.f32 %v4404_v62, %v2043_v37  ;;  %v2175_v43 = vmin.f32 %v2109_v33, 20.0  ;;  %v2635_v10 = vmax.f32 %v2603_v41, %v2619_v61  ;;  %v2636_v22 = vmax.f32 %v2604_v17, %v2620_v4  ;;  %v2646_v7 = vld [vmem:[#allocation3 + $0x81] sm:$0xff]  ;;  %v2651_v37 = vld [vmem:[#allocation3 + $0x109] sm:$0xff] }
 0x2e6   : > { %v2163_v0 = vmin.f32 %v2049_v23, 20.0  ;;  %v2174_v1 = vmin.f32 %v4594_v50, 20.0  ;;  %v2662_v44 = vmax.f32 %v2630_v11, %v2646_v7 }
 0x2e7   : > { %v2162_v35 = vmin.f32 %v2044_v40, 20.0  ;;  %v2230_v6 = vmul.f32 1.442695, %v2175_v43  ;;  %v2667_v55 = vmax.f32 %v2635_v10, %v2651_v37 }
 0x2e8   : > { %v2206_v57 = vmul.f32 1.442695, %v2163_v0  ;;  %v2228_v63 = vmul.f32 1.442695, %v2174_v1  ;;  %v2678_v0 = vld [vmem:[#allocation3 + $0x82] sm:$0xff] }
 0x2e9   : > { %v2204_v34 = vmul.f32 1.442695, %v2162_v35  ;;  %v2684_v35 = vld [vmem:[#allocation3 + $0x112] sm:$0xff] }
 0x2ea   : > { %3301 = vpow2.f32 %v2206_v57  ;;  %v2683_v57 = vld [vmem:[#allocation3 + $0x10a] sm:$0xff] }
 0x2eb   : > { %3303 = vpow2.f32 %v2230_v6 }
 0x2ec   : > { %3305 = vpow2.f32 %v2204_v34  ;;  %v2699_v34 = vmax.f32 %v2667_v55, %v2683_v57 }
 0x2ed   : > { %3307 = vpow2.f32 %v2228_v63 }
 0x2f4   : > { %v3302_v2 = vpop.eup %3301 }
 0x2f5   : > { %v3304_v42 = vpop.eup %3303  ;;  %v2259_v21 = vadd.f32 2.0, %v3302_v2 }
 0x2f6   : > { %v3306_v60 = vpop.eup %3305  ;;  %v2271_v31 = vadd.f32 2.0, %v3304_v42 }
 0x2f7   : > { %v3308_v62 = vpop.eup %3307  ;;  %v2291_v14 = vmul.f32 %v3302_v2, %v2259_v21  ;;  %v2258_v18 = vadd.f32 2.0, %v3306_v60 }
 0x2f8   : > { %v2303_v59 = vmul.f32 %v3304_v42, %v2271_v31  ;;  %v2270_v54 = vadd.f32 2.0, %v3308_v62 }
 0x2f9   : > { %v2323_v45 = vadd.f32 2.0, %v2291_v14  ;;  %v2290_v39 = vmul.f32 %v3306_v60, %v2258_v18 }
 0x2fa   : > { %v2335_v28 = vadd.f32 2.0, %v2303_v59  ;;  %v2302_v13 = vmul.f32 %v3308_v62, %v2270_v54 }
 0x2fb   : > { %3309 = vrcp.f32 %v2323_v45  ;;  %v2322_v32 = vadd.f32 2.0, %v2290_v39 }
 0x2fc   : > { %3311 = vrcp.f32 %v2335_v28  ;;  %v2334_v19 = vadd.f32 2.0, %v2302_v13 }
 0x2fd   : > { %3313 = vrcp.f32 %v2322_v32 }
 0x2fe   : > { %3315 = vrcp.f32 %v2334_v19 }
 0x305   : > { %v3310_v9 = vpop.eup %3309 }
 0x306   : > { %v3312_v52 = vpop.eup %3311  ;;  %v2367_v5 = vmul.f32 %v3310_v9, %v2291_v14 }
 0x307   : > { %v3314_v58 = vpop.eup %3313  ;;  %v2391_v12 = vmul.f32 %v3312_v52, %v2303_v59 }
 0x308   : > { %v3316_v16 = vpop.eup %3315  ;;  %v2419_v3 = vmul.f32 %v2367_v5, %v2049_v23  ;;  %v2365_v48 = vmul.f32 %v3314_v58, %v2290_v39  ;;  %v2652_v23 = vld [vmem:[#allocation3 + $0x111] sm:$0xff] }
 0x309   : > { %v2431_v53 = vmul.f32 %v2391_v12, %v2109_v33  ;;  %v2389_v15 = vmul.f32 %v3316_v16, %v2302_v13  ;;  %v2661_v33 = vmax.f32 %v2629_v26, %v2645_v36  ;;  %v2668_v27 = vmax.f32 %v2636_v22, %v2652_v23 }
 0x30a   : > { %2508 = vst.msk [vmem:[#allocation3 + $0x99] sm:$0xff] %vm2440_vm11, %v2419_v3  ;;  %v2418_v51 = vmul.f32 %v2365_v48, %v2044_v40  ;;  %v2677_v40 = vld [vmem:[#allocation3 + $0x7a] sm:$0xff] }
 0x30b   : > { %2520 = vst.msk [vmem:[#allocation3 + $0x129] sm:$0xff] %vm2440_vm11, %v2431_v53  ;;  %v2430_v56 = vmul.f32 %v2389_v15, %v4594_v50  ;;  %v2693_v1 = vmax.f32 %v2661_v33, %v2677_v40  ;;  %v2694_v50 = vmax.f32 %v2662_v44, %v2678_v0  ;;  %v2700_v21 = vmax.f32 %v2668_v27, %v2684_v35 }
 0x30c   : > { %2507 = vst.msk [vmem:[#allocation3 + $0x91] sm:$0xff] %vm2440_vm11, %v2418_v51 }
 0x30d   : > { %2519 = vst.msk [vmem:[#allocation3 + $0x121] sm:$0xff] %vm2440_vm11, %v2430_v56 }
 0x311   : > { %v2552_v43 = vld [vmem:[#allocation3 + $0x99] sm:$0xff] }
 0x312   : > { %v2558_v6 = vld [vmem:[#allocation3 + $0x129] sm:$0xff]  ;;  %v3195_v31 = vpop.f32.mrb[8].mxu1  ;;  %v2584_v12 = vld [vmem:[#allocation3 + $0x9a] sm:$0xff] }
 0x313   : > { %v2535_v63 = vld [vmem:[#allocation3 + $0x90] sm:$0xff]  ;;  %v2536_v2 = vld [vmem:[#allocation3 + $0x98] sm:$0xff]  ;;  %v3177_v60 = vpop.f32.mrb[12].mxu0  ;;  %v2113_v28 = vpop.f32.mrb[9].mxu1  ;;  %v2119_v48 = vadd.f32 %v4625_v49, %v3195_v31 }
 0x314   : > { %v2551_v42 = vld [vmem:[#allocation3 + $0x91] sm:$0xff]  ;;  %v2568_v14 = vmax.f32 %v2536_v2, %v2552_v43  ;;  %v2726_v18 = vmax.f32 %v2693_v1, %v2535_v63  ;;  %v2727_v59 = vmax.f32 %v2694_v50, %v2536_v2  ;;  %v2541_v54 = vld [vmem:[#allocation3 + $0x120] sm:$0xff]  ;;  %v2542_v45 = vld [vmem:[#allocation3 + $0x128] sm:$0xff]  ;;  %v2053_v39 = vpop.f32.mrb[13].mxu0  ;;  %v4628_v52 = vadd.f32 %v4625_v49, %v3177_v60 }
 0x315   : > { %v2567_v62 = vmax.f32 %v2535_v63, %v2551_v42  ;;  %v2583_v13 = vld [vmem:[#allocation3 + $0x92] sm:$0xff]  ;;  %v2557_v32 = vld [vmem:[#allocation3 + $0x121] sm:$0xff]  ;;  %v2574_v19 = vmax.f32 %v2542_v45, %v2558_v6  ;;  %v2732_v9 = vmax.f32 %v2699_v34, %v2541_v54  ;;  %v2733_v47 = vmax.f32 %v2700_v21, %v2542_v45  ;;  %v2590_v41 = vld [vmem:[#allocation3 + $0x12a] sm:$0xff] }
 0x316   : > { %v2758_v58 = vmax.f32 %v2726_v18, %v2551_v42  ;;  %v2759_v46 = vmax.f32 %v2727_v59, %v2552_v43  ;;  %v2573_v30 = vmax.f32 %v2541_v54, %v2557_v32  ;;  %v2589_v16 = vld [vmem:[#allocation3 + $0x122] sm:$0xff]  ;;  %v2165_v3 = vmin.f32 %v4628_v52, 20.0 }
 0x317   : > { %v4630_v5 = vmax.f32 %v2567_v62, %v2583_v13  ;;  %v2764_v61 = vmax.f32 %v2732_v9, %v2557_v32  ;;  %v2765_v4 = vmax.f32 %v2733_v47, %v2558_v6  ;;  %v2054_v26 = vadd.f32 %v4625_v49, %v2053_v39 }
 0x318   : > { %v2790_v17 = vmax.f32 %v2758_v58, %v2583_v13  ;;  %v2791_v53 = vmax.f32 %v2759_v46, %v2584_v12  ;;  %v4634_v15 = vmax.f32 %v2573_v30, %v2589_v16  ;;  %v2210_v10 = vmul.f32 1.442695, %v2165_v3 }
 0x319   : > { %v2796_v11 = vmax.f32 %v2764_v61, %v2589_v16  ;;  %v2797_v51 = vmax.f32 %v2765_v4, %v2590_v41  ;;  %v2177_v22 = vmin.f32 %v2119_v48, 20.0  ;;  %v2164_v56 = vmin.f32 %v2054_v26, 20.0 }
 0x31a   : > { %2806 = vst.msk [vmem:[%s4509_s15 + $0x20] sm:$0xff] %vm2440_vm11, %v2790_v17  ;;  %2807 = vst.msk [vmem:[%s4509_s15 + $0x28] sm:$0xff] %vm2440_vm11, %v2791_v53  ;;  %v4641_v7 = vmax.f32 %v2568_v14, %v2584_v12  ;;  %v2114_v36 = vadd.f32 %v4625_v49, %v2113_v28  ;;  %v4644_v23 = vmax.f32 %v2574_v19, %v2590_v41  ;;  %3317 = vpow2.f32 %v2210_v10 }
 0x31b   : > { %2812 = vst.msk [vmem:[%s4509_s15 + $0x50] sm:$0xff] %vm2440_vm11, %v2796_v11  ;;  %2813 = vst.msk [vmem:[%s4509_s15 + $0x58] sm:$0xff] %vm2440_vm11, %v2797_v51  ;;  %v2234_v33 = vmul.f32 1.442695, %v2177_v22  ;;  %v2208_v44 = vmul.f32 1.442695, %v2164_v56 }
 0x31c   : > { %v2176_v37 = vmin.f32 %v2114_v36, 20.0 }
 0x31d   : > { %3319 = vpow2.f32 %v2234_v33 }
 0x31e   : > { %3321 = vpow2.f32 %v2208_v44  ;;  %v2232_v55 = vmul.f32 1.442695, %v2176_v37 }
 0x320   : > { %3323 = vpow2.f32 %v2232_v55 }
 0x324   : > { %v3318_v27 = vpop.eup %3317 }
 0x325   : > { %v2261_v0 = vadd.f32 2.0, %v3318_v27 }
 0x327   : > { %v3320_v40 = vpop.eup %3319  ;;  %v2293_v35 = vmul.f32 %v3318_v27, %v2261_v0 }
 0x328   : > { %v3322_v43 = vpop.eup %3321  ;;  %v2273_v1 = vadd.f32 2.0, %v3320_v40 }
 0x329   : > { %v2260_v57 = vadd.f32 2.0, %v3322_v43  ;;  %v2325_v50 = vadd.f32 2.0, %v2293_v35 }
 0x32a   : > { %v3324_v6 = vpop.eup %3323  ;;  %v2305_v34 = vmul.f32 %v3320_v40, %v2273_v1 }
 0x32b   : > { %v2292_v63 = vmul.f32 %v3322_v43, %v2260_v57  ;;  %v2272_v2 = vadd.f32 2.0, %v3324_v6  ;;  %3325 = vrcp.f32 %v2325_v50 }
 0x32c   : > { %v2337_v42 = vadd.f32 2.0, %v2305_v34 }
 0x32d   : > { %v2324_v21 = vadd.f32 2.0, %v2292_v63  ;;  %v2304_v60 = vmul.f32 %v3324_v6, %v2272_v2 }
 0x32e   : > { %3327 = vrcp.f32 %v2337_v42 }
 0x32f   : > { %3329 = vrcp.f32 %v2324_v21  ;;  %v2336_v31 = vadd.f32 2.0, %v2304_v60 }
 0x331   : > { %3331 = vrcp.f32 %v2336_v31 }
 0x335   : > { %v3326_v62 = vpop.eup %3325 }
 0x336   : > { %v2371_v14 = vmul.f32 %v3326_v62, %v2293_v35  ;;  %v3180_v18 = vpop.f32.mrb[14].mxu0 }
 0x337   : > { %v4651_v54 = vadd.f32 %v4625_v49, %v3180_v18  ;;  %v2063_v45 = vpop.f32.mrb[15].mxu0 }
 0x338   : > { %v3328_v59 = vpop.eup %3327  ;;  %v2421_v28 = vmul.f32 %v2371_v14, %v4628_v52  ;;  %v4655_v32 = vadd.f32 %v4625_v49, %v2063_v45 }
 0x339   : > { %v3330_v39 = vpop.eup %3329  ;;  %v2395_v13 = vmul.f32 %v3328_v59, %v2305_v34  ;;  %v2167_v9 = vmin.f32 %v4651_v54, 20.0 }
 0x33a   : > { %v2369_v19 = vmul.f32 %v3330_v39, %v2292_v63  ;;  %2510 = vst.msk [vmem:[#allocation3 + $0xb1] sm:$0xff] %vm2440_vm11, %v2421_v28  ;;  %v2166_v46 = vmin.f32 %v4655_v32, 20.0 }
 0x33b   : > { %v3332_v47 = vpop.eup %3331  ;;  %v2433_v58 = vmul.f32 %v2395_v13, %v2119_v48  ;;  %v3198_v30 = vpop.f32.mrb[10].mxu1  ;;  %v2214_v61 = vmul.f32 1.442695, %v2167_v9 }
 0x33c   : > { %v2420_v12 = vmul.f32 %v2369_v19, %v2054_v26  ;;  %v2393_v16 = vmul.f32 %v3332_v47, %v2304_v60  ;;  %v4661_v4 = vadd.f32 %v4625_v49, %v3198_v30  ;;  %v2123_v52 = vpop.f32.mrb[11].mxu1  ;;  %v2212_v3 = vmul.f32 1.442695, %v2166_v46 }
 0x33d   : > { %2522 = vst.msk [vmem:[#allocation3 + $0x141] sm:$0xff] %vm2440_vm11, %v2433_v58  ;;  %v4665_v41 = vadd.f32 %v4625_v49, %v2123_v52  ;;  %3333 = vpow2.f32 %v2214_v61 }
 0x33e   : > { %2509 = vst.msk [vmem:[#allocation3 + $0xa9] sm:$0xff] %vm2440_vm11, %v2420_v12  ;;  %v2432_v17 = vmul.f32 %v2393_v16, %v2114_v36  ;;  %v2179_v48 = vmin.f32 %v4661_v4, 20.0  ;;  %3335 = vpow2.f32 %v2212_v3 }
 0x33f   : > { %v2178_v53 = vmin.f32 %v4665_v41, 20.0 }
 0x340   : > { %2521 = vst.msk [vmem:[#allocation3 + $0x139] sm:$0xff] %vm2440_vm11, %v2432_v17  ;;  %v2238_v26 = vmul.f32 1.442695, %v2179_v48 }
 0x341   : > { %v2236_v11 = vmul.f32 1.442695, %v2178_v53 }
 0x342   : > { %3337 = vpow2.f32 %v2238_v26 }
 0x343   : > { %3339 = vpow2.f32 %v2236_v11 }
 0x345   : > { %v2615_v62 = vld [vmem:[#allocation3 + $0xa8] sm:$0xff]  ;;  %v2616_v18 = vld [vmem:[#allocation3 + $0xb0] sm:$0xff] }
 0x346   : > { %v2631_v28 = vmax.f32 %v4630_v5, %v2615_v62  ;;  %v2632_v9 = vmax.f32 %v4641_v7, %v2616_v18  ;;  %v2647_v16 = vld [vmem:[#allocation3 + $0xa9] sm:$0xff] }
 0x347   : > { %v3334_v51 = vpop.eup %3333  ;;  %v2621_v61 = vld [vmem:[#allocation3 + $0x138] sm:$0xff]  ;;  %v2622_v52 = vld [vmem:[#allocation3 + $0x140] sm:$0xff] }
 0x348   : > { %v3336_v10 = vpop.eup %3335  ;;  %v2263_v22 = vadd.f32 2.0, %v3334_v51  ;;  %v2663_v17 = vmax.f32 %v2631_v28, %v2647_v16  ;;  %v2686_v18 = vld [vmem:[#allocation3 + $0x142] sm:$0xff] }
 0x349   : > { %v2262_v56 = vadd.f32 2.0, %v3336_v10 }
 0x34a   : > { %v2295_v33 = vmul.f32 %v3334_v51, %v2263_v22  ;;  %v2637_v22 = vmax.f32 %v4634_v15, %v2621_v61 }
 0x34b   : > { %v3201_v44 = vpop.f32.mrb[12].mxu1  ;;  %v2294_v36 = vmul.f32 %v3336_v10, %v2262_v56  ;;  %v2638_v56 = vmax.f32 %v4644_v23, %v2622_v52  ;;  %v2650_v52 = vld [vmem:[#allocation3 + $0xe1] sm:$0xff] }
 0x34c   : > { %v3338_v37 = vpop.eup %3337  ;;  %v4672_v55 = vadd.f32 %v4625_v49, %v3201_v44  ;;  %v2133_v27 = vpop.f32.mrb[13].mxu1  ;;  %v2327_v40 = vadd.f32 2.0, %v2295_v33  ;;  %v2680_v44 = vld [vmem:[#allocation3 + $0xb2] sm:$0xff] }
 0x34d   : > { %v3340_v0 = vpop.eup %3339  ;;  %v2275_v43 = vadd.f32 2.0, %v3338_v37  ;;  %v4675_v35 = vadd.f32 %v4625_v49, %v2133_v27  ;;  %v2326_v1 = vadd.f32 2.0, %v2294_v36  ;;  %v2654_v27 = vld [vmem:[#allocation3 + $0x141] sm:$0xff] }
 0x34e   : > { %v2274_v57 = vadd.f32 2.0, %v3340_v0  ;;  %v2181_v6 = vmin.f32 %v4672_v55, 20.0  ;;  %3341 = vrcp.f32 %v2327_v40 }
 0x34f   : > { %v2307_v50 = vmul.f32 %v3338_v37, %v2275_v43  ;;  %v2180_v34 = vmin.f32 %v4675_v35, 20.0  ;;  %3343 = vrcp.f32 %v2326_v1  ;;  %v2679_v37 = vld [vmem:[#allocation3 + $0xaa] sm:$0xff] }
 0x350   : > { %v2306_v63 = vmul.f32 %v3340_v0, %v2274_v57  ;;  %v2242_v2 = vmul.f32 1.442695, %v2181_v6  ;;  %v2695_v23 = vmax.f32 %v2663_v17, %v2679_v37  ;;  %v2653_v0 = vld [vmem:[#allocation3 + $0x139] sm:$0xff] }
 0x351   : > { %v2339_v42 = vadd.f32 2.0, %v2307_v50  ;;  %v2240_v21 = vmul.f32 1.442695, %v2180_v34  ;;  %v2669_v57 = vmax.f32 %v2637_v22, %v2653_v0 }
 0x352   : > { %v2338_v60 = vadd.f32 2.0, %v2306_v63  ;;  %3345 = vpow2.f32 %v2242_v2 }
 0x353   : > { %3347 = vrcp.f32 %v2339_v42 }
 0x354   : > { %3349 = vrcp.f32 %v2338_v60 }
 0x355   : > { %3351 = vpow2.f32 %v2240_v21 }
 0x358   : > { %v3342_v31 = vpop.eup %3341 }
 0x359   : > { %v3344_v14 = vpop.eup %3343  ;;  %v2375_v59 = vmul.f32 %v3342_v31, %v2295_v33 }
 0x35a   : > { %v2373_v45 = vmul.f32 %v3344_v14, %v2294_v36  ;;  %v2617_v14 = vld [vmem:[#allocation3 + $0xd8] sm:$0xff] }
 0x35b   : > { %v2423_v13 = vmul.f32 %v2375_v59, %v4651_v54  ;;  %v2648_v54 = vld [vmem:[#allocation3 + $0xb1] sm:$0xff]  ;;  %v2685_v59 = vld [vmem:[#allocation3 + $0x13a] sm:$0xff] }
 0x35c   : > { %v3346_v39 = vpop.eup %3345  ;;  %v2422_v47 = vmul.f32 %v2373_v45, %v4655_v32  ;;  %v2664_v53 = vmax.f32 %v2632_v9, %v2648_v54  ;;  %v2701_v9 = vmax.f32 %v2669_v57, %v2685_v59 }
 0x35d   : > { %v3348_v19 = vpop.eup %3347  ;;  %v2277_v58 = vadd.f32 2.0, %v3346_v39  ;;  %2512 = vst.msk [vmem:[#allocation3 + $0xc9] sm:$0xff] %vm2440_vm11, %v2423_v13 }
 0x35e   : > { %v3350_v46 = vpop.eup %3349  ;;  %v2399_v30 = vmul.f32 %v3348_v19, %v2307_v50  ;;  %2511 = vst.msk [vmem:[#allocation3 + $0xc1] sm:$0xff] %vm2440_vm11, %v2422_v47  ;;  %v2696_v43 = vmax.f32 %v2664_v53, %v2680_v44  ;;  %v2618_v19 = vld [vmem:[#allocation3 + $0xe0] sm:$0xff] }
 0x35f   : > { %v3352_v12 = vpop.eup %3351  ;;  %v2397_v3 = vmul.f32 %v3350_v46, %v2306_v63  ;;  %v4685_v5 = vmul.f32 %v3346_v39, %v2277_v58 }
 0x360   : > { %v2435_v7 = vmul.f32 %v2399_v30, %v4661_v4  ;;  %v2276_v48 = vadd.f32 2.0, %v3352_v12  ;;  %v3204_v32 = vpop.f32.mrb[14].mxu1 }
 0x361   : > { %v2434_v26 = vmul.f32 %v2397_v3, %v4665_v41  ;;  %v2341_v11 = vadd.f32 2.0, %v4685_v5  ;;  %v4691_v51 = vadd.f32 %v4625_v49, %v3204_v32  ;;  %v2143_v10 = vpop.f32.mrb[15].mxu1  ;;  %v2649_v3 = vld [vmem:[#allocation3 + $0xd9] sm:$0xff] }
 0x362   : > { %2524 = vst.msk [vmem:[#allocation3 + $0x159] sm:$0xff] %vm2440_vm11, %v2435_v7  ;;  %v4696_v33 = vmul.f32 %v3352_v12, %v2276_v48  ;;  %v4699_v4 = vadd.f32 %v4625_v49, %v2143_v10  ;;  %v2670_v49 = vmax.f32 %v2638_v56, %v2654_v27  ;;  %v2681_v10 = vld [vmem:[#allocation3 + $0xda] sm:$0xff] }
 0x363   : > { %2523 = vst.msk [vmem:[#allocation3 + $0x151] sm:$0xff] %vm2440_vm11, %v2434_v26  ;;  %3353 = vrcp.f32 %v2341_v11  ;;  %v2183_v41 = vmin.f32 %v4691_v51, 20.0  ;;  %v2682_v11 = vld [vmem:[#allocation3 + $0xe2] sm:$0xff] }
 0x364   : > { %v2340_v36 = vadd.f32 2.0, %v4696_v33  ;;  %v2182_v15 = vmin.f32 %v4699_v4, 20.0  ;;  %v2554_v40 = vld [vmem:[#allocation3 + $0xc9] sm:$0xff]  ;;  %v2702_v46 = vmax.f32 %v2670_v49, %v2686_v18 }
 0x365   : > { %v2246_v1 = vmul.f32 1.442695, %v2183_v41  ;;  %v2537_v6 = vld [vmem:[#allocation3 + $0xc0] sm:$0xff]  ;;  %v2538_v50 = vld [vmem:[#allocation3 + $0xc8] sm:$0xff] }
 0x366   : > { %v2553_v34 = vld [vmem:[#allocation3 + $0xc1] sm:$0xff]  ;;  %3355 = vrcp.f32 %v2340_v36  ;;  %v2244_v63 = vmul.f32 1.442695, %v2182_v15  ;;  %v2570_v42 = vmax.f32 %v2538_v50, %v2554_v40  ;;  %v2728_v21 = vmax.f32 %v2695_v23, %v2537_v6  ;;  %v2586_v31 = vld [vmem:[#allocation3 + $0xca] sm:$0xff] }
 0x367   : > { %v2569_v2 = vmax.f32 %v2537_v6, %v2553_v34  ;;  %v2729_v60 = vmax.f32 %v2696_v43, %v2538_v50  ;;  %v2585_v62 = vld [vmem:[#allocation3 + $0xc2] sm:$0xff]  ;;  %3357 = vpow2.f32 %v2246_v1 }
 0x368   : > { %v2602_v39 = vmax.f32 %v2570_v42, %v2586_v31  ;;  %v2760_v28 = vmax.f32 %v2728_v21, %v2553_v34  ;;  %3359 = vpow2.f32 %v2244_v63 }
 0x369   : > { %v2601_v45 = vmax.f32 %v2569_v2, %v2585_v62  ;;  %v2761_v13 = vmax.f32 %v2729_v60, %v2554_v40  ;;  %v2560_v53 = vld [vmem:[#allocation3 + $0x159] sm:$0xff] }
 0x36a   : > { %v4705_v47 = vld [vmem:[#allocation3 + $0x150] sm:$0xff]  ;;  %v4707_v58 = vld [vmem:[#allocation3 + $0x158] sm:$0xff]  ;;  %v2634_v12 = vmax.f32 %v2602_v39, %v2618_v19  ;;  %v2792_v16 = vmax.f32 %v2760_v28, %v2585_v62 }
 0x36b   : > { %v2633_v30 = vmax.f32 %v2601_v45, %v2617_v14  ;;  %v2793_v61 = vmax.f32 %v2761_v13, %v2586_v31  ;;  %v2734_v54 = vmax.f32 %v2701_v9, %v4705_v47  ;;  %v2735_v17 = vmax.f32 %v2702_v46, %v4707_v58  ;;  %v2559_v26 = vld [vmem:[#allocation3 + $0x151] sm:$0xff]  ;;  %v2592_v36 = vld [vmem:[#allocation3 + $0x15a] sm:$0xff] }
 0x36c   : > { %v2666_v32 = vmax.f32 %v2634_v12, %v2650_v52  ;;  %2808 = vst.msk [vmem:[%s4509_s15 + $0x30] sm:$0xff] %vm2440_vm11, %v2792_v16  ;;  %v2591_v15 = vld [vmem:[#allocation3 + $0x152] sm:$0xff]  ;;  %v2576_v42 = vmax.f32 %v4707_v58, %v2560_v53 }
 0x36d   : > { %v3354_v7 = vpop.eup %3353  ;;  %v2665_v48 = vmax.f32 %v2633_v30, %v2649_v3  ;;  %2809 = vst.msk [vmem:[%s4509_s15 + $0x38] sm:$0xff] %vm2440_vm11, %v2793_v61  ;;  %v2766_v22 = vmax.f32 %v2734_v54, %v2559_v26  ;;  %v2767_v56 = vmax.f32 %v2735_v17, %v2560_v53 }
 0x36e   : > { %v2403_v41 = vmul.f32 %v3354_v7, %v4685_v5  ;;  %v2698_v37 = vmax.f32 %v2666_v32, %v2682_v11  ;;  %v2608_v14 = vmax.f32 %v2576_v42, %v2592_v36 }
 0x36f   : > { %v2697_v44 = vmax.f32 %v2665_v48, %v2681_v10  ;;  %v2798_v23 = vmax.f32 %v2766_v22, %v2591_v15  ;;  %v2799_v0 = vmax.f32 %v2767_v56, %v2592_v36 }
 0x370   : > { %v3356_v27 = vpop.eup %3355  ;;  %v2437_v40 = vmul.f32 %v2403_v41, %v4672_v55  ;;  %v2731_v1 = vmax.f32 %v2698_v37, %v4601_v38 }
 0x371   : > { %v2730_v43 = vmax.f32 %v2697_v44, %v4599_v25  ;;  %v2401_v57 = vmul.f32 %v3356_v27, %v4696_v33  ;;  %v3358_v49 = vpop.eup %3357  ;;  %2814 = vst.msk [vmem:[%s4509_s15 + $0x60] sm:$0xff] %vm2440_vm11, %v2798_v23  ;;  %2815 = vst.msk [vmem:[%s4509_s15 + $0x68] sm:$0xff] %vm2440_vm11, %v2799_v0 }
 0x372   : > { %2526 = vst.msk [vmem:[#allocation3 + $0x171] sm:$0xff] %vm2440_vm11, %v2437_v40  ;;  %v2763_v6 = vmax.f32 %v2731_v1, %v4597_v24  ;;  %v2279_v25 = vadd.f32 2.0, %v3358_v49  ;;  %v3360_v50 = vpop.eup %3359 }
 0x373   : > { %v2762_v5 = vmax.f32 %v2730_v43, %v4603_v20  ;;  %v2436_v55 = vmul.f32 %v2401_v57, %v4675_v35  ;;  %v2278_v63 = vadd.f32 2.0, %v3360_v50  ;;  %v2575_v35 = vmax.f32 %v4705_v47, %v2559_v26 }
 0x374   : > { %v2795_v33 = vmax.f32 %v2763_v6, %v4609_v8  ;;  %v2311_v34 = vmul.f32 %v3358_v49, %v2279_v25 }
 0x375   : > { %v2794_v38 = vmax.f32 %v2762_v5, %v4611_v29  ;;  %2525 = vst.msk [vmem:[#allocation3 + $0x169] sm:$0xff] %vm2440_vm11, %v2436_v55  ;;  %v2310_v20 = vmul.f32 %v3360_v50, %v2278_v63  ;;  %v2607_v62 = vmax.f32 %v2575_v35, %v2591_v15 }
 0x376   : > { %2811 = vst.msk [vmem:[%s4509_s15 + $0x48] sm:$0xff] %vm2440_vm11, %v2795_v33  ;;  %v2343_v2 = vadd.f32 2.0, %v2311_v34 }
 0x377   : > { %2810 = vst.msk [vmem:[%s4509_s15 + $0x40] sm:$0xff] %vm2440_vm11, %v2794_v38  ;;  %v2342_v24 = vadd.f32 2.0, %v2310_v20 }
 0x378   : > { %3361 = vrcp.f32 %v2343_v2 }
 0x379   : > { %3363 = vrcp.f32 %v2342_v24  ;;  %v2656_v13 = vld [vmem:[#allocation3 + $0x171] sm:$0xff] }
 0x37a   : > { %v2688_v58 = vld [vmem:[#allocation3 + $0x172] sm:$0xff] }
 0x37c   : > { %v2623_v60 = vld [vmem:[#allocation3 + $0x168] sm:$0xff]  ;;  %v2624_v31 = vld [vmem:[#allocation3 + $0x170] sm:$0xff] }
 0x37d   : > { %v2639_v45 = vmax.f32 %v2607_v62, %v2623_v60  ;;  %v2640_v39 = vmax.f32 %v2608_v14, %v2624_v31  ;;  %v2655_v19 = vld [vmem:[#allocation3 + $0x169] sm:$0xff] }
 0x37e   : > { %v2687_v46 = vld [vmem:[#allocation3 + $0x16a] sm:$0xff] }
 0x37f   : > { %v2671_v9 = vmax.f32 %v2639_v45, %v2655_v19  ;;  %v2672_v47 = vmax.f32 %v2640_v39, %v2656_v13 }
 0x381   : > { %v2703_v30 = vmax.f32 %v2671_v9, %v2687_v46  ;;  %v2704_v12 = vmax.f32 %v2672_v47, %v2688_v58 }
 0x382   : > { %v3362_v29 = vpop.eup %3361 }
 0x383   : > { %v2407_v21 = vmul.f32 %v3362_v29, %v2311_v34  ;;  %v3364_v8 = vpop.eup %3363 }
 0x384   : > { %v2405_v59 = vmul.f32 %v3364_v8, %v2310_v20 }
 0x385   : > { %v2439_v18 = vmul.f32 %v2407_v21, %v4691_v51 }
 0x386   : > { %v2438_v28 = vmul.f32 %v2405_v59, %v4699_v4 }
 0x387   : > { %2528 = vst.msk [vmem:[#allocation3 + $0x189] sm:$0xff] %vm2440_vm11, %v2439_v18 }
 0x388   : > { %2527 = vst.msk [vmem:[#allocation3 + $0x181] sm:$0xff] %vm2440_vm11, %v2438_v28 }
 0x38e   : > { %v2753_v3 = vld [vmem:[#allocation3 + $0x189] sm:$0xff] }
 0x38f   : > { %v2720_v51 = vld [vmem:[#allocation3 + $0x180] sm:$0xff]  ;;  %v2721_v16 = vld [vmem:[#allocation3 + $0x188] sm:$0xff] }
 0x390   : > { %v2736_v61 = vmax.f32 %v2703_v30, %v2720_v51  ;;  %v2737_v52 = vmax.f32 %v2704_v12, %v2721_v16  ;;  %v2752_v54 = vld [vmem:[#allocation3 + $0x181] sm:$0xff]  ;;  %v2785_v7 = vld [vmem:[#allocation3 + $0x18a] sm:$0xff] }
 0x391   : > { %v2784_v48 = vld [vmem:[#allocation3 + $0x182] sm:$0xff] }
 0x392   : > { %v2768_v17 = vmax.f32 %v2736_v61, %v2752_v54  ;;  %v2769_v4 = vmax.f32 %v2737_v52, %v2753_v3 }
 0x394   : > { %v2800_v32 = vmax.f32 %v2768_v17, %v2784_v48  ;;  %v2801_v53 = vmax.f32 %v2769_v4, %v2785_v7 }
 0x396   : > { %2816 = vst.msk [vmem:[%s4509_s15 + $0x70] sm:$0xff] %vm2440_vm11, %v2800_v32  ;;  %2817 = vst.msk [vmem:[%s4509_s15 + $0x78] sm:$0xff] %vm2440_vm11, %v2801_v53 }
 0x397 PF: > { %s13_s12 = sadd.s32 1, %s3372_s12  }
 0x398   : > { %p10_p4 = scmp.ge.s32.totalorder %s13_s12, 4  }
 0x39a   :  { %12 = sbr.rel (!%p10_p4) target bundleno = 1 (0x1), region = 66 }

</bundles_post_ra>
